<compile_context>
chip_gen: v5e
topology: v5e:2x2
jax: 0.10.0
libtpu: 0.0.40
codegen_flags: <defaults>
</compile_context>

<pallas_src>
import functools

import jax
import jax.numpy as jnp
from jax.experimental import pallas as pl
from jax.experimental.pallas import tpu as pltpu


def _round_up(v, m):
    return (v + m - 1) // m * m


def _vmem_caps():
    """(compiler vmem limit, per-step block budget) — generation-aware."""
    try:
        cap = int(pltpu.get_tpu_info().vmem_capacity_bytes)
    except Exception:
        cap = 64 * 1024 * 1024                       # v7x-safe fallback
    if cap < 48 * 1024 * 1024:
        cap = 64 * 1024 * 1024
    limit = min(int(cap * 0.80), cap - 8 * 1024 * 1024)
    budget = int(limit * 0.72)
    return limit, budget


_VMEM_LIMIT, _VMEM_BUDGET = _vmem_caps()


def _tile_bytes(rows, cols, itemsize):
    """VMEM bytes of a (rows, cols) array including lane/sublane padding."""
    sub = 8 if itemsize == 4 else 16                 # f32 vs bf16 sublane packing
    return _round_up(max(rows, 1), sub) * _round_up(max(cols, 1), 128) * itemsize


def _conv_vmem_bytes(tile_h, banded, wp, w, cin, cout):
    thw_out = tile_h * wp
    thw_in = (tile_h + 3) * wp
    byt = 2 * 9 * _tile_bytes(cin, cout, 2)          # weights (double-buffered)
    byt += 2 * _tile_bytes(1, cout, 4)               # bias
    if banded:
        byt += 2 * _tile_bytes(thw_out, cin, 2)      # core band (dbl-buffered)
        byt += 2 * _tile_bytes(8 * wp, cin, 2)       # 8-row halo (dbl-buffered)
        byt += _tile_bytes(thw_in, cin, 2)           # flat assembly scratch
    else:
        byt += 2 * _tile_bytes(thw_in, cin, 2)       # whole padded image
    byt += 2 * tile_h * _tile_bytes(w, cout, 2)      # bf16 feature output
    byt += 2 * _tile_bytes(tile_h, w, 4)             # f32 channel-sum output
    byt += _tile_bytes(thw_out, cout, 4)             # f32 accumulator scratch
    byt += tile_h * _tile_bytes(w, cout, 4)          # f32 epilogue temporary
    return byt


def _pick_conv_tile(h, wp, w, cin, cout):
    """Largest row tile that fits the VMEM budget; prefers the whole image."""
    if _conv_vmem_bytes(h, False, wp, w, cin, cout) <= _VMEM_BUDGET:
        return h, False
    cands = sorted((d for d in range(8, h, 8) if h % d == 0), reverse=True)
    for th in cands:
        if _conv_vmem_bytes(th, True, wp, w, cin, cout) <= _VMEM_BUDGET:
            return th, True
    if cands:
        return cands[-1], True
    return h, False                                  # best effort


# ----------------------------------------------------------------------------
# 3x3 "same" conv + bias + ReLU + per-pixel channel sum (for the gram term).
# Hot path: 9 bf16 MXU matmuls per row band accumulating into f32 VMEM scratch.
# ----------------------------------------------------------------------------
def _taps_epilogue(tap, w_ref, b_ref, o_ref, s_ref, acc_ref, *,
                   wp, w_out, tile_h, cout):
    # First tap assigns the accumulator (no zero-init RMW); remaining 8 add.
    acc_ref[...] = jnp.dot(tap(0), w_ref[0], preferred_element_type=jnp.float32)
    for idx in range(1, 9):
        kh, kw = divmod(idx, 3)
        acc_ref[...] += jnp.dot(tap(kh * wp + kw), w_ref[idx],
                                preferred_element_type=jnp.float32)
    # Un-pad inside the kernel (drop the wp - w_out junk columns), fuse bias+ReLU.
    res = acc_ref[...].reshape(tile_h, wp, cout)[:, :w_out, :] + b_ref[...]
    res = jnp.maximum(res, 0.0)
    o_ref[0] = res.astype(o_ref.dtype)
    s_ref[0] = jnp.sum(res, axis=-1)                 # per-pixel channel sum (f32)


def _conv_kernel_single(x_ref, w_ref, b_ref, o_ref, s_ref, acc_ref, *,
                        wp, w_out, tile_h, cout):
    # x_ref: (1, (H+3)*Wp, Cin) — whole padded image, flattened.
    thw_out = tile_h * wp
    tap = lambda off: x_ref[0, pl.ds(off, thw_out), :]
    _taps_epilogue(tap, w_ref, b_ref, o_ref, s_ref, acc_ref,
                   wp=wp, w_out=w_out, tile_h=tile_h, cout=cout)


def _conv_kernel_banded(x_ref, halo_ref, w_ref, b_ref, o_ref, s_ref,
                        flat_ref, acc_ref, *, wp, w_out, tile_h, cout):
    # x_ref:    (1, tile_h*Wp, Cin)   non-overlapping core band (flat rows)
    # halo_ref: (1, 8*Wp, Cin)        the next 8 padded rows of the same array
    # flat_ref: ((tile_h+3)*Wp, Cin)  VMEM scratch: contiguous band assembly
    thw_out = tile_h * wp
    flat_ref[pl.ds(0, thw_out), :] = x_ref[0]
    flat_ref[pl.ds(thw_out, 3 * wp), :] = halo_ref[0, pl.ds(0, 3 * wp), :]
    tap = lambda off: flat_ref[pl.ds(off, thw_out), :]
    _taps_epilogue(tap, w_ref, b_ref, o_ref, s_ref, acc_ref,
                   wp=wp, w_out=w_out, tile_h=tile_h, cout=cout)


def conv3x3_relu(x_nhwc, w_hwio, b, *, tile_h_override=None):
    """3x3 'same' conv + bias + ReLU.

    Returns (features (N,H,W,Cout) bf16, channel_sums (N,H,W) f32)."""
    x = x_nhwc.astype(jnp.bfloat16)                  # bf16 operands, f32 accumulate
    n, h, w, cin = x.shape
    cout = w_hwio.shape[-1]
    wp = _round_up(w + 2, 8)                         # sublane-aligned padded width

    if tile_h_override is not None:
        tile_h = tile_h_override
        banded = tile_h != h
    else:
        tile_h, banded = _pick_conv_tile(h, wp, w, cin, cout)
    if banded:
        assert tile_h % 8 == 0 and h % tile_h == 0
    t = h // tile_h
    thw_in = (tile_h + 3) * wp
    thw_out = tile_h * wp

    # Single pad (top 1 row, enough zero bottom rows for the last band's halo,
    # left 1 col, right cols up to wp), then a FREE reshape to flat rows.
    bot = 7 if banded else 2
    xp = jnp.pad(x, ((0, 0), (1, bot), (1, wp - w - 1), (0, 0)))
    xf = xp.reshape(n, (h + 1 + bot) * wp, cin)

    w9 = w_hwio.astype(jnp.bfloat16).reshape(9, cin, cout)   # tap-major weights
    b2 = b.astype(jnp.float32).reshape(1, cout)

    out_shape = (jax.ShapeDtypeStruct((n, h, w, cout), jnp.bfloat16),
                 jax.ShapeDtypeStruct((n, h, w), jnp.float32))
    out_specs = [pl.BlockSpec((1, tile_h, w, cout), lambda i, j: (i, j, 0, 0)),
                 pl.BlockSpec((1, tile_h, w), lambda i, j: (i, j, 0))]
    w_spec = pl.BlockSpec((9, cin, cout), lambda i, j: (0, 0, 0))
    b_spec = pl.BlockSpec((1, cout), lambda i, j: (0, 0))

    if not banded:
        kernel = functools.partial(_conv_kernel_single, wp=wp, w_out=w,
                                   tile_h=tile_h, cout=cout)
        in_specs = [pl.BlockSpec((1, thw_in, cin), lambda i, j: (i, 0, 0)),
                    w_spec, b_spec]
        scratch = [pltpu.VMEM((thw_out, cout), jnp.float32)]
        args = (xf, w9, b2)
    else:
        hb = tile_h // 8
        kernel = functools.partial(_conv_kernel_banded, wp=wp, w_out=w,
                                   tile_h=tile_h, cout=cout)
        in_specs = [pl.BlockSpec((1, thw_out, cin), lambda i, j: (i, j, 0)),
                    pl.BlockSpec((1, 8 * wp, cin),
                                 lambda i, j: (i, (j + 1) * hb, 0)),
                    w_spec, b_spec]
        scratch = [pltpu.VMEM((thw_in, cin), jnp.bfloat16),
                   pltpu.VMEM((thw_out, cout), jnp.float32)]
        args = (xf, xf, w9, b2)                      # same array, two blockings

    feats, sums = pl.pallas_call(
        kernel,
        out_shape=out_shape,
        grid_spec=pltpu.PrefetchScalarGridSpec(
            num_scalar_prefetch=0,
            grid=(n, t),
            in_specs=in_specs,
            out_specs=out_specs,
            scratch_shapes=scratch),
        compiler_params=pltpu.CompilerParams(
            dimension_semantics=("parallel", "parallel"),
            vmem_limit_bytes=_VMEM_LIMIT),
    )(*args)
    return feats, sums


# ----------------------------------------------------------------------------
# VGG19 trunk (synthetic deterministic weights, VGG19 channel counts/slices)
# ----------------------------------------------------------------------------
_VGG_CFG = [(3, 64), (64, 64), (64, 128), (128, 128), (128, 256), (256, 256),
            (256, 256), (256, 256), (256, 512), (512, 512), (512, 512),
            (512, 512), (512, 512)]
_SLICE_CONV_IDX = (0, 2, 4, 8, 12)    # convs whose ReLU output is a VGG slice
_POOL_AFTER = (1, 3, 7, 11)           # maxpool after these convs


def init_vgg_params(key):
    params = []
    for cin, cout in _VGG_CFG:
        key, wk = jax.random.split(key)
        wgt = jax.random.normal(wk, (3, 3, cin, cout), jnp.float32)
        wgt = wgt * jnp.sqrt(2.0 / (3 * 3 * cin))    # He init (synthetic weights)
        params.append((wgt, jnp.zeros((cout,), jnp.float32)))
    return params


def maxpool2x2(x):
    # glue: MaxPool2d(kernel=2, stride=2); negligible cost vs the conv kernels
    n, h, w, c = x.shape
    return jnp.max(x.reshape(n, h // 2, 2, w // 2, 2, c), axis=(2, 4))


def vgg19_slice_channel_sums(x_nhwc, params):
    """Runs the VGG19 trunk; returns the per-pixel channel-sum map of each of
    the 5 slice outputs (all that the cross-Gram mean needs) + channel counts."""
    sums, chans = [], []
    h = x_nhwc
    for idx, p in enumerate(params):
        h, s = conv3x3_relu(h, *p)
        if idx in _SLICE_CONV_IDX:
            sums.append(s)
            chans.append(p[0].shape[-1])
        if idx in _POOL_AFTER:
            h = maxpool2x2(h)
    return sums, chans


_LOSS_WEIGHTS = (1.0 / 32, 1.0 / 16, 1.0 / 8, 1.0 / 4, 1.0)


def gram_loss(x_nchw, y_nchw, params):
    """Matches GramLoss.forward: sum_i w_i * bmm(X_i, detach(Y_i)^T).mean()."""
    x = jnp.transpose(x_nchw, (0, 2, 3, 1))          # NCHW -> NHWC for the kernels
    y = jnp.transpose(y_nchw, (0, 2, 3, 1))
    n = x.shape[0]
    xs, chans = vgg19_slice_channel_sums(x, params)
    ys, _ = vgg19_slice_channel_sums(y, params)
    loss = jnp.float32(0.0)
    for wgt, sx, sy, c in zip(_LOSS_WEIGHTS, xs, ys, chans):
        sy = jax.lax.stop_gradient(sy)               # y is detached in torch
        # mean over (n,c,c) of bmm(X, Y^T) == 1/(n*c^2) * sum_n <sum_c X, sum_c Y>
        loss = loss + jnp.float32(wgt) * jnp.sum(sx * sy) / jnp.float32(n * c * c)
    return loss


if __name__ == "__main__":
    key = jax.random.PRNGKey(0)
    kp, kcw, kcx, kx, ky = jax.random.split(key, 5)
    params = init_vgg_params(kp)

    # Self-check: the banded (halo-assembled) path matches the whole-image path.
    cw = jax.random.normal(kcw, (3, 3, 64, 64), jnp.float32) * 0.05
    cb = jnp.zeros((64,), jnp.float32)
    cx = jax.random.normal(kcx, (1, 16, 16, 64), jnp.float32)
    f_whole, s_whole = conv3x3_relu(cx, cw, cb)
    f_band, s_band = conv3x3_relu(cx, cw, cb, tile_h_override=8)
    assert bool(jnp.allclose(f_whole.astype(jnp.float32),
                             f_band.astype(jnp.float32), atol=1e-2, rtol=1e-2))
    assert bool(jnp.allclose(s_whole, s_band, atol=1e-1, rtol=1e-2))

    x = jax.random.normal(kx, (2, 3, 32, 32), jnp.float32)
    y = jax.random.normal(ky, (2, 3, 32, 32), jnp.float32)
    loss = jax.jit(lambda a, b: gram_loss(a, b, params))(x, y)
    jax.block_until_ready(loss)
    assert loss.shape == () and bool(jnp.isfinite(loss))
    print("KERNEL_OK")
</pallas_src>

<mosaic_0001>
module attributes {stable_mosaic.version = 11 : i64} {
  func.func @_conv_kernel_single(%arg0: i32, %arg1: i32, %arg2: memref<1x456x64xbf16, #tpu.memory_space<vmem>>, %arg3: memref<9x64x64xbf16, #tpu.memory_space<vmem>>, %arg4: memref<1x64xf32, #tpu.memory_space<vmem>>, %arg5: memref<1x16x16x64xbf16, #tpu.memory_space<vmem>>, %arg6: memref<1x16x16xf32, #tpu.memory_space<vmem>>, %arg7: memref<384x64xf32, #tpu.memory_space<vmem>>) attributes {dimension_semantics = [#tpu.dimension_semantics<parallel>, #tpu.dimension_semantics<parallel>], iteration_bounds = array<i64: 1, 1>, scalar_prefetch = 0 : i64, scratch_operands = 1 : i64, tpu.core_type = #tpu.core_type<tc>, window_params = [{transform_indices = @transform_0, window_bounds = array<i64: 1, 456, 64>}, {pipeline_mode = #tpu.pipeline_mode<synchronous>, transform_indices = @transform_1, window_bounds = array<i64: 9, 64, 64>}, {pipeline_mode = #tpu.pipeline_mode<synchronous>, transform_indices = @transform_2, window_bounds = array<i64: 1, 64>}, {transform_indices = @transform_3, window_bounds = array<i64: 1, 16, 16, 64>}, {transform_indices = @transform_4, window_bounds = array<i64: 1, 16, 16>}]} {
    %c0 = arith.constant 0 : index
    %c0_0 = arith.constant 0 : index
    %c0_1 = arith.constant 0 : index
    %0 = vector.load %arg2[%c0, %c0_0, %c0_1] : memref<1x456x64xbf16, #tpu.memory_space<vmem>>, vector<1x384x64xbf16>
    %1 = vector.shape_cast %0 : vector<1x384x64xbf16> to vector<384x64xbf16>
    %c0_2 = arith.constant 0 : index
    %c0_3 = arith.constant 0 : index
    %c0_4 = arith.constant 0 : index
    %2 = vector.load %arg3[%c0_2, %c0_3, %c0_4] : memref<9x64x64xbf16, #tpu.memory_space<vmem>>, vector<1x64x64xbf16>
    %3 = vector.shape_cast %2 : vector<1x64x64xbf16> to vector<64x64xbf16>
    %cst = arith.constant dense<0.000000e+00> : vector<384x64xf32>
    %4 = tpu.matmul %1, %3, %cst {dimension_numbers = #tpu.dot_dimension_numbers<[1], [0], [0], [1], [0, 0, 1, 1], [], []>} : vector<384x64xbf16>, vector<64x64xbf16>, vector<384x64xf32> -> vector<384x64xf32>
    %c0_5 = arith.constant 0 : index
    %c0_6 = arith.constant 0 : index
    %5 = vector.load %arg7[%c0_5, %c0_6] : memref<384x64xf32, #tpu.memory_space<vmem>>, vector<384x64xf32>
    tpu.vector_store %arg7[%c0_5, %c0_6], %4 {strides = array<i32>} : memref<384x64xf32, #tpu.memory_space<vmem>>, vector<384x64xf32>,
    %c0_7 = arith.constant 0 : index
    %c0_8 = arith.constant 0 : index
    %6 = vector.load %arg7[%c0_7, %c0_8] : memref<384x64xf32, #tpu.memory_space<vmem>>, vector<384x64xf32>
    %c0_9 = arith.constant 0 : index
    %c1 = arith.constant 1 : index
    %c0_10 = arith.constant 0 : index
    %7 = vector.load %arg2[%c0_9, %c1, %c0_10] : memref<1x456x64xbf16, #tpu.memory_space<vmem>>, vector<1x384x64xbf16>
    %8 = vector.shape_cast %7 : vector<1x384x64xbf16> to vector<384x64xbf16>
    %c1_11 = arith.constant 1 : index
    %c0_12 = arith.constant 0 : index
    %c0_13 = arith.constant 0 : index
    %9 = vector.load %arg3[%c1_11, %c0_12, %c0_13] : memref<9x64x64xbf16, #tpu.memory_space<vmem>>, vector<1x64x64xbf16>
    %10 = vector.shape_cast %9 : vector<1x64x64xbf16> to vector<64x64xbf16>
    %cst_14 = arith.constant dense<0.000000e+00> : vector<384x64xf32>
    %11 = tpu.matmul %8, %10, %cst_14 {dimension_numbers = #tpu.dot_dimension_numbers<[1], [0], [0], [1], [0, 0, 1, 1], [], []>} : vector<384x64xbf16>, vector<64x64xbf16>, vector<384x64xf32> -> vector<384x64xf32>
    %12 = arith.addf %6, %11 : vector<384x64xf32>
    %c0_15 = arith.constant 0 : index
    %c0_16 = arith.constant 0 : index
    %13 = vector.load %arg7[%c0_15, %c0_16] : memref<384x64xf32, #tpu.memory_space<vmem>>, vector<384x64xf32>
    tpu.vector_store %arg7[%c0_15, %c0_16], %12 {strides = array<i32>} : memref<384x64xf32, #tpu.memory_space<vmem>>, vector<384x64xf32>,
    %c0_17 = arith.constant 0 : index
    %c0_18 = arith.constant 0 : index
    %14 = vector.load %arg7[%c0_17, %c0_18] : memref<384x64xf32, #tpu.memory_space<vmem>>, vector<384x64xf32>
    %c0_19 = arith.constant 0 : index
    %c2 = arith.constant 2 : index
    %c0_20 = arith.constant 0 : index
    %15 = vector.load %arg2[%c0_19, %c2, %c0_20] : memref<1x456x64xbf16, #tpu.memory_space<vmem>>, vector<1x384x64xbf16>
    %16 = vector.shape_cast %15 : vector<1x384x64xbf16> to vector<384x64xbf16>
    %c2_21 = arith.constant 2 : index
    %c0_22 = arith.constant 0 : index
    %c0_23 = arith.constant 0 : index
    %17 = vector.load %arg3[%c2_21, %c0_22, %c0_23] : memref<9x64x64xbf16, #tpu.memory_space<vmem>>, vector<1x64x64xbf16>
    %18 = vector.shape_cast %17 : vector<1x64x64xbf16> to vector<64x64xbf16>
    %cst_24 = arith.constant dense<0.000000e+00> : vector<384x64xf32>
    %19 = tpu.matmul %16, %18, %cst_24 {dimension_numbers = #tpu.dot_dimension_numbers<[1], [0], [0], [1], [0, 0, 1, 1], [], []>} : vector<384x64xbf16>, vector<64x64xbf16>, vector<384x64xf32> -> vector<384x64xf32>
    %20 = arith.addf %14, %19 : vector<384x64xf32>
    %c0_25 = arith.constant 0 : index
    %c0_26 = arith.constant 0 : index
    %21 = vector.load %arg7[%c0_25, %c0_26] : memref<384x64xf32, #tpu.memory_space<vmem>>, vector<384x64xf32>
    tpu.vector_store %arg7[%c0_25, %c0_26], %20 {strides = array<i32>} : memref<384x64xf32, #tpu.memory_space<vmem>>, vector<384x64xf32>,
    %c0_27 = arith.constant 0 : index
    %c0_28 = arith.constant 0 : index
    %22 = vector.load %arg7[%c0_27, %c0_28] : memref<384x64xf32, #tpu.memory_space<vmem>>, vector<384x64xf32>
    %c0_29 = arith.constant 0 : index
    %c24 = arith.constant 24 : index
    %c0_30 = arith.constant 0 : index
    %23 = vector.load %arg2[%c0_29, %c24, %c0_30] : memref<1x456x64xbf16, #tpu.memory_space<vmem>>, vector<1x384x64xbf16>
    %24 = vector.shape_cast %23 : vector<1x384x64xbf16> to vector<384x64xbf16>
    %c3 = arith.constant 3 : index
    %c0_31 = arith.constant 0 : index
    %c0_32 = arith.constant 0 : index
    %25 = vector.load %arg3[%c3, %c0_31, %c0_32] : memref<9x64x64xbf16, #tpu.memory_space<vmem>>, vector<1x64x64xbf16>
    %26 = vector.shape_cast %25 : vector<1x64x64xbf16> to vector<64x64xbf16>
    %cst_33 = arith.constant dense<0.000000e+00> : vector<384x64xf32>
    %27 = tpu.matmul %24, %26, %cst_33 {dimension_numbers = #tpu.dot_dimension_numbers<[1], [0], [0], [1], [0, 0, 1, 1], [], []>} : vector<384x64xbf16>, vector<64x64xbf16>, vector<384x64xf32> -> vector<384x64xf32>
    %28 = arith.addf %22, %27 : vector<384x64xf32>
    %c0_34 = arith.constant 0 : index
    %c0_35 = arith.constant 0 : index
    %29 = vector.load %arg7[%c0_34, %c0_35] : memref<384x64xf32, #tpu.memory_space<vmem>>, vector<384x64xf32>
    tpu.vector_store %arg7[%c0_34, %c0_35], %28 {strides = array<i32>} : memref<384x64xf32, #tpu.memory_space<vmem>>, vector<384x64xf32>,
    %c0_36 = arith.constant 0 : index
    %c0_37 = arith.constant 0 : index
    %30 = vector.load %arg7[%c0_36, %c0_37] : memref<384x64xf32, #tpu.memory_space<vmem>>, vector<384x64xf32>
    %c0_38 = arith.constant 0 : index
    %c25 = arith.constant 25 : index
    %c0_39 = arith.constant 0 : index
    %31 = vector.load %arg2[%c0_38, %c25, %c0_39] : memref<1x456x64xbf16, #tpu.memory_space<vmem>>, vector<1x384x64xbf16>
    %32 = vector.shape_cast %31 : vector<1x384x64xbf16> to vector<384x64xbf16>
    %c4 = arith.constant 4 : index
    %c0_40 = arith.constant 0 : index
    %c0_41 = arith.constant 0 : index
    %33 = vector.load %arg3[%c4, %c0_40, %c0_41] : memref<9x64x64xbf16, #tpu.memory_space<vmem>>, vector<1x64x64xbf16>
    %34 = vector.shape_cast %33 : vector<1x64x64xbf16> to vector<64x64xbf16>
    %cst_42 = arith.constant dense<0.000000e+00> : vector<384x64xf32>
    %35 = tpu.matmul %32, %34, %cst_42 {dimension_numbers = #tpu.dot_dimension_numbers<[1], [0], [0], [1], [0, 0, 1, 1], [], []>} : vector<384x64xbf16>, vector<64x64xbf16>, vector<384x64xf32> -> vector<384x64xf32>
    %36 = arith.addf %30, %35 : vector<384x64xf32>
    %c0_43 = arith.constant 0 : index
    %c0_44 = arith.constant 0 : index
    %37 = vector.load %arg7[%c0_43, %c0_44] : memref<384x64xf32, #tpu.memory_space<vmem>>, vector<384x64xf32>
    tpu.vector_store %arg7[%c0_43, %c0_44], %36 {strides = array<i32>} : memref<384x64xf32, #tpu.memory_space<vmem>>, vector<384x64xf32>,
    %c0_45 = arith.constant 0 : index
    %c0_46 = arith.constant 0 : index
    %38 = vector.load %arg7[%c0_45, %c0_46] : memref<384x64xf32, #tpu.memory_space<vmem>>, vector<384x64xf32>
    %c0_47 = arith.constant 0 : index
    %c26 = arith.constant 26 : index
    %c0_48 = arith.constant 0 : index
    %39 = vector.load %arg2[%c0_47, %c26, %c0_48] : memref<1x456x64xbf16, #tpu.memory_space<vmem>>, vector<1x384x64xbf16>
    %40 = vector.shape_cast %39 : vector<1x384x64xbf16> to vector<384x64xbf16>
    %c5 = arith.constant 5 : index
    %c0_49 = arith.constant 0 : index
    %c0_50 = arith.constant 0 : index
    %41 = vector.load %arg3[%c5, %c0_49, %c0_50] : memref<9x64x64xbf16, #tpu.memory_space<vmem>>, vector<1x64x64xbf16>
    %42 = vector.shape_cast %41 : vector<1x64x64xbf16> to vector<64x64xbf16>
    %cst_51 = arith.constant dense<0.000000e+00> : vector<384x64xf32>
    %43 = tpu.matmul %40, %42, %cst_51 {dimension_numbers = #tpu.dot_dimension_numbers<[1], [0], [0], [1], [0, 0, 1, 1], [], []>} : vector<384x64xbf16>, vector<64x64xbf16>, vector<384x64xf32> -> vector<384x64xf32>
    %44 = arith.addf %38, %43 : vector<384x64xf32>
    %c0_52 = arith.constant 0 : index
    %c0_53 = arith.constant 0 : index
    %45 = vector.load %arg7[%c0_52, %c0_53] : memref<384x64xf32, #tpu.memory_space<vmem>>, vector<384x64xf32>
    tpu.vector_store %arg7[%c0_52, %c0_53], %44 {strides = array<i32>} : memref<384x64xf32, #tpu.memory_space<vmem>>, vector<384x64xf32>,
    %c0_54 = arith.constant 0 : index
    %c0_55 = arith.constant 0 : index
    %46 = vector.load %arg7[%c0_54, %c0_55] : memref<384x64xf32, #tpu.memory_space<vmem>>, vector<384x64xf32>
    %c0_56 = arith.constant 0 : index
    %c48 = arith.constant 48 : index
    %c0_57 = arith.constant 0 : index
    %47 = vector.load %arg2[%c0_56, %c48, %c0_57] : memref<1x456x64xbf16, #tpu.memory_space<vmem>>, vector<1x384x64xbf16>
    %48 = vector.shape_cast %47 : vector<1x384x64xbf16> to vector<384x64xbf16>
    %c6 = arith.constant 6 : index
    %c0_58 = arith.constant 0 : index
    %c0_59 = arith.constant 0 : index
    %49 = vector.load %arg3[%c6, %c0_58, %c0_59] : memref<9x64x64xbf16, #tpu.memory_space<vmem>>, vector<1x64x64xbf16>
    %50 = vector.shape_cast %49 : vector<1x64x64xbf16> to vector<64x64xbf16>
    %cst_60 = arith.constant dense<0.000000e+00> : vector<384x64xf32>
    %51 = tpu.matmul %48, %50, %cst_60 {dimension_numbers = #tpu.dot_dimension_numbers<[1], [0], [0], [1], [0, 0, 1, 1], [], []>} : vector<384x64xbf16>, vector<64x64xbf16>, vector<384x64xf32> -> vector<384x64xf32>
    %52 = arith.addf %46, %51 : vector<384x64xf32>
    %c0_61 = arith.constant 0 : index
    %c0_62 = arith.constant 0 : index
    %53 = vector.load %arg7[%c0_61, %c0_62] : memref<384x64xf32, #tpu.memory_space<vmem>>, vector<384x64xf32>
    tpu.vector_store %arg7[%c0_61, %c0_62], %52 {strides = array<i32>} : memref<384x64xf32, #tpu.memory_space<vmem>>, vector<384x64xf32>,
    %c0_63 = arith.constant 0 : index
    %c0_64 = arith.constant 0 : index
    %54 = vector.load %arg7[%c0_63, %c0_64] : memref<384x64xf32, #tpu.memory_space<vmem>>, vector<384x64xf32>
    %c0_65 = arith.constant 0 : index
    %c49 = arith.constant 49 : index
    %c0_66 = arith.constant 0 : index
    %55 = vector.load %arg2[%c0_65, %c49, %c0_66] : memref<1x456x64xbf16, #tpu.memory_space<vmem>>, vector<1x384x64xbf16>
    %56 = vector.shape_cast %55 : vector<1x384x64xbf16> to vector<384x64xbf16>
    %c7 = arith.constant 7 : index
    %c0_67 = arith.constant 0 : index
    %c0_68 = arith.constant 0 : index
    %57 = vector.load %arg3[%c7, %c0_67, %c0_68] : memref<9x64x64xbf16, #tpu.memory_space<vmem>>, vector<1x64x64xbf16>
    %58 = vector.shape_cast %57 : vector<1x64x64xbf16> to vector<64x64xbf16>
    %cst_69 = arith.constant dense<0.000000e+00> : vector<384x64xf32>
    %59 = tpu.matmul %56, %58, %cst_69 {dimension_numbers = #tpu.dot_dimension_numbers<[1], [0], [0], [1], [0, 0, 1, 1], [], []>} : vector<384x64xbf16>, vector<64x64xbf16>, vector<384x64xf32> -> vector<384x64xf32>
    %60 = arith.addf %54, %59 : vector<384x64xf32>
    %c0_70 = arith.constant 0 : index
    %c0_71 = arith.constant 0 : index
    %61 = vector.load %arg7[%c0_70, %c0_71] : memref<384x64xf32, #tpu.memory_space<vmem>>, vector<384x64xf32>
    tpu.vector_store %arg7[%c0_70, %c0_71], %60 {strides = array<i32>} : memref<384x64xf32, #tpu.memory_space<vmem>>, vector<384x64xf32>,
    %c0_72 = arith.constant 0 : index
    %c0_73 = arith.constant 0 : index
    %62 = vector.load %arg7[%c0_72, %c0_73] : memref<384x64xf32, #tpu.memory_space<vmem>>, vector<384x64xf32>
    %c0_74 = arith.constant 0 : index
    %c50 = arith.constant 50 : index
    %c0_75 = arith.constant 0 : index
    %63 = vector.load %arg2[%c0_74, %c50, %c0_75] : memref<1x456x64xbf16, #tpu.memory_space<vmem>>, vector<1x384x64xbf16>
    %64 = vector.shape_cast %63 : vector<1x384x64xbf16> to vector<384x64xbf16>
    %c8 = arith.constant 8 : index
    %c0_76 = arith.constant 0 : index
    %c0_77 = arith.constant 0 : index
    %65 = vector.load %arg3[%c8, %c0_76, %c0_77] : memref<9x64x64xbf16, #tpu.memory_space<vmem>>, vector<1x64x64xbf16>
    %66 = vector.shape_cast %65 : vector<1x64x64xbf16> to vector<64x64xbf16>
    %cst_78 = arith.constant dense<0.000000e+00> : vector<384x64xf32>
    %67 = tpu.matmul %64, %66, %cst_78 {dimension_numbers = #tpu.dot_dimension_numbers<[1], [0], [0], [1], [0, 0, 1, 1], [], []>} : vector<384x64xbf16>, vector<64x64xbf16>, vector<384x64xf32> -> vector<384x64xf32>
    %68 = arith.addf %62, %67 : vector<384x64xf32>
    %c0_79 = arith.constant 0 : index
    %c0_80 = arith.constant 0 : index
    %69 = vector.load %arg7[%c0_79, %c0_80] : memref<384x64xf32, #tpu.memory_space<vmem>>, vector<384x64xf32>
    tpu.vector_store %arg7[%c0_79, %c0_80], %68 {strides = array<i32>} : memref<384x64xf32, #tpu.memory_space<vmem>>, vector<384x64xf32>,
    %c0_81 = arith.constant 0 : index
    %c0_82 = arith.constant 0 : index
    %70 = vector.load %arg7[%c0_81, %c0_82] : memref<384x64xf32, #tpu.memory_space<vmem>>, vector<384x64xf32>
    %71 = vector.shape_cast %70 : vector<384x64xf32> to vector<16x24x64xf32>
    %72 = vector.extract_strided_slice %71 {offsets = [0, 0, 0], sizes = [16, 16, 64], strides = [1, 1, 1]} : vector<16x24x64xf32> to vector<16x16x64xf32>
    %c0_83 = arith.constant 0 : index
    %c0_84 = arith.constant 0 : index
    %73 = vector.load %arg4[%c0_83, %c0_84] : memref<1x64xf32, #tpu.memory_space<vmem>>, vector<1x64xf32>
    %74 = vector.shape_cast %73 : vector<1x64xf32> to vector<1x1x64xf32>
    %75 = vector.broadcast %74 : vector<1x1x64xf32> to vector<16x16x64xf32>
    %76 = arith.addf %72, %75 : vector<16x16x64xf32>
    %cst_85 = arith.constant 0.000000e+00 : f32
    %77 = vector.broadcast %cst_85 : f32 to vector<16x16x64xf32>
    %78 = arith.maximumf %76, %77 : vector<16x16x64xf32>
    %79 = arith.truncf %78 : vector<16x16x64xf32> to vector<16x16x64xbf16>
    %c0_86 = arith.constant 0 : index
    %c0_87 = arith.constant 0 : index
    %c0_88 = arith.constant 0 : index
    %c0_89 = arith.constant 0 : index
    %80 = vector.load %arg5[%c0_86, %c0_87, %c0_88, %c0_89] : memref<1x16x16x64xbf16, #tpu.memory_space<vmem>>, vector<1x16x16x64xbf16>
    %81 = vector.shape_cast %80 : vector<1x16x16x64xbf16> to vector<16x16x64xbf16>
    %82 = vector.shape_cast %79 : vector<16x16x64xbf16> to vector<1x16x16x64xbf16>
    tpu.vector_store %arg5[%c0_86, %c0_87, %c0_88, %c0_89], %82 {strides = array<i32>} : memref<1x16x16x64xbf16, #tpu.memory_space<vmem>>, vector<1x16x16x64xbf16>,
    %cst_90 = arith.constant dense<0.000000e+00> : vector<16x16xf32>
    %83 = vector.multi_reduction <add>, %78, %cst_90 [2] : vector<16x16x64xf32> to vector<16x16xf32>
    %c0_91 = arith.constant 0 : index
    %c0_92 = arith.constant 0 : index
    %c0_93 = arith.constant 0 : index
    %84 = vector.load %arg6[%c0_91, %c0_92, %c0_93] : memref<1x16x16xf32, #tpu.memory_space<vmem>>, vector<1x16x16xf32>
    %85 = vector.shape_cast %84 : vector<1x16x16xf32> to vector<16x16xf32>
    %86 = vector.shape_cast %83 : vector<16x16xf32> to vector<1x16x16xf32>
    tpu.vector_store %arg6[%c0_91, %c0_92, %c0_93], %86 {strides = array<i32>} : memref<1x16x16xf32, #tpu.memory_space<vmem>>, vector<1x16x16xf32>,
    return
  }
  func.func @transform_0(%arg0: i32, %arg1: i32) -> (i32, i32, i32) {
    %c0_i32 = arith.constant 0 : i32
    %c0_i32_0 = arith.constant 0 : i32
    %c0_i32_1 = arith.constant 0 : i32
    return %arg0, %c0_i32, %c0_i32_0 : i32, i32, i32
  }
  func.func @transform_1(%arg0: i32, %arg1: i32) -> (i32, i32, i32) {
    %c0_i32 = arith.constant 0 : i32
    %c0_i32_0 = arith.constant 0 : i32
    %c0_i32_1 = arith.constant 0 : i32
    %c0_i32_2 = arith.constant 0 : i32
    return %c0_i32, %c0_i32_0, %c0_i32_1 : i32, i32, i32
  }
  func.func @transform_2(%arg0: i32, %arg1: i32) -> (i32, i32) {
    %c0_i32 = arith.constant 0 : i32
    %c0_i32_0 = arith.constant 0 : i32
    %c0_i32_1 = arith.constant 0 : i32
    return %c0_i32, %c0_i32_0 : i32, i32
  }
  func.func @transform_3(%arg0: i32, %arg1: i32) -> (i32, i32, i32, i32) {
    %c0_i32 = arith.constant 0 : i32
    %c0_i32_0 = arith.constant 0 : i32
    %c0_i32_1 = arith.constant 0 : i32
    return %arg0, %arg1, %c0_i32, %c0_i32_0 : i32, i32, i32, i32
  }
  func.func @transform_4(%arg0: i32, %arg1: i32) -> (i32, i32, i32) {
    %c0_i32 = arith.constant 0 : i32
    %c0_i32_0 = arith.constant 0 : i32
    return %arg0, %arg1, %c0_i32 : i32, i32, i32
  }
}

</mosaic_0001>

<bundles_post_ra>
// kernel: tpu_custom_call.1
= control target key start
LH: loop header
LB: loop body
LE: loop exit
PB: predicated region body
PF: predicated region fallthrough
CT: control target
= control target key end

     0   :  { %10 = vsyncpa [#allocation4], 0  ;;  %s10255_s0 = inlined_call_operand.vmem [shape: bf16[1,456,64], index: 0, kind: input, shape index: {}]   ;;  %s10256_s1 = inlined_call_operand.vmem [shape: bf16[9,64,64], index: 1, kind: input, shape index: {}]   ;;  %s10257_s2 = inlined_call_operand.vmem [shape: f32[1,64], index: 2, kind: input, shape index: {}]   ;;  %s10258_s3 = inlined_call_operand.hbm [shape: bf16[1,16,16,64], index: 3, kind: output, shape index: {0}]   ;;  %s10259_s4 = inlined_call_operand.hbm [shape: f32[1,16,16], index: 4, kind: output, shape index: {1}]  }
   0x1   :  { %v7320_v0 = vld [vmem:[%s10256_s1 + $0x18] sm:$0xff]  ;;  %v7319_v1 = vld [vmem:[%s10256_s1 + $0x10] sm:$0xff]  ;;  %v7318_v2 = vld [vmem:[%s10256_s1 + $0x8] sm:$0xff] }
   0x2   :  { %7545 = vmatpush.bf16.msra.mxu1 %v7320_v0  ;;  %7546 = vmatpush.bf16.msra.mxu2 %v7320_v0 }
   0x3   :  { %7547 = vmatpush.bf16.msra.mxu3 %v7320_v0  ;;  %296 = vmatpush.bf16.msra.mxu0 %v7320_v0 }
   0x6   :  { %7548 = vmatpush.bf16.msra.mxu1 %v7319_v1  ;;  %7549 = vmatpush.bf16.msra.mxu2 %v7319_v1 }
   0x7   :  { %11 = vsyncpa [#allocation6], 0  ;;  %7550 = vmatpush.bf16.msra.mxu3 %v7319_v1  ;;  %297 = vmatpush.bf16.msra.mxu0 %v7319_v1  ;;  %v7317_v3 = vld [vmem:[%s10256_s1] sm:$0xff]  ;;  %v7348_v4 = vld [vmem:[%s10256_s1 + $0x38] sm:$0xff]  ;;  %vm219_vm0 = vcmask 523264   ;;  %vm1445_vm2 = vcmask 1046528  }
   0x8   :  { %v7376_v5 = vld [vmem:[%s10256_s1 + $0x58] sm:$0xff]  ;;  %v7299_v7 = vld [vmem:[%s10255_s0 + $0x30] sm:$0xff]  ;;  %v7305_v8 = vld [vmem:[%s10255_s0 + $0x60] sm:$0xff]  ;;  %vm698_vm1 = vsmask.f32 7424  ;;  %vm5730_vm3 = vcmask 519168  }
   0x9   :  { %v7404_v6 = vld [vmem:[%s10256_s1 + $0x78] sm:$0xff]  ;;  %v7311_v9 = vld [vmem:[%s10255_s0 + $0x90] sm:$0xff]  ;;  %v7293_v13 = vld [vmem:[%s10255_s0] sm:$0xff]  ;;  %s5975_s15 = sshll.u32 %s10258_s3, 4  ;;  %s7619_s16 = smov 64   ;;  %vm5896_vm4 = vcmask 130112   ;;  %s5976_s15 = int_to_ptr.hbm [resolvable:$true] %s5975_s15 }
   0xa   :  { %7551 = vmatpush.bf16.msra.mxu1 %v7318_v2  ;;  %7552 = vmatpush.bf16.msra.mxu2 %v7318_v2  ;;  %v7347_v10 = vld [vmem:[%s10256_s1 + $0x30] sm:$0xff]  ;;  %v7432_v11 = vld [vmem:[%s10256_s1 + $0x98] sm:$0xff]  ;;  %v7306_v16 = vld [vmem:[%s10255_s0 + $0x68] sm:$0xff]  ;;  %s7620_s17 = smov 4   ;;  %vm5943_vm5 = vcmask 1041409   ;;  %vm5945_vm6 = vcmask 1042434  }
   0xb   :  { %7553 = vmatpush.bf16.msra.mxu3 %v7318_v2  ;;  %298 = vmatpush.bf16.msra.mxu0 %v7318_v2  ;;  %v7375_v12 = vld [vmem:[%s10256_s1 + $0x50] sm:$0xff]  ;;  %v7300_v15 = vld [vmem:[%s10255_s0 + $0x38] sm:$0xff]  ;;  %v7294_v18 = vld [vmem:[%s10255_s0 + $0x8] sm:$0xff]  ;;  %vm5947_vm7 = vcmask 1043459   ;;  %vm5949_vm8 = vcmask 1044484   ;;  %vm5951_vm9 = vcmask 1045509  }
   0xc   :  { %v7403_v14 = vld [vmem:[%s10256_s1 + $0x70] sm:$0xff]  ;;  %v7312_v17 = vld [vmem:[%s10255_s0 + $0x98] sm:$0xff]  ;;  %v7346_v19 = vld [vmem:[%s10256_s1 + $0x28] sm:$0xff]  ;;  %vm5953_vm10 = vcmask 1046534   ;;  %vm5955_vm11 = vcmask 1047559   ;;  %vm5966_vm12 = vcmask 130048  }
   0xd   :  { %v7374_v20 = vld [vmem:[%s10256_s1 + $0x48] sm:$0xff]  ;;  %v7431_v21 = vld [vmem:[%s10256_s1 + $0x90] sm:$0xff]  ;;  %v7301_v23 = vld [vmem:[%s10255_s0 + $0x40] sm:$0xff]  ;;  %s7621_s3 = smov [#allocation5]   ;;  %s5988_s21 = sshll.u32 %s10259_s4, 4  ;;  %s5989_s21 = int_to_ptr.hbm [resolvable:$true] %s5988_s21 }
   0xe   :  { %7554 = vmatpush.bf16.msra.mxu1 %v7317_v3  ;;  %7555 = vmatpush.bf16.msra.mxu2 %v7317_v3  ;;  %v7402_v22 = vld [vmem:[%s10256_s1 + $0x68] sm:$0xff]  ;;  %v7307_v24 = vld [vmem:[%s10255_s0 + $0x70] sm:$0xff]  ;;  %v7313_v25 = vld [vmem:[%s10255_s0 + $0xa0] sm:$0xff]  ;;  %s5986_s18 = sshll.u32 %s7621_s3, 4  ;;  %s7622_s4 = smov 128   ;;  %s5987_s18 = int_to_ptr.vmem [resolvable:$true] %s5986_s18 }
   0xf   :  { %7556 = vmatpush.bf16.msra.mxu3 %v7317_v3  ;;  %299 = vmatpush.bf16.msra.mxu0 %v7317_v3  ;;  %v7295_v26 = vld [vmem:[%s10255_s0 + $0x10] sm:$0xff]  ;;  %v7345_v27 = vld [vmem:[%s10256_s1 + $0x20] sm:$0xff]  ;;  %v7430_v29 = vld [vmem:[%s10256_s1 + $0x88] sm:$0xff]  ;;  %s7623_s22 = smov 8  }
  0x10   :  { %v7373_v28 = vld [vmem:[%s10256_s1 + $0x40] sm:$0xff]  ;;  %v7302_v30 = vld [vmem:[%s10255_s0 + $0x48] sm:$0xff]  ;;  %v7308_v31 = vld [vmem:[%s10255_s0 + $0x78] sm:$0xff] }
  0x11   :  { %6123 = vmatmul.msk.bf16.vlgmr.msra.gmra.mxu1 %vm219_vm0, %v7299_v7  ;;  %6129 = vmatmul.msk.bf16.vlgmr.msra.gmra.mxu2 %vm219_vm0, %v7305_v8  ;;  %v7314_v32 = vld [vmem:[%s10255_s0 + $0xa8] sm:$0xff]  ;;  %v7296_v33 = vld [vmem:[%s10255_s0 + $0x18] sm:$0xff]  ;;  %v7401_v34 = vld [vmem:[%s10256_s1 + $0x60] sm:$0xff] }
  0x12   :  { %995 = vmatpush.bf16.msrb.mxu1 %v7348_v4  ;;  %1595 = vmatpush.bf16.msrb.mxu2 %v7376_v5  ;;  %v7303_v35 = vld [vmem:[%s10255_s0 + $0x50] sm:$0xff]  ;;  %v7309_v36 = vld [vmem:[%s10255_s0 + $0x80] sm:$0xff]  ;;  %v7460_v39 = vld [vmem:[%s10256_s1 + $0xb8] sm:$0xff] }
  0x13   :  { %2141 = vmatpush.bf16.msrb.mxu3 %v7404_v6  ;;  %2887 = vmatpush.bf16.msrb.mxu0 %v7432_v11  ;;  %v7315_v37 = vld [vmem:[%s10255_s0 + $0xb0] sm:$0xff]  ;;  %v7297_v38 = vld [vmem:[%s10255_s0 + $0x20] sm:$0xff]  ;;  %v7488_v40 = vld [vmem:[%s10256_s1 + $0xd8] sm:$0xff] }
  0x14   :  { %6135 = vmatmul.msk.bf16.vlgmr.msra.gmra.mxu3 %vm219_vm0, %v7311_v9  ;;  %6117 = vmatmul.msk.bf16.vlgmr.msra.gmra.mxu0 %vm219_vm0, %v7293_v13  ;;  %v7429_v41 = vld [vmem:[%s10256_s1 + $0x80] sm:$0xff]  ;;  %v7516_v42 = vld [vmem:[%s10256_s1 + $0xf8] sm:$0xff]  ;;  %v7310_v44 = vld [vmem:[%s10255_s0 + $0x88] sm:$0xff] }
  0x15   :  { %v7304_v43 = vld [vmem:[%s10255_s0 + $0x58] sm:$0xff]  ;;  %v7321_v45 = vld [vmem:[%s10255_s0] sm:$0xff]  ;;  %v7322_v47 = vld [vmem:[%s10255_s0 + $0x8] sm:$0xff] }
  0x16   :  { %996 = vmatpush.bf16.msrb.mxu1 %v7347_v10  ;;  %1596 = vmatpush.bf16.msrb.mxu2 %v7375_v12  ;;  %v7316_v46 = vld [vmem:[%s10255_s0 + $0xb8] sm:$0xff]  ;;  %v702_v48 = vshll.u32 %v7321_v45, 16  ;;  %v7298_v49 = vld [vmem:[%s10255_s0 + $0x28] sm:$0xff]  ;;  %v6295_v50 = vld [vmem:[%s10255_s0] sm:$0xe]  ;;  %v700_v53 = vshrl.u32 %v7321_v45, 16 }
  0x17   :  { %2142 = vmatpush.bf16.msrb.mxu3 %v7403_v14  ;;  %2888 = vmatpush.bf16.msrb.mxu0 %v7431_v21  ;;  %v7349_v51 = vld [vmem:[%s10255_s0] sm:$0xf0]  ;;  %v7405_v52 = vld [vmem:[%s10255_s0 + $0xc] sm:$0xff]  ;;  %v707_v55 = vshll.u32 %v7322_v47, 16  ;;  %v7406_v58 = vld [vmem:[%s10255_s0 + $0x14] sm:$0xff]  ;;  %v711_v11 = vshrl.u32 %v7322_v47, 16 }
  0x18   :  { %v704_v54 = vrot.slane %v702_v48, 1  ;;  %v6296_v56 = vor.u32 %v7349_v51, %v6295_v50  ;;  %v7350_v57 = vld [vmem:[%s10255_s0 + $0x8] sm:$0xff]  ;;  %v2594_v59 = vshll.u32 %v7405_v52, 16  ;;  %v2592_v0 = vshrl.u32 %v7405_v52, 16  ;;  %v7544_v8 = vld [vmem:[%s10256_s1 + $0x118] sm:$0xff]  ;;  %v7323_v9 = vld [vmem:[%s10255_s0 + $0x10] sm:$0xff] }
  0x19   :  { %v709_v61 = vrot.slane %v707_v55, 1  ;;  %v1447_v63 = vrot.slane %v7350_v57, 1  ;;  %v2599_v2 = vshll.u32 %v7406_v58, 16  ;;  %v7377_v5 = vld [vmem:[%s10255_s0 + $0xc] sm:$0xff]  ;;  %v715_v12 = vshll.u32 %v7323_v9, 16  ;;  %v7407_v14 = vld [vmem:[%s10255_s0 + $0x1c] sm:$0xff] }
  0x1a   :  { %997 = vmatpush.bf16.msrb.mxu1 %v7346_v19  ;;  %1597 = vmatpush.bf16.msrb.mxu2 %v7374_v20  ;;  %v705_v60 = vor.u32 %v704_v54, %v700_v53  ;;  %v1446_v62 = vrot.slane %v6296_v56, 1  ;;  %v2596_v1 = vrot.slane %v2594_v59, 1  ;;  %v7351_v13 = vld [vmem:[%s10255_s0 + $0x10] sm:$0xff]  ;;  %v2607_v19 = vshll.u32 %v7407_v14, 16  ;;  %v7353_v50 = vld [vmem:[%s10255_s0 + $0x20] sm:$0xff] }
  0x1b   :  { %2143 = vmatpush.bf16.msrb.mxu3 %v7402_v22  ;;  %2889 = vmatpush.bf16.msrb.mxu0 %v7430_v29  ;;  %v2601_v7 = vrot.slane %v2599_v2, 1  ;;  %v7378_v22 = vld [vmem:[%s10255_s0 + $0x14] sm:$0xff]  ;;  %v7409_v51 = vld [vmem:[%s10255_s0 + $0x2c] sm:$0xff]  ;;  %v1453_v54 = vrot.slane %v7353_v50, 1 }
  0x1c   :  { %v710_v3 = vsel %vm698_vm1, %v705_v60, %v709_v61  ;;  %v1448_v4 = vsel %vm1445_vm2, %v1446_v62, %v1447_v63  ;;  %v2597_v6 = vor.u32 %v2596_v1, %v2592_v0  ;;  %v7352_v29 = vld [vmem:[%s10255_s0 + $0x18] sm:$0xff]  ;;  %v2623_v57 = vshll.u32 %v7409_v51, 16  ;;  %v7326_v2 = vld [vmem:[%s10255_s0 + $0x28] sm:$0xff] }
  0x1e   :  { %998 = vmatpush.bf16.msrb.mxu1 %v7345_v27  ;;  %1598 = vmatpush.bf16.msrb.mxu2 %v7373_v28  ;;  %v2602_v10 = vsel %vm698_vm1, %v2597_v6, %v2601_v7  ;;  %v719_v27 = vshrl.u32 %v7323_v9, 16  ;;  %v2625_v1 = vrot.slane %v2623_v57, 1  ;;  %v739_v9 = vshll.u32 %v7326_v2, 16 }
  0x1f   :  { %2144 = vmatpush.bf16.msrb.mxu3 %v7401_v34  ;;  %2890 = vmatpush.bf16.msrb.mxu0 %v7429_v41  ;;  %v2611_v34 = vshrl.u32 %v7407_v14, 16 }
  0x21   :  { %6124 = vmatmul.msk.bf16.gmra.mxu1 %vm219_vm0, %v7300_v15  ;;  %6130 = vmatmul.msk.bf16.gmra.mxu2 %vm219_vm0, %v7306_v16  ;;  %v713_v15 = vor.u32 %v711_v11, %v709_v61  ;;  %v717_v16 = vrot.slane %v715_v12, 1  ;;  %v7410_v11 = vld [vmem:[%s10255_s0 + $0x34] sm:$0xff] }
  0x22   :  { %3486 = vmatpush.bf16.msra.mxu1 %v7460_v39  ;;  %4032 = vmatpush.bf16.msra.mxu2 %v7488_v40  ;;  %v7379_v39 = vld [vmem:[%s10255_s0 + $0x1c] sm:$0xff] }
  0x23   :  { %4778 = vmatpush.bf16.msra.mxu3 %v7516_v42  ;;  %5377 = vmatpush.bf16.msra.mxu0 %v7544_v8  ;;  %v718_v20 = vsel %vm698_vm1, %v713_v15, %v717_v16  ;;  %v7325_v42 = vld [vmem:[%s10255_s0 + $0x20] sm:$0xff] }
  0x24   :  { %6136 = vmatmul.msk.bf16.gmra.mxu3 %vm219_vm0, %v7312_v17  ;;  %6118 = vmatmul.msk.bf16.gmra.mxu0 %vm219_vm0, %v7294_v18  ;;  %v1449_v17 = vrot.slane %v7351_v13, 1  ;;  %v2603_v18 = vshrl.u32 %v7406_v58, 16  ;;  %v741_v13 = vrot.slane %v739_v9, 1 }
  0x26   :  { %v1450_v21 = vsel %vm1445_vm2, %v1447_v63, %v1449_v17  ;;  %v7380_v63 = vld [vmem:[%s10255_s0 + $0x24] sm:$0xff] }
  0x31   :  { %6125 = vmatmul.msk.bf16.gmra.mxu1 %vm219_vm0, %v7301_v23  ;;  %6131 = vmatmul.msk.bf16.gmra.mxu2 %vm219_vm0, %v7307_v24  ;;  %v2605_v23 = vor.u32 %v2603_v18, %v2601_v7  ;;  %v2609_v24 = vrot.slane %v2607_v19, 1  ;;  %v735_v7 = vshrl.u32 %v7325_v42, 16 }
  0x33   :  { %v2613_v40 = vor.u32 %v2611_v34, %v2609_v24 }
  0x34   :  { %6137 = vmatmul.msk.bf16.gmra.mxu3 %vm219_vm0, %v7313_v25  ;;  %6119 = vmatmul.msk.bf16.gmra.mxu0 %vm219_vm0, %v7295_v26  ;;  %v7324_v25 = vld [vmem:[%s10255_s0 + $0x18] sm:$0xff]  ;;  %v2610_v26 = vsel %vm698_vm1, %v2605_v23, %v2609_v24  ;;  %v7381_v23 = vld [vmem:[%s10255_s0 + $0x2c] sm:$0xff] }
  0x35   :  { %v723_v28 = vshll.u32 %v7324_v25, 16  ;;  %v727_v47 = vshrl.u32 %v7324_v25, 16 }
  0x41   :  { %6126 = vmatmul.msk.bf16.gmra.mxu1 %vm219_vm0, %v7302_v30  ;;  %6132 = vmatmul.msk.bf16.gmra.mxu2 %vm219_vm0, %v7308_v31  ;;  %v7408_v30 = vld [vmem:[%s10255_s0 + $0x24] sm:$0xff]  ;;  %v721_v31 = vor.u32 %v719_v27, %v717_v16  ;;  %v2627_v16 = vshrl.u32 %v7409_v51, 16  ;;  %v7327_v27 = vld [vmem:[%s10255_s0 + $0x30] sm:$0xff] }
  0x42   :  { %v2619_v56 = vshrl.u32 %v7408_v30, 16 }
  0x43   :  { %v2629_v24 = vor.u32 %v2627_v16, %v2625_v1 }
  0x44   :  { %6138 = vmatmul.msk.bf16.gmra.mxu3 %vm219_vm0, %v7314_v32  ;;  %6120 = vmatmul.msk.bf16.gmra.mxu0 %vm219_vm0, %v7296_v33  ;;  %v725_v32 = vrot.slane %v723_v28, 1  ;;  %v1451_v33 = vrot.slane %v7352_v29, 1 }
  0x46   :  { %v729_v52 = vor.u32 %v727_v47, %v725_v32  ;;  %v1454_v62 = vsel %vm1445_vm2, %v1451_v33, %v1453_v54 }
  0x51   :  { %6127 = vmatmul.msk.bf16.gmra.mxu1 %vm219_vm0, %v7303_v35  ;;  %6133 = vmatmul.msk.bf16.gmra.mxu2 %vm219_vm0, %v7309_v36  ;;  %v2615_v35 = vshll.u32 %v7408_v30, 16 }
  0x53   :  { %v2617_v41 = vrot.slane %v2615_v35, 1  ;;  %v747_v35 = vshll.u32 %v7327_v27, 16 }
  0x54   :  { %6139 = vmatmul.msk.bf16.gmra.mxu3 %vm219_vm0, %v7315_v37  ;;  %6121 = vmatmul.msk.bf16.gmra.mxu0 %vm219_vm0, %v7297_v38  ;;  %v726_v37 = vsel %vm698_vm1, %v721_v31, %v725_v32  ;;  %v1452_v38 = vsel %vm1445_vm2, %v1449_v17, %v1451_v33  ;;  %v2631_v17 = vshll.u32 %v7410_v11, 16  ;;  %v743_v32 = vshrl.u32 %v7326_v2, 16  ;;  %v7487_v33 = vld [vmem:[%s10256_s1 + $0xd0] sm:$0xff] }
  0x55   :  { %v2621_v0 = vor.u32 %v2619_v56, %v2617_v41  ;;  %4033 = vmatpush.bf16.msra.mxu2 %v7487_v33 }
  0x56   :  { %v2633_v25 = vrot.slane %v2631_v17, 1 }
  0x58   :  { %v2634_v29 = vsel %vm698_vm1, %v2629_v24, %v2633_v25 }
  0x61   :  { %6128 = vmatmul.msk.bf16.gmra.mxu1 %vm219_vm0, %v7304_v43  ;;  %6134 = vmatmul.msk.bf16.gmra.mxu2 %vm219_vm0, %v7310_v44  ;;  %v2618_v44 = vsel %vm698_vm1, %v2613_v40, %v2617_v41 }
  0x64   :  { %6140 = vmatmul.msk.bf16.gmra.mxu3 %vm219_vm0, %v7316_v46  ;;  %6122 = vmatmul.msk.bf16.gmra.mxu0 %vm219_vm0, %v7298_v49  ;;  %v731_v49 = vshll.u32 %v7325_v42, 16  ;;  %v2635_v42 = vshrl.u32 %v7410_v11, 16 }
  0x66   :  { %v733_v53 = vrot.slane %v731_v49, 1  ;;  %v7382_v49 = vld [vmem:[%s10255_s0 + $0x34] sm:$0xff]  ;;  %v2637_v50 = vor.u32 %v2635_v42, %v2633_v25 }
  0x68   :  { %v734_v61 = vsel %vm698_vm1, %v729_v52, %v733_v53  ;;  %v737_v12 = vor.u32 %v735_v7, %v733_v53  ;;  %v7515_v52 = vld [vmem:[%s10256_s1 + $0xf0] sm:$0xff]  ;;  %v7328_v53 = vld [vmem:[%s10255_s0 + $0x38] sm:$0xff] }
  0x69   :  { %4779 = vmatpush.bf16.msra.mxu3 %v7515_v52 }
  0x71   :  { %6261 = vmatmul.msk.bf16.vlgmr.msrb.gmra.mxu1 %vm219_vm0, %v710_v3  ;;  %6405 = vmatmul.msk.bf16.vlgmr.msrb.gmra.mxu2 %vm219_vm0, %v1448_v4  ;;  %v2626_v4 = vsel %vm698_vm1, %v2621_v0, %v2625_v1 }
  0x74   :  { %6549 = vmatmul.msk.bf16.vlgmr.msrb.gmra.mxu3 %vm219_vm0, %v7377_v5  ;;  %6693 = vmatmul.msk.bf16.vlgmr.msrb.gmra.mxu0 %vm219_vm0, %v2602_v10  ;;  %v7354_v10 = vld [vmem:[%s10255_s0 + $0x28] sm:$0xff] }
  0x75   :  { %v1455_v14 = vrot.slane %v7354_v10, 1  ;;  %v7383_v10 = vld [vmem:[%s10255_s0 + $0x3c] sm:$0xff] }
  0x81   :  { %6262 = vmatmul.msk.bf16.gmra.mxu1 %vm219_vm0, %v718_v20  ;;  %6406 = vmatmul.msk.bf16.gmra.mxu2 %vm219_vm0, %v1450_v21  ;;  %v742_v21 = vsel %vm698_vm1, %v737_v12, %v741_v13 }
  0x84   :  { %6550 = vmatmul.msk.bf16.gmra.mxu3 %vm219_vm0, %v7378_v22  ;;  %6694 = vmatmul.msk.bf16.gmra.mxu0 %vm219_vm0, %v2610_v26  ;;  %v1456_v22 = vsel %vm1445_vm2, %v1453_v54, %v1455_v14  ;;  %v7459_v26 = vld [vmem:[%s10256_s1 + $0xb0] sm:$0xff] }
  0x85   :  { %3487 = vmatpush.bf16.msra.mxu1 %v7459_v26 }
  0x8e   :  { %v331_v36 = vpop.f32.mrf.mxu1 }
  0x8f   :  { %433 = vst.msk [vmem:[#allocation2 + $0x60] sm:$0xff] %vm219_vm0, %v331_v36  ;;  %v7355_v36 = vld [vmem:[%s10255_s0 + $0x30] sm:$0xff] }
  0x90   :  { %v1457_v40 = vrot.slane %v7355_v36, 1 }
  0x91   :  { %6263 = vmatmul.msk.bf16.gmra.mxu1 %vm219_vm0, %v726_v37  ;;  %6407 = vmatmul.msk.bf16.gmra.mxu2 %vm219_vm0, %v1452_v38  ;;  %v301_v43 = vpop.f32.mrf.mxu0  ;;  %v7411_v37 = vld [vmem:[%s10255_s0 + $0x3c] sm:$0xff]  ;;  %v745_v38 = vor.u32 %v743_v32, %v741_v13  ;;  %v7543_v13 = vld [vmem:[%s10256_s1 + $0x110] sm:$0xff] }
  0x92   :  { %421 = vst.msk [vmem:[#allocation2] sm:$0xff] %vm219_vm0, %v301_v43  ;;  %v2639_v43 = vshll.u32 %v7411_v37, 16  ;;  %5378 = vmatpush.bf16.msra.mxu0 %v7543_v13 }
  0x94   :  { %6551 = vmatmul.msk.bf16.gmra.mxu3 %vm219_vm0, %v7379_v39  ;;  %v361_v45 = vpop.f32.mrf.mxu2  ;;  %6695 = vmatmul.msk.bf16.gmra.mxu0 %vm219_vm0, %v2618_v44  ;;  %v749_v39 = vrot.slane %v747_v35, 1  ;;  %v2641_v51 = vrot.slane %v2639_v43, 1  ;;  %v7384_v35 = vld [vmem:[%s10255_s0 + $0x44] sm:$0xff] }
  0x95   :  { %445 = vst.msk [vmem:[#allocation2 + $0xc0] sm:$0xff] %vm219_vm0, %v361_v45 }
  0x96   :  { %v333_v48 = vpop.f32.mrf.mxu1  ;;  %v750_v47 = vsel %vm698_vm1, %v745_v38, %v749_v39  ;;  %v7330_v38 = vld [vmem:[%s10255_s0 + $0x48] sm:$0xff] }
  0x97   :  { %v391_v46 = vpop.f32.mrf.mxu3  ;;  %434 = vst.msk [vmem:[#allocation2 + $0x68] sm:$0xff] %vm219_vm0, %v333_v48  ;;  %v1458_v48 = vsel %vm1445_vm2, %v1455_v14, %v1457_v40  ;;  %v7329_v14 = vld [vmem:[%s10255_s0 + $0x40] sm:$0xff] }
  0x98   :  { %457 = vst.msk [vmem:[#allocation2 + $0x120] sm:$0xff] %vm219_vm0, %v391_v46  ;;  %v767_v43 = vshrl.u32 %v7329_v14, 16 }
  0x99   :  { %v303_v55 = vpop.f32.mrf.mxu0 }
  0x9a   :  { %422 = vst.msk [vmem:[#allocation2 + $0x8] sm:$0xff] %vm219_vm0, %v303_v55  ;;  %v2642_v55 = vsel %vm698_vm1, %v2637_v50, %v2641_v51 }
  0x9c   :  { %v363_v58 = vpop.f32.mrf.mxu2 }
  0x9d   :  { %446 = vst.msk [vmem:[#allocation2 + $0xc8] sm:$0xff] %vm219_vm0, %v363_v58  ;;  %v751_v58 = vshrl.u32 %v7327_v27, 16 }
  0x9e   :  { %v336_v60 = vpop.f32.mrf.mxu1 }
  0x9f   :  { %v393_v59 = vpop.f32.mrf.mxu3  ;;  %435 = vst.msk [vmem:[#allocation2 + $0x70] sm:$0xff] %vm219_vm0, %v336_v60  ;;  %v755_v60 = vshll.u32 %v7328_v53, 16 }
  0xa0   :  { %458 = vst.msk [vmem:[#allocation2 + $0x128] sm:$0xff] %vm219_vm0, %v393_v59 }
  0xa1   :  { %6264 = vmatmul.msk.bf16.gmra.mxu1 %vm219_vm0, %v734_v61  ;;  %6408 = vmatmul.msk.bf16.gmra.mxu2 %vm219_vm0, %v1454_v62  ;;  %v306_v3 = vpop.f32.mrf.mxu0  ;;  %v7356_v61 = vld [vmem:[%s10255_s0 + $0x38] sm:$0xff]  ;;  %v7412_v62 = vld [vmem:[%s10255_s0 + $0x44] sm:$0xff]  ;;  %v757_v0 = vrot.slane %v755_v60, 1  ;;  %v7385_v60 = vld [vmem:[%s10255_s0 + $0x4c] sm:$0xff] }
  0xa2   :  { %423 = vst.msk [vmem:[#allocation2 + $0x10] sm:$0xff] %vm219_vm0, %v306_v3  ;;  %v1459_v1 = vrot.slane %v7356_v61, 1  ;;  %v2643_v3 = vshrl.u32 %v7411_v37, 16 }
  0xa4   :  { %6552 = vmatmul.msk.bf16.gmra.mxu3 %vm219_vm0, %v7380_v63  ;;  %v366_v5 = vpop.f32.mrf.mxu2  ;;  %6696 = vmatmul.msk.bf16.gmra.mxu0 %vm219_vm0, %v2626_v4  ;;  %v753_v63 = vor.u32 %v751_v58, %v749_v39  ;;  %v2647_v4 = vshll.u32 %v7412_v62, 16  ;;  %v1460_v9 = vsel %vm1445_vm2, %v1457_v40, %v1459_v1  ;;  %v2645_v11 = vor.u32 %v2643_v3, %v2641_v51 }
  0xa5   :  { %447 = vst.msk [vmem:[#allocation2 + $0xd0] sm:$0xff] %vm219_vm0, %v366_v5 }
  0xa6   :  { %v338_v8 = vpop.f32.mrf.mxu1  ;;  %v2649_v12 = vrot.slane %v2647_v4, 1 }
  0xa7   :  { %v396_v6 = vpop.f32.mrf.mxu3  ;;  %436 = vst.msk [vmem:[#allocation2 + $0x78] sm:$0xff] %vm219_vm0, %v338_v8  ;;  %v758_v8 = vsel %vm698_vm1, %v753_v63, %v757_v0 }
  0xa8   :  { %459 = vst.msk [vmem:[#allocation2 + $0x130] sm:$0xff] %vm219_vm0, %v396_v6  ;;  %v2650_v16 = vsel %vm698_vm1, %v2645_v11, %v2649_v12 }
  0xa9   :  { %v308_v15 = vpop.f32.mrf.mxu0 }
  0xaa   :  { %424 = vst.msk [vmem:[#allocation2 + $0x18] sm:$0xff] %vm219_vm0, %v308_v15 }
  0xac   :  { %v368_v18 = vpop.f32.mrf.mxu2 }
  0xad   :  { %448 = vst.msk [vmem:[#allocation2 + $0xd8] sm:$0xff] %vm219_vm0, %v368_v18 }
  0xae   :  { %v341_v20 = vpop.f32.mrf.mxu1 }
  0xaf   :  { %v398_v19 = vpop.f32.mrf.mxu3  ;;  %437 = vst.msk [vmem:[#allocation2 + $0x80] sm:$0xff] %vm219_vm0, %v341_v20 }
  0xb0   :  { %460 = vst.msk [vmem:[#allocation2 + $0x138] sm:$0xff] %vm219_vm0, %v398_v19  ;;  %v759_v19 = vshrl.u32 %v7328_v53, 16 }
  0xb1   :  { %6265 = vmatmul.msk.bf16.gmra.mxu1 %vm219_vm0, %v742_v21  ;;  %6409 = vmatmul.msk.bf16.gmra.mxu2 %vm219_vm0, %v1456_v22  ;;  %v311_v28 = vpop.f32.mrf.mxu0  ;;  %v763_v21 = vshll.u32 %v7329_v14, 16  ;;  %v7357_v22 = vld [vmem:[%s10255_s0 + $0x40] sm:$0xff] }
  0xb2   :  { %425 = vst.msk [vmem:[#allocation2 + $0x20] sm:$0xff] %vm219_vm0, %v311_v28  ;;  %v761_v24 = vor.u32 %v759_v19, %v757_v0  ;;  %v1461_v26 = vrot.slane %v7357_v22, 1  ;;  %v2651_v28 = vshrl.u32 %v7412_v62, 16  ;;  %v7331_v0 = vld [vmem:[%s10255_s0 + $0x50] sm:$0xff] }
  0xb3   :  { %v765_v25 = vrot.slane %v763_v21, 1  ;;  %v471_v22 = vld [vmem:[#allocation2 + $0x10] sm:$0xff] }
  0xb4   :  { %6553 = vmatmul.msk.bf16.gmra.mxu3 %vm219_vm0, %v7381_v23  ;;  %v371_v30 = vpop.f32.mrf.mxu2  ;;  %6697 = vmatmul.msk.bf16.gmra.mxu0 %vm219_vm0, %v2634_v29  ;;  %v7413_v23 = vld [vmem:[%s10255_s0 + $0x4c] sm:$0xff]  ;;  %v2653_v36 = vor.u32 %v2651_v28, %v2649_v12 }
  0xb5   :  { %449 = vst.msk [vmem:[#allocation2 + $0xe0] sm:$0xff] %vm219_vm0, %v371_v30  ;;  %v2655_v29 = vshll.u32 %v7413_v23, 16  ;;  %v766_v33 = vsel %vm698_vm1, %v761_v24, %v765_v25  ;;  %v2659_v52 = vshrl.u32 %v7413_v23, 16 }
  0xb6   :  { %v343_v34 = vpop.f32.mrf.mxu1 }
  0xb7   :  { %v401_v31 = vpop.f32.mrf.mxu3  ;;  %438 = vst.msk [vmem:[#allocation2 + $0x88] sm:$0xff] %vm219_vm0, %v343_v34  ;;  %v1462_v34 = vsel %vm1445_vm2, %v1459_v1, %v1461_v26  ;;  %v2657_v37 = vrot.slane %v2655_v29, 1 }
  0xb8   :  { %461 = vst.msk [vmem:[#allocation2 + $0x140] sm:$0xff] %vm219_vm0, %v401_v31 }
  0xb9   :  { %v313_v41 = vpop.f32.mrf.mxu0  ;;  %v2658_v40 = vsel %vm698_vm1, %v2653_v36, %v2657_v37  ;;  %v2661_v61 = vor.u32 %v2659_v52, %v2657_v37 }
  0xba   :  { %426 = vst.msk [vmem:[#allocation2 + $0x28] sm:$0xff] %vm219_vm0, %v313_v41 }
  0xbc   :  { %v373_v44 = vpop.f32.mrf.mxu2 }
  0xbd   :  { %450 = vst.msk [vmem:[#allocation2 + $0xe8] sm:$0xff] %vm219_vm0, %v373_v44 }
  0xbe   :  { %v346_v46 = vpop.f32.mrf.mxu1 }
  0xbf   :  { %v403_v45 = vpop.f32.mrf.mxu3  ;;  %439 = vst.msk [vmem:[#allocation2 + $0x90] sm:$0xff] %vm219_vm0, %v346_v46  ;;  %v7358_v46 = vld [vmem:[%s10255_s0 + $0x48] sm:$0xff] }
  0xc0   :  { %462 = vst.msk [vmem:[#allocation2 + $0x148] sm:$0xff] %vm219_vm0, %v403_v45  ;;  %v771_v45 = vshll.u32 %v7330_v38, 16  ;;  %v1463_v50 = vrot.slane %v7358_v46, 1 }
  0xc1   :  { %6266 = vmatmul.msk.bf16.gmra.mxu1 %vm219_vm0, %v750_v47  ;;  %6410 = vmatmul.msk.bf16.gmra.mxu2 %vm219_vm0, %v1458_v48  ;;  %v316_v54 = vpop.f32.mrf.mxu0  ;;  %v7414_v47 = vld [vmem:[%s10255_s0 + $0x54] sm:$0xff]  ;;  %v769_v48 = vor.u32 %v767_v43, %v765_v25 }
  0xc2   :  { %427 = vst.msk [vmem:[#allocation2 + $0x30] sm:$0xff] %vm219_vm0, %v316_v54  ;;  %v2663_v53 = vshll.u32 %v7414_v47, 16  ;;  %v8106_v43 = vld [vmem:[%s10255_s0 + $0x58] sm:$0xff] }
  0xc4   :  { %6554 = vmatmul.msk.bf16.gmra.mxu3 %vm219_vm0, %v7382_v49  ;;  %v376_v56 = vpop.f32.mrf.mxu2  ;;  %6698 = vmatmul.msk.bf16.gmra.mxu0 %vm219_vm0, %v2642_v55  ;;  %v773_v49 = vrot.slane %v771_v45, 1  ;;  %v2665_v62 = vrot.slane %v2663_v53, 1 }
  0xc5   :  { %451 = vst.msk [vmem:[#allocation2 + $0xf0] sm:$0xff] %vm219_vm0, %v376_v56  ;;  %v469_v56 = vld [vmem:[#allocation2] sm:$0xff] }
  0xc6   :  { %v348_v59 = vpop.f32.mrf.mxu1  ;;  %v774_v58 = vsel %vm698_vm1, %v769_v48, %v773_v49 }
  0xc7   :  { %v406_v57 = vpop.f32.mrf.mxu3  ;;  %440 = vst.msk [vmem:[#allocation2 + $0x98] sm:$0xff] %vm219_vm0, %v348_v59  ;;  %v1464_v59 = vsel %vm1445_vm2, %v1461_v26, %v1463_v50  ;;  %v7386_v26 = vld [vmem:[%s10255_s0 + $0x54] sm:$0xff] }
  0xc8   :  { %463 = vst.msk [vmem:[#allocation2 + $0x150] sm:$0xff] %vm219_vm0, %v406_v57 }
  0xc9   :  { %v318_v2 = vpop.f32.mrf.mxu0 }
  0xca   :  { %428 = vst.msk [vmem:[#allocation2 + $0x38] sm:$0xff] %vm219_vm0, %v318_v2  ;;  %v2666_v2 = vsel %vm698_vm1, %v2661_v61, %v2665_v62 }
  0xcc   :  { %v378_v5 = vpop.f32.mrf.mxu2 }
  0xcd   :  { %452 = vst.msk [vmem:[#allocation2 + $0xf8] sm:$0xff] %vm219_vm0, %v378_v5  ;;  %v775_v5 = vshrl.u32 %v7330_v38, 16 }
  0xce   :  { %v351_v7 = vpop.f32.mrf.mxu1 }
  0xcf   :  { %v408_v6 = vpop.f32.mrf.mxu3  ;;  %441 = vst.msk [vmem:[#allocation2 + $0xa0] sm:$0xff] %vm219_vm0, %v351_v7  ;;  %v777_v14 = vor.u32 %v775_v5, %v773_v49 }
  0xd0   :  { %464 = vst.msk [vmem:[#allocation2 + $0x158] sm:$0xff] %vm219_vm0, %v408_v6  ;;  %v470_v6 = vld [vmem:[#allocation2 + $0x8] sm:$0xff] }
  0xd1   :  { %6267 = vmatmul.msk.bf16.gmra.mxu1 %vm219_vm0, %v758_v8  ;;  %6411 = vmatmul.msk.bf16.gmra.mxu2 %vm219_vm0, %v1460_v9  ;;  %v321_v15 = vpop.f32.mrf.mxu0  ;;  %v779_v8 = vshll.u32 %v7331_v0, 16  ;;  %v8069_v9 = vld [vmem:[%s10255_s0 + $0x50] sm:$0xff] }
  0xd2   :  { %429 = vst.msk [vmem:[#allocation2 + $0x40] sm:$0xff] %vm219_vm0, %v321_v15 }
  0xd3   :  { %v781_v15 = vrot.slane %v779_v8, 1 }
  0xd4   :  { %6555 = vmatmul.msk.bf16.gmra.mxu3 %vm219_vm0, %v7383_v10  ;;  %v381_v17 = vpop.f32.mrf.mxu2  ;;  %6699 = vmatmul.msk.bf16.gmra.mxu0 %vm219_vm0, %v2650_v16  ;;  %v8074_v10 = vld [vmem:[%s10255_s0 + $0x5c] sm:$0xff]  ;;  %v1465_v16 = vrot.slane %v8069_v9, 1 }
  0xd5   :  { %453 = vst.msk [vmem:[#allocation2 + $0x100] sm:$0xff] %vm219_vm0, %v381_v17  ;;  %v2671_v19 = vshll.u32 %v8074_v10, 16  ;;  %v782_v24 = vsel %vm698_vm1, %v777_v14, %v781_v15  ;;  %v2675_v53 = vshrl.u32 %v8074_v10, 16 }
  0xd6   :  { %v353_v20 = vpop.f32.mrf.mxu1  ;;  %v1466_v25 = vsel %vm1445_vm2, %v1463_v50, %v1465_v16 }
  0xd7   :  { %v411_v18 = vpop.f32.mrf.mxu3  ;;  %442 = vst.msk [vmem:[#allocation2 + $0xa8] sm:$0xff] %vm219_vm0, %v353_v20  ;;  %v2673_v28 = vrot.slane %v2671_v19, 1 }
  0xd8   :  { %465 = vst.msk [vmem:[#allocation2 + $0x160] sm:$0xff] %vm219_vm0, %v411_v18  ;;  %v2667_v18 = vshrl.u32 %v7414_v47, 16 }
  0xd9   :  { %v323_v27 = vpop.f32.mrf.mxu0 }
  0xda   :  { %430 = vst.msk [vmem:[#allocation2 + $0x48] sm:$0xff] %vm219_vm0, %v323_v27  ;;  %v2669_v27 = vor.u32 %v2667_v18, %v2665_v62 }
  0xdc   :  { %v383_v30 = vpop.f32.mrf.mxu2 }
  0xdd   :  { %454 = vst.msk [vmem:[#allocation2 + $0x108] sm:$0xff] %vm219_vm0, %v383_v30 }
  0xde   :  { %v356_v32 = vpop.f32.mrf.mxu1 }
  0xdf   :  { %v413_v31 = vpop.f32.mrf.mxu3  ;;  %443 = vst.msk [vmem:[#allocation2 + $0xb0] sm:$0xff] %vm219_vm0, %v356_v32 }
  0xe0   :  { %466 = vst.msk [vmem:[#allocation2 + $0x168] sm:$0xff] %vm219_vm0, %v413_v31 }
  0xe1   :  { %6268 = vmatmul.msk.bf16.gmra.mxu1 %vm219_vm0, %v766_v33  ;;  %6412 = vmatmul.msk.bf16.gmra.mxu2 %vm219_vm0, %v1462_v34  ;;  %v326_v39 = vpop.f32.mrf.mxu0  ;;  %v8094_v33 = vld [vmem:[%s10255_s0 + $0x58] sm:$0xff] }
  0xe2   :  { %431 = vst.msk [vmem:[#allocation2 + $0x50] sm:$0xff] %vm219_vm0, %v326_v39  ;;  %v783_v39 = vshrl.u32 %v7331_v0, 16  ;;  %v7387_v0 = vld [vmem:[%s10255_s0 + $0x5c] sm:$0xff] }
  0xe4   :  { %6556 = vmatmul.msk.bf16.gmra.mxu3 %vm219_vm0, %v7384_v35  ;;  %v386_v41 = vpop.f32.mrf.mxu2  ;;  %6700 = vmatmul.msk.bf16.gmra.mxu0 %vm219_vm0, %v2658_v40  ;;  %v2674_v35 = vsel %vm698_vm1, %v2669_v27, %v2673_v28  ;;  %v472_v40 = vld [vmem:[#allocation2 + $0x18] sm:$0xff]  ;;  %v785_v48 = vor.u32 %v783_v39, %v781_v15  ;;  %v791_v15 = vshrl.u32 %v8094_v33, 16 }
  0xe5   :  { %455 = vst.msk [vmem:[#allocation2 + $0x110] sm:$0xff] %vm219_vm0, %v386_v41 }
  0xe6   :  { %v358_v44 = vpop.f32.mrf.mxu1 }
  0xe7   :  { %v416_v42 = vpop.f32.mrf.mxu3  ;;  %444 = vst.msk [vmem:[#allocation2 + $0xb8] sm:$0xff] %vm219_vm0, %v358_v44  ;;  %v8111_v44 = vld [vmem:[%s10255_s0 + $0x64] sm:$0xff] }
  0xe8   :  { %467 = vst.msk [vmem:[#allocation2 + $0x170] sm:$0xff] %vm219_vm0, %v416_v42  ;;  %v787_v42 = vshll.u32 %v8094_v33, 16 }
  0xe9   :  { %v328_v51 = vpop.f32.mrf.mxu0 }
  0xea   :  { %432 = vst.msk [vmem:[#allocation2 + $0x58] sm:$0xff] %vm219_vm0, %v328_v51  ;;  %v789_v50 = vrot.slane %v787_v42, 1  ;;  %v1467_v51 = vrot.slane %v8106_v43, 1  ;;  %v7388_v42 = vld [vmem:[%s10255_s0 + $0x64] sm:$0xff] }
  0xec   :  { %v388_v54 = vpop.f32.mrf.mxu2  ;;  %v790_v62 = vsel %vm698_vm1, %v785_v48, %v789_v50 }
  0xed   :  { %456 = vst.msk [vmem:[#allocation2 + $0x118] sm:$0xff] %vm219_vm0, %v388_v54  ;;  %v2679_v54 = vshll.u32 %v8111_v44, 16 }
  0xee   :  { %v1000_v57 = vpop.f32.mrf.mxu1 }
  0xef   :  { %v418_v55 = vpop.f32.mrf.mxu3  ;;  %v1120_v63 = vadd.f32 %v1000_v57, %v469_v56 }
  0xf0   :  { %468 = vst.msk [vmem:[#allocation2 + $0x178] sm:$0xff] %vm219_vm0, %v418_v55 }
  0xf1   :  { %1168 = vst.msk [vmem:[#allocation2] sm:$0xff] %vm219_vm0, %v1120_v63  ;;  %6269 = vmatmul.msk.bf16.gmra.mxu1 %vm219_vm0, %v774_v58  ;;  %6413 = vmatmul.msk.bf16.gmra.mxu2 %vm219_vm0, %v1464_v59  ;;  %v8062_v1 = vpop.f32.mrf.mxu0  ;;  %v1468_v63 = vsel %vm1445_vm2, %v1465_v16, %v1467_v51  ;;  %v474_v16 = vld [vmem:[#allocation2 + $0x28] sm:$0xff] }
  0xf4   :  { %6557 = vmatmul.msk.bf16.gmra.mxu3 %vm219_vm0, %v7385_v60  ;;  %v1600_v3 = vpop.f32.mrf.mxu2  ;;  %6701 = vmatmul.msk.bf16.gmra.mxu0 %vm219_vm0, %v2666_v2  ;;  %v473_v60 = vld [vmem:[#allocation2 + $0x20] sm:$0xff]  ;;  %v2677_v2 = vor.u32 %v2675_v53, %v2673_v28 }
  0xf6   :  { %v1002_v7 = vpop.f32.mrf.mxu1 }
  0xf7   :  { %v2146_v4 = vpop.f32.mrf.mxu3  ;;  %v1121_v11 = vadd.f32 %v1002_v7, %v470_v6  ;;  %v8137_v7 = vld [vmem:[%s10255_s0 + $0x60] sm:$0xff] }
  0xf8   :  { %v1216_v12 = vld [vmem:[#allocation2] sm:$0xff]  ;;  %v795_v19 = vshll.u32 %v8137_v7, 16 }
  0xf9   :  { %v1720_v13 = vadd.f32 %v1600_v3, %v1216_v12  ;;  %1169 = vst.msk [vmem:[#allocation2 + $0x8] sm:$0xff] %vm219_vm0, %v1121_v11  ;;  %v8078_v17 = vpop.f32.mrf.mxu0  ;;  %v2681_v3 = vrot.slane %v2679_v54, 1 }
  0xfa   :  { %v797_v27 = vrot.slane %v795_v19, 1 }
  0xfb   :  { %1768 = vst.msk [vmem:[#allocation2] sm:$0xff] %vm219_vm0, %v1720_v13  ;;  %v2682_v9 = vsel %vm698_vm1, %v2677_v2, %v2681_v3 }
  0xfc   :  { %v1602_v20 = vpop.f32.mrf.mxu2 }
  0xfe   :  { %v1005_v23 = vpop.f32.mrf.mxu1 }
  0xff   :  { %v2148_v21 = vpop.f32.mrf.mxu3  ;;  %v1122_v29 = vadd.f32 %v1005_v23, %v471_v22  ;;  %v7458_v22 = vld [vmem:[%s10256_s1 + $0xa8] sm:$0xff] }
 0x100   :  { %v1217_v30 = vld [vmem:[#allocation2 + $0x8] sm:$0xff]  ;;  %3488 = vmatpush.bf16.msra.mxu1 %v7458_v22 }
 0x101   :  { %v1721_v31 = vadd.f32 %v1602_v20, %v1217_v30  ;;  %1170 = vst.msk [vmem:[#allocation2 + $0x10] sm:$0xff] %vm219_vm0, %v1122_v29  ;;  %6270 = vmatmul.msk.bf16.gmra.mxu1 %vm219_vm0, %v782_v24  ;;  %6414 = vmatmul.msk.bf16.gmra.mxu2 %vm219_vm0, %v1466_v25  ;;  %v8096_v34 = vpop.f32.mrf.mxu0  ;;  %v8151_v20 = vld [vmem:[%s10255_s0 + $0x60] sm:$0xff]  ;;  %v793_v25 = vor.u32 %v791_v15, %v789_v50  ;;  %v2683_v30 = vshrl.u32 %v8111_v44, 16 }
 0x102   :  { %v1816_v32 = vld [vmem:[#allocation2] sm:$0xff]  ;;  %v1469_v28 = vrot.slane %v8151_v20, 1 }
 0x103   :  { %v2266_v36 = vadd.f32 %v2146_v4, %v1816_v32  ;;  %1769 = vst.msk [vmem:[#allocation2 + $0x8] sm:$0xff] %vm219_vm0, %v1721_v31  ;;  %v2685_v44 = vor.u32 %v2683_v30, %v2681_v3 }
 0x104   :  { %6558 = vmatmul.msk.bf16.gmra.mxu3 %vm219_vm0, %v7386_v26  ;;  %v1605_v37 = vpop.f32.mrf.mxu2  ;;  %6702 = vmatmul.msk.bf16.gmra.mxu0 %vm219_vm0, %v2674_v35 }
 0x105   :  { %2314 = vst.msk [vmem:[#allocation2] sm:$0xff] %vm219_vm0, %v2266_v36 }
 0x106   :  { %v1007_v41 = vpop.f32.mrf.mxu1 }
 0x107   :  { %v2151_v38 = vpop.f32.mrf.mxu3  ;;  %v1123_v45 = vadd.f32 %v1007_v41, %v472_v40  ;;  %v798_v40 = vsel %vm698_vm1, %v793_v25, %v797_v27  ;;  %v1470_v41 = vsel %vm1445_vm2, %v1467_v51, %v1469_v28 }
 0x108   :  { %v1218_v46 = vld [vmem:[#allocation2 + $0x10] sm:$0xff] }
 0x109   :  { %v1722_v47 = vadd.f32 %v1605_v37, %v1218_v46  ;;  %1171 = vst.msk [vmem:[#allocation2 + $0x18] sm:$0xff] %vm219_vm0, %v1123_v45  ;;  %v8115_v52 = vpop.f32.mrf.mxu0  ;;  %v7486_v46 = vld [vmem:[%s10256_s1 + $0xc8] sm:$0xff] }
 0x10a   :  { %v1817_v49 = vld [vmem:[#allocation2 + $0x8] sm:$0xff]  ;;  %4034 = vmatpush.bf16.msra.mxu2 %v7486_v46 }
 0x10b   :  { %v2267_v55 = vadd.f32 %v2148_v21, %v1817_v49  ;;  %1770 = vst.msk [vmem:[#allocation2 + $0x10] sm:$0xff] %vm219_vm0, %v1722_v47  ;;  %v8156_v21 = vld [vmem:[%s10255_s0 + $0x6c] sm:$0xff] }
 0x10c   :  { %v2362_v56 = vld [vmem:[#allocation2] sm:$0xff]  ;;  %v1607_v57 = vpop.f32.mrf.mxu2  ;;  %v2687_v31 = vshll.u32 %v8156_v21, 16  ;;  %v8191_v49 = vld [vmem:[%s10255_s0 + $0x68] sm:$0xff] }
 0x10d   :  { %2315 = vst.msk [vmem:[#allocation2 + $0x8] sm:$0xff] %vm219_vm0, %v2267_v55  ;;  %v3012_v58 = vadd.f32 %v8062_v1, %v2362_v56 }
 0x10e   :  { %v1010_v61 = vpop.f32.mrf.mxu1  ;;  %v2689_v45 = vrot.slane %v2687_v31, 1 }
 0x10f   :  { %v2153_v59 = vpop.f32.mrf.mxu3  ;;  %3060 = vst.msk [vmem:[#allocation2] sm:$0xff] %vm219_vm0, %v3012_v58  ;;  %v1124_v4 = vadd.f32 %v1010_v61, %v473_v60  ;;  %v799_v58 = vshrl.u32 %v8137_v7, 16  ;;  %v803_v61 = vshll.u32 %v8191_v49, 16 }
 0x110   :  { %v1219_v5 = vld [vmem:[#allocation2 + $0x18] sm:$0xff]  ;;  %v2690_v51 = vsel %vm698_vm1, %v2685_v44, %v2689_v45 }
 0x111   :  { %v1723_v1 = vadd.f32 %v1607_v57, %v1219_v5  ;;  %1172 = vst.msk [vmem:[#allocation2 + $0x20] sm:$0xff] %vm219_vm0, %v1124_v4  ;;  %6271 = vmatmul.msk.bf16.gmra.mxu1 %vm219_vm0, %v790_v62  ;;  %6415 = vmatmul.msk.bf16.gmra.mxu2 %vm219_vm0, %v1468_v63  ;;  %v8139_v8 = vpop.f32.mrf.mxu0  ;;  %v8205_v62 = vld [vmem:[%s10255_s0 + $0x68] sm:$0xff]  ;;  %v8210_v63 = vld [vmem:[%s10255_s0 + $0x74] sm:$0xff]  ;;  %v801_v4 = vor.u32 %v799_v58, %v797_v27 }
 0x112   :  { %v1818_v6 = vld [vmem:[#allocation2 + $0x10] sm:$0xff] }
 0x113   :  { %v2268_v10 = vadd.f32 %v2151_v38, %v1818_v6  ;;  %1771 = vst.msk [vmem:[#allocation2 + $0x18] sm:$0xff] %vm219_vm0, %v1723_v1  ;;  %v475_v38 = vld [vmem:[#allocation2 + $0x30] sm:$0xff]  ;;  %v805_v1 = vrot.slane %v803_v61, 1  ;;  %v1471_v6 = vrot.slane %v8205_v62, 1 }
 0x114   :  { %6559 = vmatmul.msk.bf16.gmra.mxu3 %vm219_vm0, %v7387_v0  ;;  %v2363_v11 = vld [vmem:[#allocation2 + $0x8] sm:$0xff]  ;;  %v1610_v12 = vpop.f32.mrf.mxu2  ;;  %6703 = vmatmul.msk.bf16.gmra.mxu0 %vm219_vm0, %v2682_v9  ;;  %v2691_v9 = vshrl.u32 %v8156_v21, 16  ;;  %v479_v58 = vld [vmem:[#allocation2 + $0x50] sm:$0xff] }
 0x115   :  { %2316 = vst.msk [vmem:[#allocation2 + $0x10] sm:$0xff] %vm219_vm0, %v2268_v10  ;;  %v3013_v13 = vadd.f32 %v8078_v17, %v2363_v11  ;;  %v7514_v0 = vld [vmem:[%s10256_s1 + $0xe8] sm:$0xff]  ;;  %v2695_v10 = vshll.u32 %v8210_v63, 16  ;;  %v806_v19 = vsel %vm698_vm1, %v801_v4, %v805_v1  ;;  %v1472_v21 = vsel %vm1445_vm2, %v1469_v28, %v1471_v6  ;;  %v8293_v4 = vld [vmem:[%s10255_s0 + $0x78] sm:$0xff] }
 0x116   :  { %v1012_v18 = vpop.f32.mrf.mxu1  ;;  %4780 = vmatpush.bf16.msra.mxu3 %v7514_v0  ;;  %v2693_v22 = vor.u32 %v2691_v9, %v2689_v45 }
 0x117   :  { %v2156_v14 = vpop.f32.mrf.mxu3  ;;  %3061 = vst.msk [vmem:[#allocation2 + $0x8] sm:$0xff] %vm219_vm0, %v3013_v13  ;;  %v1125_v17 = vadd.f32 %v1012_v18, %v474_v16  ;;  %v477_v16 = vld [vmem:[#allocation2 + $0x40] sm:$0xff] }
 0x118   :  { %v1220_v23 = vld [vmem:[#allocation2 + $0x20] sm:$0xff] }
 0x119   :  { %v1724_v24 = vadd.f32 %v1610_v12, %v1220_v23  ;;  %1173 = vst.msk [vmem:[#allocation2 + $0x28] sm:$0xff] %vm219_vm0, %v1125_v17  ;;  %v8164_v29 = vpop.f32.mrf.mxu0  ;;  %v7389_v17 = vld [vmem:[%s10255_s0 + $0x6c] sm:$0xff]  ;;  %v2697_v23 = vrot.slane %v2695_v10, 1 }
 0x11a   :  { %v1819_v26 = vld [vmem:[#allocation2 + $0x18] sm:$0xff] }
 0x11b   :  { %v2269_v32 = vadd.f32 %v2153_v59, %v1819_v26  ;;  %1772 = vst.msk [vmem:[#allocation2 + $0x20] sm:$0xff] %vm219_vm0, %v1724_v24  ;;  %v476_v59 = vld [vmem:[#allocation2 + $0x38] sm:$0xff]  ;;  %v8242_v26 = vld [vmem:[%s10255_s0 + $0x70] sm:$0xff]  ;;  %v2698_v28 = vsel %vm698_vm1, %v2693_v22, %v2697_v23 }
 0x11c   :  { %v2364_v33 = vld [vmem:[#allocation2 + $0x10] sm:$0xff]  ;;  %v1612_v35 = vpop.f32.mrf.mxu2 }
 0x11d   :  { %2317 = vst.msk [vmem:[#allocation2 + $0x18] sm:$0xff] %vm219_vm0, %v2269_v32  ;;  %v3014_v36 = vadd.f32 %v8096_v34, %v2364_v33 }
 0x11e   :  { %v1015_v39 = vpop.f32.mrf.mxu1 }
 0x11f   :  { %v2158_v37 = vpop.f32.mrf.mxu3  ;;  %3062 = vst.msk [vmem:[#allocation2 + $0x10] sm:$0xff] %vm219_vm0, %v3014_v36  ;;  %v1126_v34 = vadd.f32 %v1015_v39, %v475_v38  ;;  %v807_v36 = vshrl.u32 %v8191_v49, 16  ;;  %v811_v39 = vshll.u32 %v8242_v26, 16  ;;  %v2699_v49 = vshrl.u32 %v8210_v63, 16  ;;  %v7390_v63 = vld [vmem:[%s10255_s0 + $0x74] sm:$0xff] }
 0x120   :  { %v1221_v47 = vld [vmem:[#allocation2 + $0x28] sm:$0xff] }
 0x121   :  { %v1725_v48 = vadd.f32 %v1612_v35, %v1221_v47  ;;  %1174 = vst.msk [vmem:[#allocation2 + $0x30] sm:$0xff] %vm219_vm0, %v1126_v34  ;;  %6272 = vmatmul.msk.bf16.gmra.mxu1 %vm219_vm0, %v798_v40  ;;  %6416 = vmatmul.msk.bf16.gmra.mxu2 %vm219_vm0, %v1470_v41  ;;  %v8193_v50 = vpop.f32.mrf.mxu0  ;;  %v8256_v40 = vld [vmem:[%s10255_s0 + $0x70] sm:$0xff]  ;;  %v8261_v41 = vld [vmem:[%s10255_s0 + $0x7c] sm:$0xff]  ;;  %v809_v34 = vor.u32 %v807_v36, %v805_v1  ;;  %v813_v47 = vrot.slane %v811_v39, 1 }
 0x122   :  { %v1820_v43 = vld [vmem:[#allocation2 + $0x20] sm:$0xff] }
 0x123   :  { %v2270_v53 = vadd.f32 %v2156_v14, %v1820_v43  ;;  %1773 = vst.msk [vmem:[#allocation2 + $0x28] sm:$0xff] %vm219_vm0, %v1725_v48  ;;  %v1473_v48 = vrot.slane %v8256_v40, 1  ;;  %v7391_v39 = vld [vmem:[%s10255_s0 + $0x7c] sm:$0xff] }
 0x124   :  { %6560 = vmatmul.msk.bf16.gmra.mxu3 %vm219_vm0, %v7388_v42  ;;  %v2365_v54 = vld [vmem:[#allocation2 + $0x18] sm:$0xff]  ;;  %v1615_v55 = vpop.f32.mrf.mxu2  ;;  %6704 = vmatmul.msk.bf16.gmra.mxu0 %vm219_vm0, %v2690_v51  ;;  %v7542_v42 = vld [vmem:[%s10256_s1 + $0x108] sm:$0xff]  ;;  %v2703_v51 = vshll.u32 %v8261_v41, 16 }
 0x125   :  { %2318 = vst.msk [vmem:[#allocation2 + $0x20] sm:$0xff] %vm219_vm0, %v2270_v53  ;;  %v3015_v56 = vadd.f32 %v8115_v52, %v2365_v54  ;;  %5379 = vmatpush.bf16.msra.mxu0 %v7542_v42  ;;  %v1474_v61 = vsel %vm1445_vm2, %v1471_v6, %v1473_v48 }
 0x126   :  { %v1017_v60 = vpop.f32.mrf.mxu1  ;;  %v2705_v0 = vrot.slane %v2703_v51, 1 }
 0x127   :  { %v2161_v57 = vpop.f32.mrf.mxu3  ;;  %3063 = vst.msk [vmem:[#allocation2 + $0x18] sm:$0xff] %vm219_vm0, %v3015_v56  ;;  %v1127_v52 = vadd.f32 %v1017_v60, %v476_v59  ;;  %v814_v60 = vsel %vm698_vm1, %v809_v34, %v813_v47 }
 0x128   :  { %v1222_v2 = vld [vmem:[#allocation2 + $0x30] sm:$0xff] }
 0x129   :  { %v1726_v3 = vadd.f32 %v1615_v55, %v1222_v2  ;;  %1175 = vst.msk [vmem:[#allocation2 + $0x38] sm:$0xff] %vm219_vm0, %v1127_v52  ;;  %v8218_v7 = vpop.f32.mrf.mxu0  ;;  %v2701_v52 = vor.u32 %v2699_v49, %v2697_v23 }
 0x12a   :  { %v1821_v5 = vld [vmem:[#allocation2 + $0x28] sm:$0xff] }
 0x12b   :  { %v2271_v11 = vadd.f32 %v2158_v37, %v1821_v5  ;;  %1774 = vst.msk [vmem:[#allocation2 + $0x30] sm:$0xff] %vm219_vm0, %v1726_v3  ;;  %v478_v37 = vld [vmem:[#allocation2 + $0x48] sm:$0xff]  ;;  %v2706_v1 = vsel %vm698_vm1, %v2701_v52, %v2705_v0 }
 0x12c   :  { %v2366_v12 = vld [vmem:[#allocation2 + $0x20] sm:$0xff]  ;;  %v1617_v13 = vpop.f32.mrf.mxu2 }
 0x12d   :  { %2319 = vst.msk [vmem:[#allocation2 + $0x28] sm:$0xff] %vm219_vm0, %v2271_v11  ;;  %v3016_v14 = vadd.f32 %v8139_v8, %v2366_v12 }
 0x12e   :  { %v1020_v18 = vpop.f32.mrf.mxu1 }
 0x12f   :  { %v2163_v15 = vpop.f32.mrf.mxu3  ;;  %3064 = vst.msk [vmem:[#allocation2 + $0x20] sm:$0xff] %vm219_vm0, %v3016_v14  ;;  %v1128_v8 = vadd.f32 %v1020_v18, %v477_v16  ;;  %v480_v14 = vld [vmem:[#allocation2 + $0x58] sm:$0xff]  ;;  %v819_v16 = vshll.u32 %v8293_v4, 16 }
 0x130   :  { %v1223_v24 = vld [vmem:[#allocation2 + $0x38] sm:$0xff] }
 0x131   :  { %v1727_v25 = vadd.f32 %v1617_v13, %v1223_v24  ;;  %1176 = vst.msk [vmem:[#allocation2 + $0x40] sm:$0xff] %vm219_vm0, %v1128_v8  ;;  %6273 = vmatmul.msk.bf16.gmra.mxu1 %vm219_vm0, %v806_v19  ;;  %6417 = vmatmul.msk.bf16.gmra.mxu2 %vm219_vm0, %v1472_v21  ;;  %v8244_v27 = vpop.f32.mrf.mxu0  ;;  %v815_v13 = vshrl.u32 %v8242_v26, 16  ;;  %v8307_v18 = vld [vmem:[%s10255_s0 + $0x78] sm:$0xff]  ;;  %v8312_v19 = vld [vmem:[%s10255_s0 + $0x84] sm:$0xff]  ;;  %v821_v8 = vrot.slane %v819_v16, 1 }
 0x132   :  { %v1822_v20 = vld [vmem:[#allocation2 + $0x30] sm:$0xff]  ;;  %v1475_v24 = vrot.slane %v8307_v18, 1  ;;  %v2711_v26 = vshll.u32 %v8312_v19, 16 }
 0x133   :  { %v2272_v30 = vadd.f32 %v2161_v57, %v1822_v20  ;;  %1775 = vst.msk [vmem:[#allocation2 + $0x38] sm:$0xff] %vm219_vm0, %v1727_v25  ;;  %v817_v22 = vor.u32 %v815_v13, %v813_v47  ;;  %v2707_v20 = vshrl.u32 %v8261_v41, 16 }
 0x134   :  { %6561 = vmatmul.msk.bf16.gmra.mxu3 %vm219_vm0, %v7389_v17  ;;  %v2367_v31 = vld [vmem:[#allocation2 + $0x28] sm:$0xff]  ;;  %v1620_v32 = vpop.f32.mrf.mxu2  ;;  %6705 = vmatmul.msk.bf16.gmra.mxu0 %vm219_vm0, %v2698_v28 }
 0x135   :  { %2320 = vst.msk [vmem:[#allocation2 + $0x30] sm:$0xff] %vm219_vm0, %v2272_v30  ;;  %v3017_v33 = vadd.f32 %v8164_v29, %v2367_v31  ;;  %v2709_v41 = vor.u32 %v2707_v20, %v2705_v0 }
 0x136   :  { %v1022_v38 = vpop.f32.mrf.mxu1 }
 0x137   :  { %v2166_v35 = vpop.f32.mrf.mxu3  ;;  %3065 = vst.msk [vmem:[#allocation2 + $0x28] sm:$0xff] %vm219_vm0, %v3017_v33  ;;  %v1129_v29 = vadd.f32 %v1022_v38, %v478_v37  ;;  %v822_v37 = vsel %vm698_vm1, %v817_v22, %v821_v8  ;;  %v1476_v38 = vsel %vm1445_vm2, %v1473_v48, %v1475_v24 }
 0x138   :  { %v1224_v44 = vld [vmem:[#allocation2 + $0x40] sm:$0xff] }
 0x139   :  { %v1728_v45 = vadd.f32 %v1620_v32, %v1224_v44  ;;  %1177 = vst.msk [vmem:[#allocation2 + $0x48] sm:$0xff] %vm219_vm0, %v1129_v29  ;;  %v8269_v43 = vpop.f32.mrf.mxu0  ;;  %v2713_v29 = vrot.slane %v2711_v26, 1 }
 0x13a   :  { %v1823_v46 = vld [vmem:[#allocation2 + $0x38] sm:$0xff] }
 0x13b   :  { %v2273_v53 = vadd.f32 %v2163_v15, %v1823_v46  ;;  %1776 = vst.msk [vmem:[#allocation2 + $0x40] sm:$0xff] %vm219_vm0, %v1728_v45  ;;  %v8341_v45 = vld [vmem:[%s10255_s0 + $0x80] sm:$0xff]  ;;  %v2714_v46 = vsel %vm698_vm1, %v2709_v41, %v2713_v29 }
 0x13c   :  { %v2368_v54 = vld [vmem:[#allocation2 + $0x30] sm:$0xff]  ;;  %v1622_v55 = vpop.f32.mrf.mxu2 }
 0x13d   :  { %2321 = vst.msk [vmem:[#allocation2 + $0x38] sm:$0xff] %vm219_vm0, %v2273_v53  ;;  %v3018_v56 = vadd.f32 %v8193_v50, %v2368_v54  ;;  %v823_v54 = vshrl.u32 %v8293_v4, 16 }
 0x13e   :  { %v1025_v59 = vpop.f32.mrf.mxu1 }
 0x13f   :  { %v2168_v57 = vpop.f32.mrf.mxu3  ;;  %3066 = vst.msk [vmem:[#allocation2 + $0x30] sm:$0xff] %vm219_vm0, %v3018_v56  ;;  %v1130_v50 = vadd.f32 %v1025_v59, %v479_v58  ;;  %v8355_v58 = vld [vmem:[%s10255_s0 + $0x80] sm:$0xff]  ;;  %v8360_v59 = vld [vmem:[%s10255_s0 + $0x8c] sm:$0xff] }
 0x140   :  { %v1225_v2 = vld [vmem:[#allocation2 + $0x48] sm:$0xff] }
 0x141   :  { %v1729_v3 = vadd.f32 %v1622_v55, %v1225_v2  ;;  %1178 = vst.msk [vmem:[#allocation2 + $0x50] sm:$0xff] %vm219_vm0, %v1130_v50  ;;  %6274 = vmatmul.msk.bf16.gmra.mxu1 %vm219_vm0, %v814_v60  ;;  %6418 = vmatmul.msk.bf16.gmra.mxu2 %vm219_vm0, %v1474_v61  ;;  %v8295_v5 = vpop.f32.mrf.mxu0  ;;  %v482_v55 = vld [vmem:[#allocation2 + $0x68] sm:$0xff]  ;;  %v1477_v50 = vrot.slane %v8355_v58, 1 }
 0x142   :  { %v1824_v62 = vld [vmem:[#allocation2 + $0x40] sm:$0xff] }
 0x143   :  { %v2274_v6 = vadd.f32 %v2166_v35, %v1824_v62  ;;  %1777 = vst.msk [vmem:[#allocation2 + $0x48] sm:$0xff] %vm219_vm0, %v1729_v3  ;;  %v481_v35 = vld [vmem:[#allocation2 + $0x60] sm:$0xff]  ;;  %v2715_v3 = vshrl.u32 %v8312_v19, 16  ;;  %v2719_v62 = vshll.u32 %v8360_v59, 16 }
 0x144   :  { %6562 = vmatmul.msk.bf16.gmra.mxu3 %vm219_vm0, %v7390_v63  ;;  %v2369_v9 = vld [vmem:[#allocation2 + $0x38] sm:$0xff]  ;;  %v1625_v10 = vpop.f32.mrf.mxu2  ;;  %6706 = vmatmul.msk.bf16.gmra.mxu0 %vm219_vm0, %v2706_v1  ;;  %v825_v63 = vor.u32 %v823_v54, %v821_v8 }
 0x145   :  { %2322 = vst.msk [vmem:[#allocation2 + $0x40] sm:$0xff] %vm219_vm0, %v2274_v6  ;;  %v3019_v11 = vadd.f32 %v8218_v7, %v2369_v9  ;;  %v2717_v16 = vor.u32 %v2715_v3, %v2713_v29  ;;  %v2721_v19 = vrot.slane %v2719_v62, 1 }
 0x146   :  { %v1027_v15 = vpop.f32.mrf.mxu1 }
 0x147   :  { %v2171_v12 = vpop.f32.mrf.mxu3  ;;  %3067 = vst.msk [vmem:[#allocation2 + $0x38] sm:$0xff] %vm219_vm0, %v3019_v11  ;;  %v1131_v7 = vadd.f32 %v1027_v15, %v480_v14  ;;  %v483_v11 = vld [vmem:[#allocation2 + $0x70] sm:$0xff]  ;;  %v1478_v14 = vsel %vm1445_vm2, %v1475_v24, %v1477_v50  ;;  %v7392_v15 = vld [vmem:[%s10255_s0 + $0x84] sm:$0xff] }
 0x148   :  { %v1226_v21 = vld [vmem:[#allocation2 + $0x50] sm:$0xff] }
 0x149   :  { %v1730_v17 = vadd.f32 %v1625_v10, %v1226_v21  ;;  %1179 = vst.msk [vmem:[#allocation2 + $0x58] sm:$0xff] %vm219_vm0, %v1131_v7  ;;  %v8317_v25 = vpop.f32.mrf.mxu0 }
 0x14a   :  { %v1825_v23 = vld [vmem:[#allocation2 + $0x48] sm:$0xff] }
 0x14b   :  { %v2275_v28 = vadd.f32 %v2168_v57, %v1825_v23  ;;  %1778 = vst.msk [vmem:[#allocation2 + $0x50] sm:$0xff] %vm219_vm0, %v1730_v17  ;;  %v827_v57 = vshll.u32 %v8341_v45, 16  ;;  %v8389_v17 = vld [vmem:[%s10255_s0 + $0x88] sm:$0xff]  ;;  %v2722_v23 = vsel %vm698_vm1, %v2717_v16, %v2721_v19 }
 0x14c   :  { %v2370_v30 = vld [vmem:[#allocation2 + $0x40] sm:$0xff]  ;;  %v1627_v31 = vpop.f32.mrf.mxu2 }
 0x14d   :  { %2323 = vst.msk [vmem:[#allocation2 + $0x48] sm:$0xff] %vm219_vm0, %v2275_v28  ;;  %v3020_v32 = vadd.f32 %v8244_v27, %v2370_v30  ;;  %v829_v0 = vrot.slane %v827_v57, 1  ;;  %v831_v30 = vshrl.u32 %v8341_v45, 16 }
 0x14e   :  { %v1030_v36 = vpop.f32.mrf.mxu1 }
 0x14f   :  { %v2173_v33 = vpop.f32.mrf.mxu3  ;;  %3068 = vst.msk [vmem:[#allocation2 + $0x40] sm:$0xff] %vm219_vm0, %v3020_v32  ;;  %v1132_v27 = vadd.f32 %v1030_v36, %v481_v35  ;;  %v830_v13 = vsel %vm698_vm1, %v825_v63, %v829_v0  ;;  %v8403_v35 = vld [vmem:[%s10255_s0 + $0x88] sm:$0xff]  ;;  %v8408_v36 = vld [vmem:[%s10255_s0 + $0x94] sm:$0xff] }
 0x150   :  { %v1227_v42 = vld [vmem:[#allocation2 + $0x58] sm:$0xff] }
 0x151   :  { %v1731_v44 = vadd.f32 %v1627_v31, %v1227_v42  ;;  %1180 = vst.msk [vmem:[#allocation2 + $0x60] sm:$0xff] %vm219_vm0, %v1132_v27  ;;  %6275 = vmatmul.msk.bf16.gmra.mxu1 %vm219_vm0, %v822_v37  ;;  %6419 = vmatmul.msk.bf16.gmra.mxu2 %vm219_vm0, %v1476_v38  ;;  %v8343_v34 = vpop.f32.mrf.mxu0  ;;  %v484_v31 = vld [vmem:[#allocation2 + $0x78] sm:$0xff]  ;;  %v1479_v27 = vrot.slane %v8403_v35, 1 }
 0x152   :  { %v1826_v40 = vld [vmem:[#allocation2 + $0x50] sm:$0xff] }
 0x153   :  { %v2276_v47 = vadd.f32 %v2171_v12, %v1826_v40  ;;  %1779 = vst.msk [vmem:[#allocation2 + $0x58] sm:$0xff] %vm219_vm0, %v1731_v44  ;;  %v2723_v44 = vshrl.u32 %v8360_v59, 16  ;;  %v2727_v40 = vshll.u32 %v8408_v36, 16 }
 0x154   :  { %6563 = vmatmul.msk.bf16.gmra.mxu3 %vm219_vm0, %v7391_v39  ;;  %v2371_v48 = vld [vmem:[#allocation2 + $0x48] sm:$0xff]  ;;  %v1630_v49 = vpop.f32.mrf.mxu2  ;;  %6707 = vmatmul.msk.bf16.gmra.mxu0 %vm219_vm0, %v2714_v46  ;;  %v833_v39 = vor.u32 %v831_v30, %v829_v0 }
 0x155   :  { %2324 = vst.msk [vmem:[#allocation2 + $0x50] sm:$0xff] %vm219_vm0, %v2276_v47  ;;  %v3021_v51 = vadd.f32 %v8269_v43, %v2371_v48  ;;  %v2725_v57 = vor.u32 %v2723_v44, %v2721_v19  ;;  %v2729_v59 = vrot.slane %v2727_v40, 1 }
 0x156   :  { %v1032_v56 = vpop.f32.mrf.mxu1 }
 0x157   :  { %v2176_v53 = vpop.f32.mrf.mxu3  ;;  %3069 = vst.msk [vmem:[#allocation2 + $0x48] sm:$0xff] %vm219_vm0, %v3021_v51  ;;  %v1133_v43 = vadd.f32 %v1032_v56, %v482_v55  ;;  %v485_v51 = vld [vmem:[#allocation2 + $0x80] sm:$0xff]  ;;  %v1480_v55 = vsel %vm1445_vm2, %v1477_v50, %v1479_v27  ;;  %v7393_v56 = vld [vmem:[%s10255_s0 + $0x8c] sm:$0xff] }
 0x158   :  { %v1228_v60 = vld [vmem:[#allocation2 + $0x60] sm:$0xff] }
 0x159   :  { %v1732_v61 = vadd.f32 %v1630_v49, %v1228_v60  ;;  %1181 = vst.msk [vmem:[#allocation2 + $0x68] sm:$0xff] %vm219_vm0, %v1133_v43  ;;  %v8365_v2 = vpop.f32.mrf.mxu0 }
 0x15a   :  { %v1827_v52 = vld [vmem:[#allocation2 + $0x58] sm:$0xff] }
 0x15b   :  { %v2277_v4 = vadd.f32 %v2173_v33, %v1827_v52  ;;  %1780 = vst.msk [vmem:[#allocation2 + $0x60] sm:$0xff] %vm219_vm0, %v1732_v61  ;;  %v835_v33 = vshll.u32 %v8389_v17, 16  ;;  %v8437_v61 = vld [vmem:[%s10255_s0 + $0x90] sm:$0xff]  ;;  %v2730_v52 = vsel %vm698_vm1, %v2725_v57, %v2729_v59 }
 0x15c   :  { %v2372_v1 = vld [vmem:[#allocation2 + $0x50] sm:$0xff]  ;;  %v1632_v6 = vpop.f32.mrf.mxu2 }
 0x15d   :  { %2325 = vst.msk [vmem:[#allocation2 + $0x58] sm:$0xff] %vm219_vm0, %v2277_v4  ;;  %v3022_v9 = vadd.f32 %v8295_v5, %v2372_v1  ;;  %v837_v29 = vrot.slane %v835_v33, 1  ;;  %v839_v1 = vshrl.u32 %v8389_v17, 16  ;;  %v7394_v33 = vld [vmem:[%s10255_s0 + $0x94] sm:$0xff] }
 0x15e   :  { %v1035_v12 = vpop.f32.mrf.mxu1 }
 0x15f   :  { %v2178_v10 = vpop.f32.mrf.mxu3  ;;  %3070 = vst.msk [vmem:[#allocation2 + $0x50] sm:$0xff] %vm219_vm0, %v3022_v9  ;;  %v1134_v5 = vadd.f32 %v1035_v12, %v483_v11  ;;  %v838_v54 = vsel %vm698_vm1, %v833_v39, %v837_v29  ;;  %v8451_v11 = vld [vmem:[%s10255_s0 + $0x90] sm:$0xff]  ;;  %v8456_v12 = vld [vmem:[%s10255_s0 + $0x9c] sm:$0xff]  ;;  %v841_v16 = vor.u32 %v839_v1, %v837_v29 }
 0x160   :  { %v1229_v7 = vld [vmem:[#allocation2 + $0x68] sm:$0xff]  ;;  %v2735_v17 = vshll.u32 %v8456_v12, 16 }
 0x161   :  { %v1733_v21 = vadd.f32 %v1632_v6, %v1229_v7  ;;  %1182 = vst.msk [vmem:[#allocation2 + $0x70] sm:$0xff] %vm219_vm0, %v1134_v5  ;;  %6276 = vmatmul.msk.bf16.gmra.mxu1 %vm219_vm0, %v830_v13  ;;  %6420 = vmatmul.msk.bf16.gmra.mxu2 %vm219_vm0, %v1478_v14  ;;  %v8391_v22 = vpop.f32.mrf.mxu0  ;;  %v486_v6 = vld [vmem:[#allocation2 + $0x88] sm:$0xff]  ;;  %v7457_v13 = vld [vmem:[%s10256_s1 + $0xa0] sm:$0xff]  ;;  %v1481_v7 = vrot.slane %v8451_v11, 1 }
 0x162   :  { %v1828_v18 = vld [vmem:[#allocation2 + $0x60] sm:$0xff]  ;;  %3489 = vmatpush.bf16.msra.mxu1 %v7457_v13 }
 0x163   :  { %v2278_v8 = vadd.f32 %v2176_v53, %v1828_v18  ;;  %1781 = vst.msk [vmem:[#allocation2 + $0x68] sm:$0xff] %vm219_vm0, %v1733_v21  ;;  %v2731_v18 = vshrl.u32 %v8408_v36, 16 }
 0x164   :  { %6564 = vmatmul.msk.bf16.gmra.mxu3 %vm219_vm0, %v7392_v15  ;;  %v2373_v24 = vld [vmem:[#allocation2 + $0x58] sm:$0xff]  ;;  %v1635_v20 = vpop.f32.mrf.mxu2  ;;  %6708 = vmatmul.msk.bf16.gmra.mxu0 %vm219_vm0, %v2722_v23 }
 0x165   :  { %2326 = vst.msk [vmem:[#allocation2 + $0x60] sm:$0xff] %vm219_vm0, %v2278_v8  ;;  %v3023_v26 = vadd.f32 %v8317_v25, %v2373_v24  ;;  %v2733_v36 = vor.u32 %v2731_v18, %v2729_v59 }
 0x166   :  { %v1037_v32 = vpop.f32.mrf.mxu1 }
 0x167   :  { %v2181_v28 = vpop.f32.mrf.mxu3  ;;  %3071 = vst.msk [vmem:[#allocation2 + $0x58] sm:$0xff] %vm219_vm0, %v3023_v26  ;;  %v1135_v25 = vadd.f32 %v1037_v32, %v484_v31  ;;  %v1482_v32 = vsel %vm1445_vm2, %v1479_v27, %v1481_v7 }
 0x168   :  { %v1230_v37 = vld [vmem:[#allocation2 + $0x70] sm:$0xff] }
 0x169   :  { %v1734_v38 = vadd.f32 %v1635_v20, %v1230_v37  ;;  %1183 = vst.msk [vmem:[#allocation2 + $0x78] sm:$0xff] %vm219_vm0, %v1135_v25  ;;  %v8413_v42 = vpop.f32.mrf.mxu0  ;;  %v2737_v25 = vrot.slane %v2735_v17, 1  ;;  %v7485_v37 = vld [vmem:[%s10256_s1 + $0xc0] sm:$0xff] }
 0x16a   :  { %v1829_v41 = vld [vmem:[#allocation2 + $0x68] sm:$0xff]  ;;  %4035 = vmatpush.bf16.msra.mxu2 %v7485_v37 }
 0x16b   :  { %v2279_v45 = vadd.f32 %v2178_v10, %v1829_v41  ;;  %1782 = vst.msk [vmem:[#allocation2 + $0x70] sm:$0xff] %vm219_vm0, %v1734_v38  ;;  %v843_v10 = vshll.u32 %v8437_v61, 16  ;;  %v8491_v41 = vld [vmem:[%s10255_s0 + $0x98] sm:$0xff]  ;;  %v2738_v27 = vsel %vm698_vm1, %v2733_v36, %v2737_v25 }
 0x16c   :  { %v2374_v46 = vld [vmem:[#allocation2 + $0x60] sm:$0xff]  ;;  %v1637_v47 = vpop.f32.mrf.mxu2 }
 0x16d   :  { %2327 = vst.msk [vmem:[#allocation2 + $0x68] sm:$0xff] %vm219_vm0, %v2279_v45  ;;  %v3024_v48 = vadd.f32 %v8343_v34, %v2374_v46  ;;  %v845_v5 = vrot.slane %v843_v10, 1 }
 0x16e   :  { %v1040_v53 = vpop.f32.mrf.mxu1 }
 0x16f   :  { %v2183_v49 = vpop.f32.mrf.mxu3  ;;  %3072 = vst.msk [vmem:[#allocation2 + $0x60] sm:$0xff] %vm219_vm0, %v3024_v48  ;;  %v1136_v34 = vadd.f32 %v1040_v53, %v485_v51  ;;  %v846_v31 = vsel %vm698_vm1, %v841_v16, %v845_v5  ;;  %v847_v48 = vshrl.u32 %v8437_v61, 16  ;;  %v851_v53 = vshll.u32 %v8491_v41, 16 }
 0x170   :  { %v1231_v43 = vld [vmem:[#allocation2 + $0x78] sm:$0xff] }
 0x171   :  { %v1735_v60 = vadd.f32 %v1637_v47, %v1231_v43  ;;  %1184 = vst.msk [vmem:[#allocation2 + $0x80] sm:$0xff] %vm219_vm0, %v1136_v34  ;;  %6277 = vmatmul.msk.bf16.gmra.mxu1 %vm219_vm0, %v838_v54  ;;  %6421 = vmatmul.msk.bf16.gmra.mxu2 %vm219_vm0, %v1480_v55  ;;  %v8439_v63 = vpop.f32.mrf.mxu0  ;;  %v8505_v54 = vld [vmem:[%s10255_s0 + $0x98] sm:$0xff]  ;;  %v8510_v55 = vld [vmem:[%s10255_s0 + $0xa4] sm:$0xff]  ;;  %v849_v34 = vor.u32 %v847_v48, %v845_v5  ;;  %v491_v48 = vld [vmem:[#allocation2 + $0xb0] sm:$0xff] }
 0x172   :  { %v1830_v58 = vld [vmem:[#allocation2 + $0x70] sm:$0xff] }
 0x173   :  { %v2280_v0 = vadd.f32 %v2181_v28, %v1830_v58  ;;  %1783 = vst.msk [vmem:[#allocation2 + $0x78] sm:$0xff] %vm219_vm0, %v1735_v60  ;;  %v487_v28 = vld [vmem:[#allocation2 + $0x90] sm:$0xff]  ;;  %v853_v60 = vrot.slane %v851_v53, 1  ;;  %v1483_v58 = vrot.slane %v8505_v54, 1 }
 0x174   :  { %6565 = vmatmul.msk.bf16.gmra.mxu3 %vm219_vm0, %v7393_v56  ;;  %v2375_v50 = vld [vmem:[#allocation2 + $0x68] sm:$0xff]  ;;  %v1640_v3 = vpop.f32.mrf.mxu2  ;;  %6709 = vmatmul.msk.bf16.gmra.mxu0 %vm219_vm0, %v2730_v52  ;;  %v7513_v56 = vld [vmem:[%s10256_s1 + $0xe0] sm:$0xff]  ;;  %v2739_v52 = vshrl.u32 %v8456_v12, 16 }
 0x175   :  { %2328 = vst.msk [vmem:[#allocation2 + $0x70] sm:$0xff] %vm219_vm0, %v2280_v0  ;;  %v3025_v62 = vadd.f32 %v8365_v2, %v2375_v50  ;;  %4781 = vmatpush.bf16.msra.mxu3 %v7513_v56  ;;  %v2743_v0 = vshll.u32 %v8510_v55, 16  ;;  %v854_v10 = vsel %vm698_vm1, %v849_v34, %v853_v60  ;;  %v1484_v12 = vsel %vm1445_vm2, %v1481_v7, %v1483_v58  ;;  %v8593_v34 = vld [vmem:[%s10255_s0 + $0xa8] sm:$0xff] }
 0x176   :  { %v1042_v9 = vpop.f32.mrf.mxu1  ;;  %v2741_v13 = vor.u32 %v2739_v52, %v2737_v25 }
 0x177   :  { %v2186_v4 = vpop.f32.mrf.mxu3  ;;  %3073 = vst.msk [vmem:[#allocation2 + $0x68] sm:$0xff] %vm219_vm0, %v3025_v62  ;;  %v1137_v2 = vadd.f32 %v1042_v9, %v486_v6  ;;  %v489_v6 = vld [vmem:[#allocation2 + $0xa0] sm:$0xff] }
 0x178   :  { %v1232_v14 = vld [vmem:[#allocation2 + $0x80] sm:$0xff] }
 0x179   :  { %v1736_v15 = vadd.f32 %v1640_v3, %v1232_v14  ;;  %1185 = vst.msk [vmem:[#allocation2 + $0x88] sm:$0xff] %vm219_vm0, %v1137_v2  ;;  %v8464_v21 = vpop.f32.mrf.mxu0  ;;  %v7395_v2 = vld [vmem:[%s10255_s0 + $0x9c] sm:$0xff]  ;;  %v2745_v14 = vrot.slane %v2743_v0, 1 }
 0x17a   :  { %v1831_v19 = vld [vmem:[#allocation2 + $0x78] sm:$0xff] }
 0x17b   :  { %v2281_v23 = vadd.f32 %v2183_v49, %v1831_v19  ;;  %1784 = vst.msk [vmem:[#allocation2 + $0x80] sm:$0xff] %vm219_vm0, %v1736_v15  ;;  %v488_v49 = vld [vmem:[#allocation2 + $0x98] sm:$0xff]  ;;  %v8542_v19 = vld [vmem:[%s10255_s0 + $0xa0] sm:$0xff]  ;;  %v2746_v7 = vsel %vm698_vm1, %v2741_v13, %v2745_v14 }
 0x17c   :  { %v2376_v8 = vld [vmem:[#allocation2 + $0x70] sm:$0xff]  ;;  %v1642_v24 = vpop.f32.mrf.mxu2 }
 0x17d   :  { %2329 = vst.msk [vmem:[#allocation2 + $0x78] sm:$0xff] %vm219_vm0, %v2281_v23  ;;  %v3026_v20 = vadd.f32 %v8391_v22, %v2376_v8 }
 0x17e   :  { %v1045_v30 = vpop.f32.mrf.mxu1 }
 0x17f   :  { %v2188_v26 = vpop.f32.mrf.mxu3  ;;  %3074 = vst.msk [vmem:[#allocation2 + $0x70] sm:$0xff] %vm219_vm0, %v3026_v20  ;;  %v1138_v22 = vadd.f32 %v1045_v30, %v487_v28  ;;  %v855_v20 = vshrl.u32 %v8491_v41, 16  ;;  %v859_v30 = vshll.u32 %v8542_v19, 16  ;;  %v2747_v41 = vshrl.u32 %v8510_v55, 16  ;;  %v7396_v55 = vld [vmem:[%s10255_s0 + $0xa4] sm:$0xff] }
 0x180   :  { %v1233_v38 = vld [vmem:[#allocation2 + $0x88] sm:$0xff] }
 0x181   :  { %v1737_v39 = vadd.f32 %v1642_v24, %v1233_v38  ;;  %1186 = vst.msk [vmem:[#allocation2 + $0x90] sm:$0xff] %vm219_vm0, %v1138_v22  ;;  %6278 = vmatmul.msk.bf16.gmra.mxu1 %vm219_vm0, %v846_v31  ;;  %6422 = vmatmul.msk.bf16.gmra.mxu2 %vm219_vm0, %v1482_v32  ;;  %v8493_v29 = vpop.f32.mrf.mxu0  ;;  %v8556_v31 = vld [vmem:[%s10255_s0 + $0xa0] sm:$0xff]  ;;  %v8561_v32 = vld [vmem:[%s10255_s0 + $0xac] sm:$0xff]  ;;  %v857_v22 = vor.u32 %v855_v20, %v853_v60  ;;  %v861_v38 = vrot.slane %v859_v30, 1 }
 0x182   :  { %v1832_v35 = vld [vmem:[#allocation2 + $0x80] sm:$0xff]  ;;  %v7397_v30 = vld [vmem:[%s10255_s0 + $0xac] sm:$0xff] }
 0x183   :  { %v2282_v44 = vadd.f32 %v2186_v4, %v1832_v35  ;;  %1785 = vst.msk [vmem:[#allocation2 + $0x88] sm:$0xff] %vm219_vm0, %v1737_v39  ;;  %v1485_v39 = vrot.slane %v8556_v31, 1 }
 0x184   :  { %6566 = vmatmul.msk.bf16.gmra.mxu3 %vm219_vm0, %v7394_v33  ;;  %v2377_v40 = vld [vmem:[#allocation2 + $0x78] sm:$0xff]  ;;  %v1645_v45 = vpop.f32.mrf.mxu2  ;;  %6710 = vmatmul.msk.bf16.gmra.mxu0 %vm219_vm0, %v2738_v27  ;;  %v7541_v33 = vld [vmem:[%s10256_s1 + $0x100] sm:$0xff]  ;;  %v2751_v27 = vshll.u32 %v8561_v32, 16 }
 0x185   :  { %2330 = vst.msk [vmem:[#allocation2 + $0x80] sm:$0xff] %vm219_vm0, %v2282_v44  ;;  %v3027_v46 = vadd.f32 %v8413_v42, %v2377_v40  ;;  %5380 = vmatpush.bf16.msra.mxu0 %v7541_v33  ;;  %v1486_v53 = vsel %vm1445_vm2, %v1483_v58, %v1485_v39 }
 0x186   :  { %v1047_v51 = vpop.f32.mrf.mxu1  ;;  %v2753_v56 = vrot.slane %v2751_v27, 1 }
 0x187   :  { %v2191_v47 = vpop.f32.mrf.mxu3  ;;  %3075 = vst.msk [vmem:[#allocation2 + $0x78] sm:$0xff] %vm219_vm0, %v3027_v46  ;;  %v1139_v42 = vadd.f32 %v1047_v51, %v488_v49  ;;  %v862_v51 = vsel %vm698_vm1, %v857_v22, %v861_v38 }
 0x188   :  { %v1234_v57 = vld [vmem:[#allocation2 + $0x90] sm:$0xff] }
 0x189   :  { %v1738_v59 = vadd.f32 %v1645_v45, %v1234_v57  ;;  %1187 = vst.msk [vmem:[#allocation2 + $0x98] sm:$0xff] %vm219_vm0, %v1139_v42  ;;  %v8518_v61 = vpop.f32.mrf.mxu0  ;;  %v2749_v42 = vor.u32 %v2747_v41, %v2745_v14 }
 0x18a   :  { %v1833_v43 = vld [vmem:[#allocation2 + $0x88] sm:$0xff] }
 0x18b   :  { %v2283_v50 = vadd.f32 %v2188_v26, %v1833_v43  ;;  %1786 = vst.msk [vmem:[#allocation2 + $0x90] sm:$0xff] %vm219_vm0, %v1738_v59  ;;  %v490_v26 = vld [vmem:[#allocation2 + $0xa8] sm:$0xff]  ;;  %v2754_v60 = vsel %vm698_vm1, %v2749_v42, %v2753_v56 }
 0x18c   :  { %v2378_v3 = vld [vmem:[#allocation2 + $0x80] sm:$0xff]  ;;  %v1647_v62 = vpop.f32.mrf.mxu2 }
 0x18d   :  { %2331 = vst.msk [vmem:[#allocation2 + $0x88] sm:$0xff] %vm219_vm0, %v2283_v50  ;;  %v3028_v4 = vadd.f32 %v8439_v63, %v2378_v3 }
 0x18e   :  { %v1050_v9 = vpop.f32.mrf.mxu1 }
 0x18f   :  { %v2193_v1 = vpop.f32.mrf.mxu3  ;;  %3076 = vst.msk [vmem:[#allocation2 + $0x80] sm:$0xff] %vm219_vm0, %v3028_v4  ;;  %v1140_v63 = vadd.f32 %v1050_v9, %v489_v6  ;;  %v492_v4 = vld [vmem:[#allocation2 + $0xb8] sm:$0xff]  ;;  %v867_v6 = vshll.u32 %v8593_v34, 16  ;;  %v8607_v9 = vld [vmem:[%s10255_s0 + $0xa8] sm:$0xff] }
 0x190   :  { %v1235_v15 = vld [vmem:[#allocation2 + $0x98] sm:$0xff] }
 0x191   :  { %v1739_v16 = vadd.f32 %v1647_v62, %v1235_v15  ;;  %1188 = vst.msk [vmem:[#allocation2 + $0xa0] sm:$0xff] %vm219_vm0, %v1140_v63  ;;  %6279 = vmatmul.msk.bf16.gmra.mxu1 %vm219_vm0, %v854_v10  ;;  %6423 = vmatmul.msk.bf16.gmra.mxu2 %vm219_vm0, %v1484_v12  ;;  %v8544_v5 = vpop.f32.mrf.mxu0  ;;  %v863_v62 = vshrl.u32 %v8542_v19, 16  ;;  %v8612_v10 = vld [vmem:[%s10255_s0 + $0xb4] sm:$0xff]  ;;  %v869_v63 = vrot.slane %v867_v6, 1  ;;  %v1487_v15 = vrot.slane %v8607_v9, 1 }
 0x192   :  { %v1834_v11 = vld [vmem:[#allocation2 + $0x90] sm:$0xff]  ;;  %v2759_v19 = vshll.u32 %v8612_v10, 16  ;;  %v8688_v9 = vld [vmem:[%s10255_s0 + $0xb8] sm:$0xff] }
 0x193   :  { %v2284_v18 = vadd.f32 %v2191_v47, %v1834_v11  ;;  %1787 = vst.msk [vmem:[#allocation2 + $0x98] sm:$0xff] %vm219_vm0, %v1739_v16  ;;  %v865_v13 = vor.u32 %v863_v62, %v861_v38  ;;  %v2755_v11 = vshrl.u32 %v8561_v32, 16 }
 0x194   :  { %6567 = vmatmul.msk.bf16.gmra.mxu3 %vm219_vm0, %v7395_v2  ;;  %v2379_v17 = vld [vmem:[#allocation2 + $0x88] sm:$0xff]  ;;  %v1650_v23 = vpop.f32.mrf.mxu2  ;;  %6711 = vmatmul.msk.bf16.gmra.mxu0 %vm219_vm0, %v2746_v7 }
 0x195   :  { %2332 = vst.msk [vmem:[#allocation2 + $0x90] sm:$0xff] %vm219_vm0, %v2284_v18  ;;  %v3029_v8 = vadd.f32 %v8464_v21, %v2379_v17  ;;  %v2757_v32 = vor.u32 %v2755_v11, %v2753_v56 }
 0x196   :  { %v1052_v28 = vpop.f32.mrf.mxu1 }
 0x197   :  { %v2196_v24 = vpop.f32.mrf.mxu3  ;;  %3077 = vst.msk [vmem:[#allocation2 + $0x88] sm:$0xff] %vm219_vm0, %v3029_v8  ;;  %v1141_v21 = vadd.f32 %v1052_v28, %v490_v26  ;;  %v870_v26 = vsel %vm698_vm1, %v865_v13, %v869_v63  ;;  %v1488_v28 = vsel %vm1445_vm2, %v1485_v39, %v1487_v15 }
 0x198   :  { %v1236_v36 = vld [vmem:[#allocation2 + $0xa0] sm:$0xff] }
 0x199   :  { %v1740_v25 = vadd.f32 %v1650_v23, %v1236_v36  ;;  %1189 = vst.msk [vmem:[#allocation2 + $0xa8] sm:$0xff] %vm219_vm0, %v1141_v21  ;;  %v8569_v35 = vpop.f32.mrf.mxu0  ;;  %v2761_v21 = vrot.slane %v2759_v19, 1 }
 0x19a   :  { %v1835_v37 = vld [vmem:[#allocation2 + $0x98] sm:$0xff] }
 0x19b   :  { %v2285_v44 = vadd.f32 %v2193_v1, %v1835_v37  ;;  %1788 = vst.msk [vmem:[#allocation2 + $0xa0] sm:$0xff] %vm219_vm0, %v1740_v25  ;;  %v8641_v25 = vld [vmem:[%s10255_s0 + $0xb0] sm:$0xff]  ;;  %v2762_v37 = vsel %vm698_vm1, %v2757_v32, %v2761_v21 }
 0x19c   :  { %v2380_v40 = vld [vmem:[#allocation2 + $0x90] sm:$0xff]  ;;  %v1652_v45 = vpop.f32.mrf.mxu2 }
 0x19d   :  { %2333 = vst.msk [vmem:[#allocation2 + $0x98] sm:$0xff] %vm219_vm0, %v2285_v44  ;;  %v3030_v46 = vadd.f32 %v8493_v29, %v2380_v40  ;;  %v871_v40 = vshrl.u32 %v8593_v34, 16 }
 0x19e   :  { %v1055_v49 = vpop.f32.mrf.mxu1 }
 0x19f   :  { %v2198_v47 = vpop.f32.mrf.mxu3  ;;  %3078 = vst.msk [vmem:[#allocation2 + $0x90] sm:$0xff] %vm219_vm0, %v3030_v46  ;;  %v1142_v29 = vadd.f32 %v1055_v49, %v491_v48  ;;  %v8655_v48 = vld [vmem:[%s10255_s0 + $0xb0] sm:$0xff]  ;;  %v8660_v49 = vld [vmem:[%s10255_s0 + $0xbc] sm:$0xff] }
 0x1a0   :  { %v1237_v57 = vld [vmem:[#allocation2 + $0xa8] sm:$0xff] }
 0x1a1   :  { %v1741_v59 = vadd.f32 %v1652_v45, %v1237_v57  ;;  %1190 = vst.msk [vmem:[#allocation2 + $0xb0] sm:$0xff] %vm219_vm0, %v1142_v29  ;;  %6280 = vmatmul.msk.bf16.gmra.mxu1 %vm219_vm0, %v862_v51  ;;  %6424 = vmatmul.msk.bf16.gmra.mxu2 %vm219_vm0, %v1486_v53  ;;  %v8595_v43 = vpop.f32.mrf.mxu0  ;;  %v494_v45 = vld [vmem:[#allocation2 + $0xc8] sm:$0xff]  ;;  %v1489_v29 = vrot.slane %v8655_v48, 1 }
 0x1a2   :  { %v1836_v54 = vld [vmem:[#allocation2 + $0xa0] sm:$0xff]  ;;  %v2458_v48 = vld [vmem:[%s10255_s0 + $0xcc] sm:$0x1] }
 0x1a3   :  { %v2286_v58 = vadd.f32 %v2196_v24, %v1836_v54  ;;  %1789 = vst.msk [vmem:[#allocation2 + $0xa8] sm:$0xff] %vm219_vm0, %v1741_v59  ;;  %v493_v24 = vld [vmem:[#allocation2 + $0xc0] sm:$0xff]  ;;  %v2763_v59 = vshrl.u32 %v8612_v10, 16  ;;  %v2767_v54 = vshll.u32 %v8660_v49, 16 }
 0x1a4   :  { %6568 = vmatmul.msk.bf16.gmra.mxu3 %vm219_vm0, %v7396_v55  ;;  %v2381_v52 = vld [vmem:[#allocation2 + $0x98] sm:$0xff]  ;;  %v1655_v0 = vpop.f32.mrf.mxu2  ;;  %6712 = vmatmul.msk.bf16.gmra.mxu0 %vm219_vm0, %v2754_v60  ;;  %v873_v55 = vor.u32 %v871_v40, %v869_v63  ;;  %v497_v40 = vld [vmem:[#allocation2 + $0xe0] sm:$0xff] }
 0x1a5   :  { %2334 = vst.msk [vmem:[#allocation2 + $0xa0] sm:$0xff] %vm219_vm0, %v2286_v58  ;;  %v3031_v50 = vadd.f32 %v8518_v61, %v2381_v52  ;;  %v2765_v6 = vor.u32 %v2763_v59, %v2761_v21  ;;  %v2769_v10 = vrot.slane %v2767_v54, 1 }
 0x1a6   :  { %v1057_v1 = vpop.f32.mrf.mxu1 }
 0x1a7   :  { %v2201_v3 = vpop.f32.mrf.mxu3  ;;  %3079 = vst.msk [vmem:[#allocation2 + $0x98] sm:$0xff] %vm219_vm0, %v3031_v50  ;;  %v1143_v61 = vadd.f32 %v1057_v1, %v492_v4  ;;  %v495_v50 = vld [vmem:[#allocation2 + $0xd0] sm:$0xff]  ;;  %v1490_v4 = vsel %vm1445_vm2, %v1487_v15, %v1489_v29 }
 0x1a8   :  { %v1238_v12 = vld [vmem:[#allocation2 + $0xb0] sm:$0xff] }
 0x1a9   :  { %v1742_v2 = vadd.f32 %v1655_v0, %v1238_v12  ;;  %1191 = vst.msk [vmem:[#allocation2 + $0xb8] sm:$0xff] %vm219_vm0, %v1143_v61  ;;  %v8617_v16 = vpop.f32.mrf.mxu0  ;;  %v7398_v1 = vld [vmem:[%s10255_s0 + $0xb4] sm:$0xff] }
 0x1aa   :  { %v1837_v14 = vld [vmem:[#allocation2 + $0xa8] sm:$0xff] }
 0x1ab   :  { %v2287_v7 = vadd.f32 %v2198_v47, %v1837_v14  ;;  %1790 = vst.msk [vmem:[#allocation2 + $0xb0] sm:$0xff] %vm219_vm0, %v1742_v2  ;;  %v875_v47 = vshll.u32 %v8641_v25, 16  ;;  %v2770_v14 = vsel %vm698_vm1, %v2765_v6, %v2769_v10 }
 0x1ac   :  { %v2382_v18 = vld [vmem:[#allocation2 + $0xa0] sm:$0xff]  ;;  %v1657_v17 = vpop.f32.mrf.mxu2 }
 0x1ad   :  { %2335 = vst.msk [vmem:[#allocation2 + $0xa8] sm:$0xff] %vm219_vm0, %v2287_v7  ;;  %v3032_v23 = vadd.f32 %v8544_v5, %v2382_v18  ;;  %v877_v56 = vrot.slane %v875_v47, 1  ;;  %v879_v18 = vshrl.u32 %v8641_v25, 16  ;;  %v7399_v47 = vld [vmem:[%s10255_s0 + $0xbc] sm:$0xff] }
 0x1ae   :  { %v1060_v20 = vpop.f32.mrf.mxu1 }
 0x1af   :  { %v2203_v8 = vpop.f32.mrf.mxu3  ;;  %3080 = vst.msk [vmem:[#allocation2 + $0xa0] sm:$0xff] %vm219_vm0, %v3032_v23  ;;  %v1144_v5 = vadd.f32 %v1060_v20, %v493_v24  ;;  %v878_v62 = vsel %vm698_vm1, %v873_v55, %v877_v56  ;;  %v496_v23 = vld [vmem:[#allocation2 + $0xd8] sm:$0xff]  ;;  %v8708_v20 = vld [vmem:[%s10255_s0 + $0xc4] sm:$0xff] }
 0x1b0   :  { %v1239_v33 = vld [vmem:[#allocation2 + $0xb8] sm:$0xff] }
 0x1b1   :  { %v1743_v36 = vadd.f32 %v1657_v17, %v1239_v33  ;;  %1192 = vst.msk [vmem:[#allocation2 + $0xc0] sm:$0xff] %vm219_vm0, %v1144_v5  ;;  %6281 = vmatmul.msk.bf16.gmra.mxu1 %vm219_vm0, %v870_v26  ;;  %6425 = vmatmul.msk.bf16.gmra.mxu2 %vm219_vm0, %v1488_v28  ;;  %v8643_v22 = vpop.f32.mrf.mxu0  ;;  %v883_v17 = vshll.u32 %v8688_v9, 16  ;;  %v8703_v24 = vld [vmem:[%s10255_s0 + $0xb8] sm:$0xff] }
 0x1b2   :  { %v1838_v31 = vld [vmem:[#allocation2 + $0xb0] sm:$0xff]  ;;  %v1491_v5 = vrot.slane %v8703_v24, 1 }
 0x1b3   :  { %v2288_v38 = vadd.f32 %v2201_v3, %v1838_v31  ;;  %1791 = vst.msk [vmem:[#allocation2 + $0xb8] sm:$0xff] %vm219_vm0, %v1743_v36  ;;  %v885_v32 = vrot.slane %v883_v17, 1  ;;  %v2771_v36 = vshrl.u32 %v8660_v49, 16  ;;  %v2775_v31 = vshll.u32 %v8708_v20, 16 }
 0x1b4   :  { %6569 = vmatmul.msk.bf16.gmra.mxu3 %vm219_vm0, %v7397_v30  ;;  %v2383_v39 = vld [vmem:[#allocation2 + $0xa8] sm:$0xff]  ;;  %v1660_v41 = vpop.f32.mrf.mxu2  ;;  %6713 = vmatmul.msk.bf16.gmra.mxu0 %vm219_vm0, %v2762_v37  ;;  %v881_v30 = vor.u32 %v879_v18, %v877_v56  ;;  %v565_v37 = vld [vmem:[%s10255_s0 + $0xc0] sm:$0x1] }
 0x1b5   :  { %2336 = vst.msk [vmem:[#allocation2 + $0xb0] sm:$0xff] %vm219_vm0, %v2288_v38  ;;  %v3033_v27 = vadd.f32 %v8569_v35, %v2383_v39  ;;  %v672_v49 = vunpack.c.l.b16 %v565_v37 }
 0x1b6   :  { %v1062_v46 = vpop.f32.mrf.mxu1 }
 0x1b7   :  { %v2206_v44 = vpop.f32.mrf.mxu3  ;;  %3081 = vst.msk [vmem:[#allocation2 + $0xa8] sm:$0xff] %vm219_vm0, %v3033_v27  ;;  %v1145_v35 = vadd.f32 %v1062_v46, %v494_v45  ;;  %v886_v27 = vsel %vm698_vm1, %v881_v30, %v885_v32  ;;  %v1492_v46 = vsel %vm1445_vm2, %v1489_v29, %v1491_v5  ;;  %v697_v29 = vpack.c.b16 %v672_v49, %v672_v49  ;;  %v500_v49 = vld [vmem:[#allocation2 + $0xf8] sm:$0xff] }
 0x1b8   :  { %v1240_v51 = vld [vmem:[#allocation2 + $0xc0] sm:$0xff] }
 0x1b9   :  { %v1744_v53 = vadd.f32 %v1660_v41, %v1240_v51  ;;  %1193 = vst.msk [vmem:[#allocation2 + $0xc8] sm:$0xff] %vm219_vm0, %v1145_v35  ;;  %v8665_v57 = vpop.f32.mrf.mxu0  ;;  %v2773_v35 = vor.u32 %v2771_v36, %v2769_v10  ;;  %v2777_v51 = vrot.slane %v2775_v31, 1  ;;  %v891_v6 = vshll.u32 %v697_v29, 16  ;;  %v7489_v36 = vld [vmem:[%s10255_s0 + $0x18] sm:$0xff] }
 0x1ba   :  { %v1839_v42 = vld [vmem:[#allocation2 + $0xb8] sm:$0xff] }
 0x1bb   :  { %v2289_v34 = vadd.f32 %v2203_v8, %v1839_v42  ;;  %1792 = vst.msk [vmem:[#allocation2 + $0xc0] sm:$0xff] %vm219_vm0, %v1744_v53  ;;  %v1312_v53 = vld [vmem:[%s10255_s0 + $0xc0] sm:$0x1] }
 0x1bc   :  { %v2384_v60 = vld [vmem:[#allocation2 + $0xb0] sm:$0xff]  ;;  %v1662_v58 = vpop.f32.mrf.mxu2  ;;  %v1419_v59 = vunpack.c.l.b16 %v1312_v53  ;;  %v4483_v53 = vshrl.u32 %v7489_v36, 16 }
 0x1bd   :  { %2337 = vst.msk [vmem:[#allocation2 + $0xb8] sm:$0xff] %vm219_vm0, %v2289_v34  ;;  %v3034_v52 = vadd.f32 %v8595_v43, %v2384_v60  ;;  %v2778_v34 = vsel %vm698_vm1, %v2773_v35, %v2777_v51  ;;  %v2565_v60 = vunpack.c.l.b16 %v2458_v48 }
 0x1be   :  { %v1065_v3 = vpop.f32.mrf.mxu1  ;;  %v1444_v10 = vpack.c.b16 %v1419_v59, %v1419_v59 }
 0x1bf   :  { %v2208_v0 = vpop.f32.mrf.mxu3  ;;  %3082 = vst.msk [vmem:[#allocation2 + $0xb0] sm:$0xff] %vm219_vm0, %v3034_v52  ;;  %v1146_v43 = vadd.f32 %v1065_v3, %v495_v50 }
 0x1c0   :  { %v1241_v61 = vld [vmem:[#allocation2 + $0xc8] sm:$0xff] }
 0x1c1   :  { %v1745_v12 = vadd.f32 %v1662_v58, %v1241_v61  ;;  %1194 = vst.msk [vmem:[#allocation2 + $0xd0] sm:$0xff] %vm219_vm0, %v1146_v43  ;;  %6282 = vmatmul.msk.bf16.gmra.mxu1 %vm219_vm0, %v878_v62  ;;  %6426 = vmatmul.msk.bf16.gmra.mxu2 %vm219_vm0, %v1490_v4  ;;  %v8691_v13 = vpop.f32.mrf.mxu0  ;;  %v887_v62 = vshrl.u32 %v8688_v9, 16  ;;  %v498_v4 = vld [vmem:[#allocation2 + $0xe8] sm:$0xff]  ;;  %v2590_v43 = vpack.c.b16 %v2565_v60, %v2565_v60  ;;  %v2779_v9 = vshrl.u32 %v8708_v20, 16 }
 0x1c2   :  { %v1840_v2 = vld [vmem:[#allocation2 + $0xc0] sm:$0xff] }
 0x1c3   :  { %v2290_v63 = vadd.f32 %v2206_v44, %v1840_v2  ;;  %1793 = vst.msk [vmem:[#allocation2 + $0xc8] sm:$0xff] %vm219_vm0, %v1745_v12  ;;  %v7400_v20 = vld [vmem:[%s10255_s0 + $0xc4] sm:$0xff] }
 0x1c4   :  { %6570 = vmatmul.msk.bf16.gmra.mxu3 %vm219_vm0, %v7398_v1  ;;  %v2385_v15 = vld [vmem:[#allocation2 + $0xb8] sm:$0xff]  ;;  %v1665_v11 = vpop.f32.mrf.mxu2  ;;  %6714 = vmatmul.msk.bf16.gmra.mxu0 %vm219_vm0, %v2770_v14  ;;  %v889_v14 = vor.u32 %v887_v62, %v885_v32  ;;  %v2781_v32 = vor.u32 %v2779_v9, %v2777_v51 }
 0x1c5   :  { %2338 = vst.msk [vmem:[#allocation2 + $0xc0] sm:$0xff] %vm219_vm0, %v2290_v63  ;;  %v3035_v19 = vadd.f32 %v8617_v16, %v2385_v15  ;;  %v1493_v15 = vrot.slane %v1444_v10, 1  ;;  %v8795_v51 = vld [vmem:[%s10255_s0 + $0x14] sm:$0xff] }
 0x1c6   :  { %v1067_v8 = vpop.f32.mrf.mxu1 }
 0x1c7   :  { %v2211_v7 = vpop.f32.mrf.mxu3  ;;  %3083 = vst.msk [vmem:[#allocation2 + $0xb8] sm:$0xff] %vm219_vm0, %v3035_v19  ;;  %v1147_v16 = vadd.f32 %v1067_v8, %v496_v23  ;;  %v2783_v19 = vshll.u32 %v2590_v43, 16  ;;  %v1494_v30 = vsel %vm1445_vm2, %v1491_v5, %v1493_v15  ;;  %v7461_v43 = vld [vmem:[%s10255_s0 + $0x18] sm:$0xff] }
 0x1c8   :  { %v1242_v26 = vld [vmem:[#allocation2 + $0xd0] sm:$0xff] }
 0x1c9   :  { %v1746_v28 = vadd.f32 %v1665_v11, %v1242_v26  ;;  %1195 = vst.msk [vmem:[#allocation2 + $0xd8] sm:$0xff] %vm219_vm0, %v1147_v16  ;;  %v8713_v33 = vpop.f32.mrf.mxu0  ;;  %v499_v16 = vld [vmem:[#allocation2 + $0xf0] sm:$0xff] }
 0x1ca   :  { %v1841_v21 = vld [vmem:[#allocation2 + $0xc8] sm:$0xff] }
 0x1cb   :  { %v2291_v25 = vadd.f32 %v2208_v0, %v1841_v21  ;;  %1794 = vst.msk [vmem:[#allocation2 + $0xd0] sm:$0xff] %vm219_vm0, %v1746_v28  ;;  %v2785_v21 = vrot.slane %v2783_v19, 1 }
 0x1cc   :  { %v2386_v38 = vld [vmem:[#allocation2 + $0xc0] sm:$0xff]  ;;  %v1667_v39 = vpop.f32.mrf.mxu2 }
 0x1cd   :  { %2339 = vst.msk [vmem:[#allocation2 + $0xc8] sm:$0xff] %vm219_vm0, %v2291_v25  ;;  %v3036_v41 = vadd.f32 %v8643_v22, %v2386_v38  ;;  %v2786_v37 = vsel %vm698_vm1, %v2781_v32, %v2785_v21  ;;  %v4485_v38 = vshll.u32 %v7489_v36, 16  ;;  %v8845_v21 = vld [vmem:[%s10255_s0 + $0x1c] sm:$0xff] }
 0x1ce   :  { %v1070_v45 = vpop.f32.mrf.mxu1 }
 0x1cf   :  { %v2213_v44 = vpop.f32.mrf.mxu3  ;;  %3084 = vst.msk [vmem:[#allocation2 + $0xc0] sm:$0xff] %vm219_vm0, %v3036_v41  ;;  %v1148_v22 = vadd.f32 %v1070_v45, %v497_v40  ;;  %v6727_v41 = vld [vmem:[%s10255_s0 + $0xc] sm:$0xe]  ;;  %v4487_v48 = vrot.slane %v4485_v38, 1 }
 0x1d0   :  { %v1243_v55 = vld [vmem:[#allocation2 + $0xd8] sm:$0xff] }
 0x1d1   :  { %v1747_v42 = vadd.f32 %v1667_v39, %v1243_v55  ;;  %1196 = vst.msk [vmem:[#allocation2 + $0xe0] sm:$0xff] %vm219_vm0, %v1148_v22  ;;  %6283 = vmatmul.msk.bf16.gmra.mxu1 %vm219_vm0, %v886_v27  ;;  %6427 = vmatmul.msk.bf16.gmra.mxu2 %vm219_vm0, %v1492_v46  ;;  %v8743_v54 = vpop.f32.mrf.mxu0  ;;  %v7433_v27 = vld [vmem:[%s10255_s0 + $0xc] sm:$0xf0]  ;;  %v4488_v62 = vor.u32 %v4487_v48, %v4483_v53 }
 0x1d2   :  { %v1842_v56 = vld [vmem:[#allocation2 + $0xd0] sm:$0xff]  ;;  %v6728_v22 = vor.u32 %v7433_v27, %v6727_v41 }
 0x1d3   :  { %v2292_v58 = vadd.f32 %v2211_v7, %v1842_v56  ;;  %1795 = vst.msk [vmem:[#allocation2 + $0xd8] sm:$0xff] %vm219_vm0, %v1747_v42  ;;  %v7517_v56 = vld [vmem:[%s10255_s0 + $0x18] sm:$0xf0] }
 0x1d4   :  { %6571 = vmatmul.msk.bf16.gmra.mxu3 %vm219_vm0, %v7399_v47  ;;  %v2387_v52 = vld [vmem:[#allocation2 + $0xc8] sm:$0xff]  ;;  %v1670_v0 = vpop.f32.mrf.mxu2  ;;  %6715 = vmatmul.msk.bf16.gmra.mxu0 %vm219_vm0, %v2778_v34  ;;  %v3337_v60 = vrot.slane %v6728_v22, 1 }
 0x1d5   :  { %2340 = vst.msk [vmem:[#allocation2 + $0xd0] sm:$0xff] %vm219_vm0, %v2292_v58  ;;  %v3037_v50 = vadd.f32 %v8665_v57, %v2387_v52  ;;  %v893_v57 = vrot.slane %v891_v6, 1  ;;  %v3338_v58 = vrot.slane %v8795_v51, 1 }
 0x1d6   :  { %v1072_v1 = vpop.f32.mrf.mxu1 }
 0x1d7   :  { %v2216_v3 = vpop.f32.mrf.mxu3  ;;  %3085 = vst.msk [vmem:[#allocation2 + $0xc8] sm:$0xff] %vm219_vm0, %v3037_v50  ;;  %v1149_v61 = vadd.f32 %v1072_v1, %v498_v4  ;;  %v894_v28 = vsel %vm698_vm1, %v889_v14, %v893_v57  ;;  %v3339_v14 = vsel %vm1445_vm2, %v3337_v60, %v3338_v58 }
 0x1d8   :  { %v1244_v12 = vld [vmem:[#allocation2 + $0xe0] sm:$0xff] }
 0x1d9   :  { %v1748_v2 = vadd.f32 %v1670_v0, %v1244_v12  ;;  %1197 = vst.msk [vmem:[#allocation2 + $0xe8] sm:$0xff] %vm219_vm0, %v1149_v61  ;;  %v8753_v11 = vpop.f32.mrf.mxu0  ;;  %v8812_v0 = vld [vmem:[%s10255_s0 + $0x20] sm:$0xff] }
 0x1da   :  { %v1843_v63 = vld [vmem:[#allocation2 + $0xd8] sm:$0xff]  ;;  %v501_v12 = vld [vmem:[#allocation2 + $0x100] sm:$0xff]  ;;  %v5229_v57 = vrot.slane %v8812_v0, 1 }
 0x1db   :  { %v2293_v7 = vadd.f32 %v2213_v44, %v1843_v63  ;;  %1796 = vst.msk [vmem:[#allocation2 + $0xe0] sm:$0xff] %vm219_vm0, %v1748_v2  ;;  %v8787_v44 = vld [vmem:[%s10255_s0 + $0x20] sm:$0xff] }
 0x1dc   :  { %v2388_v18 = vld [vmem:[#allocation2 + $0xd0] sm:$0xff]  ;;  %v1672_v17 = vpop.f32.mrf.mxu2  ;;  %v4490_v42 = vshll.u32 %v8787_v44, 16 }
 0x1dd   :  { %2341 = vst.msk [vmem:[#allocation2 + $0xd8] sm:$0xff] %vm219_vm0, %v2293_v7  ;;  %v3038_v23 = vadd.f32 %v8691_v13, %v2388_v18 }
 0x1de   :  { %v1075_v26 = vpop.f32.mrf.mxu1  ;;  %v4492_v4 = vrot.slane %v4490_v42, 1 }
 0x1df   :  { %v2218_v8 = vpop.f32.mrf.mxu3  ;;  %3086 = vst.msk [vmem:[#allocation2 + $0xd0] sm:$0xff] %vm219_vm0, %v3038_v23  ;;  %v1150_v13 = vadd.f32 %v1075_v26, %v499_v16 }
 0x1e0   :  { %v1245_v31 = vld [vmem:[#allocation2 + $0xe8] sm:$0xff]  ;;  %v4493_v9 = vsel %vm698_vm1, %v4488_v62, %v4492_v4 }
 0x1e1   :  { %v1749_v25 = vadd.f32 %v1672_v17, %v1245_v31  ;;  %1198 = vst.msk [vmem:[#allocation2 + $0xf0] sm:$0xff] %vm219_vm0, %v1150_v13  ;;  %6284 = vmatmul.msk.bf16.gmra.mxu1 %vm219_vm0, %v894_v28  ;;  %6428 = vmatmul.msk.bf16.gmra.mxu2 %vm219_vm0, %v1494_v30  ;;  %v8774_v5 = vpop.f32.mrf.mxu0  ;;  %v4494_v13 = vshrl.u32 %v8787_v44, 16 }
 0x1e2   :  { %v1844_v24 = vld [vmem:[#allocation2 + $0xe0] sm:$0xff] }
 0x1e3   :  { %v2294_v39 = vadd.f32 %v2216_v3, %v1844_v24  ;;  %1797 = vst.msk [vmem:[#allocation2 + $0xe8] sm:$0xff] %vm219_vm0, %v1749_v25  ;;  %v4496_v27 = vor.u32 %v4494_v13, %v4492_v4  ;;  %v8892_v4 = vld [vmem:[%s10255_s0 + $0x24] sm:$0xff] }
 0x1e4   :  { %6572 = vmatmul.msk.bf16.gmra.mxu3 %vm219_vm0, %v7400_v20  ;;  %v2389_v40 = vld [vmem:[#allocation2 + $0xd8] sm:$0xff]  ;;  %v1675_v45 = vpop.f32.mrf.mxu2  ;;  %6716 = vmatmul.msk.bf16.gmra.mxu0 %vm219_vm0, %v2786_v37  ;;  %v502_v20 = vld [vmem:[#allocation2 + $0x108] sm:$0xff]  ;;  %v3340_v37 = vrot.slane %v8845_v21, 1 }
 0x1e5   :  { %2342 = vst.msk [vmem:[#allocation2 + $0xe0] sm:$0xff] %vm219_vm0, %v2294_v39  ;;  %v3039_v46 = vadd.f32 %v8713_v33, %v2389_v40  ;;  %v7159_v33 = vld [vmem:[%s10255_s0 + $0x18] sm:$0xe]  ;;  %v8857_v39 = vld [vmem:[%s10255_s0 + $0x28] sm:$0xff] }
 0x1e6   :  { %v1077_v35 = vpop.f32.mrf.mxu1  ;;  %v7160_v50 = vor.u32 %v7517_v56, %v7159_v33  ;;  %v3341_v53 = vsel %vm1445_vm2, %v3338_v58, %v3340_v37  ;;  %v5231_v48 = vrot.slane %v8857_v39, 1  ;;  %v506_v39 = vld [vmem:[#allocation2 + $0x128] sm:$0xff] }
 0x1e7   :  { %v2221_v47 = vpop.f32.mrf.mxu3  ;;  %3087 = vst.msk [vmem:[#allocation2 + $0xd8] sm:$0xff] %vm219_vm0, %v3039_v46  ;;  %v1151_v55 = vadd.f32 %v1077_v35, %v500_v49  ;;  %v503_v35 = vld [vmem:[#allocation2 + $0x110] sm:$0xff] }
 0x1e8   :  { %v1246_v29 = vld [vmem:[#allocation2 + $0xf0] sm:$0xff]  ;;  %v5228_v63 = vrot.slane %v7160_v50, 1 }
 0x1e9   :  { %v1750_v59 = vadd.f32 %v1675_v45, %v1246_v29  ;;  %1199 = vst.msk [vmem:[#allocation2 + $0xf8] sm:$0xff] %vm219_vm0, %v1151_v55  ;;  %v8807_v52 = vpop.f32.mrf.mxu0  ;;  %v5232_v29 = vsel %vm1445_vm2, %v5229_v57, %v5231_v48 }
 0x1ea   :  { %v1845_v34 = vld [vmem:[#allocation2 + $0xe8] sm:$0xff]  ;;  %v5230_v17 = vsel %vm1445_vm2, %v5228_v63, %v5229_v57 }
 0x1eb   :  { %v2295_v3 = vadd.f32 %v2218_v8, %v1845_v34  ;;  %1798 = vst.msk [vmem:[#allocation2 + $0xf0] sm:$0xff] %vm219_vm0, %v1750_v59  ;;  %v8837_v8 = vld [vmem:[%s10255_s0 + $0x28] sm:$0xff]  ;;  %v8884_v34 = vld [vmem:[%s10255_s0 + $0x30] sm:$0xff] }
 0x1ec   :  { %v2390_v1 = vld [vmem:[#allocation2 + $0xe0] sm:$0xff]  ;;  %v1677_v6 = vpop.f32.mrf.mxu2  ;;  %v4498_v31 = vshll.u32 %v8837_v8, 16 }
 0x1ed   :  { %2343 = vst.msk [vmem:[#allocation2 + $0xe8] sm:$0xff] %vm219_vm0, %v2295_v3  ;;  %v3040_v10 = vadd.f32 %v8743_v54, %v2390_v1  ;;  %v504_v3 = vld [vmem:[#allocation2 + $0x118] sm:$0xff] }
 0x1ee   :  { %v1080_v2 = vpop.f32.mrf.mxu1  ;;  %v4500_v44 = vrot.slane %v4498_v31, 1  ;;  %v8931_v31 = vld [vmem:[%s10255_s0 + $0x38] sm:$0xff] }
 0x1ef   :  { %v2223_v61 = vpop.f32.mrf.mxu3  ;;  %3088 = vst.msk [vmem:[#allocation2 + $0xe0] sm:$0xff] %vm219_vm0, %v3040_v10  ;;  %v1152_v15 = vadd.f32 %v1080_v2, %v501_v12  ;;  %v4506_v10 = vshll.u32 %v8884_v34, 16  ;;  %v3342_v12 = vrot.slane %v8892_v4, 1 }
 0x1f0   :  { %v1247_v54 = vld [vmem:[#allocation2 + $0xf8] sm:$0xff] }
 0x1f1   :  { %v1751_v19 = vadd.f32 %v1677_v6, %v1247_v54  ;;  %1200 = vst.msk [vmem:[#allocation2 + $0x100] sm:$0xff] %vm219_vm0, %v1152_v15  ;;  %6837 = vmatmul.msk.bf16.vlgmr.msra.gmra.mxu1 %vm219_vm0, %v3339_v14  ;;  %6981 = vmatmul.msk.bf16.vlgmr.msra.gmra.mxu2 %vm219_vm0, %v7461_v43  ;;  %v8830_v18 = vpop.f32.mrf.mxu0  ;;  %v4502_v6 = vshrl.u32 %v8837_v8, 16  ;;  %v8904_v14 = vld [vmem:[%s10255_s0 + $0x30] sm:$0xff]  ;;  %v4508_v15 = vrot.slane %v4506_v10, 1  ;;  %v8978_v10 = vld [vmem:[%s10255_s0 + $0x40] sm:$0xff] }
 0x1f2   :  { %v1846_v7 = vld [vmem:[#allocation2 + $0xf0] sm:$0xff] }
 0x1f3   :  { %v2296_v23 = vadd.f32 %v2221_v47, %v1846_v7  ;;  %1799 = vst.msk [vmem:[#allocation2 + $0xf8] sm:$0xff] %vm219_vm0, %v1751_v19  ;;  %v7462_v47 = vld [vmem:[%s10255_s0 + $0x20] sm:$0xff]  ;;  %v4504_v57 = vor.u32 %v4502_v6, %v4500_v44  ;;  %v7463_v7 = vld [vmem:[%s10255_s0 + $0x28] sm:$0xff] }
 0x1f4   :  { %7125 = vmatmul.msk.bf16.vlgmr.msra.gmra.mxu3 %vm219_vm0, %v4493_v9  ;;  %v2391_v16 = vld [vmem:[#allocation2 + $0xe8] sm:$0xff]  ;;  %v1680_v26 = vpop.f32.mrf.mxu2  ;;  %7269 = vmatmul.msk.bf16.vlgmr.msra.gmra.mxu0 %vm219_vm0, %v5230_v17 }
 0x1f5   :  { %2344 = vst.msk [vmem:[#allocation2 + $0xf0] sm:$0xff] %vm219_vm0, %v2296_v23  ;;  %v3041_v28 = vadd.f32 %v8753_v11, %v2391_v16  ;;  %v505_v23 = vld [vmem:[#allocation2 + $0x120] sm:$0xff]  ;;  %v3343_v16 = vsel %vm1445_vm2, %v3340_v37, %v3342_v12 }
 0x1f6   :  { %v1082_v32 = vpop.f32.mrf.mxu1 }
 0x1f7   :  { %v2226_v30 = vpop.f32.mrf.mxu3  ;;  %3089 = vst.msk [vmem:[#allocation2 + $0xe8] sm:$0xff] %vm219_vm0, %v3041_v28  ;;  %v1153_v36 = vadd.f32 %v1082_v32, %v502_v20 }
 0x1f8   :  { %v1248_v25 = vld [vmem:[#allocation2 + $0x100] sm:$0xff] }
 0x1f9   :  { %v1752_v24 = vadd.f32 %v1680_v26, %v1248_v25  ;;  %1201 = vst.msk [vmem:[#allocation2 + $0x108] sm:$0xff] %vm219_vm0, %v1153_v36  ;;  %v8852_v38 = vpop.f32.mrf.mxu0  ;;  %v5233_v26 = vrot.slane %v8904_v14, 1  ;;  %v508_v14 = vld [vmem:[#allocation2 + $0x138] sm:$0xff] }
 0x1fa   :  { %v1847_v11 = vld [vmem:[#allocation2 + $0xf8] sm:$0xff] }
 0x1fb   :  { %v2297_v41 = vadd.f32 %v2223_v61, %v1847_v11  ;;  %1800 = vst.msk [vmem:[#allocation2 + $0x100] sm:$0xff] %vm219_vm0, %v1752_v24  ;;  %v5234_v36 = vsel %vm1445_vm2, %v5231_v48, %v5233_v26 }
 0x1fc   :  { %v2392_v40 = vld [vmem:[#allocation2 + $0xf0] sm:$0xff]  ;;  %v1682_v45 = vpop.f32.mrf.mxu2 }
 0x1fd   :  { %2345 = vst.msk [vmem:[#allocation2 + $0xf8] sm:$0xff] %vm219_vm0, %v2297_v41  ;;  %v3042_v46 = vadd.f32 %v8774_v5, %v2392_v40  ;;  %v4501_v5 = vsel %vm698_vm1, %v4496_v27, %v4500_v44  ;;  %v8939_v27 = vld [vmem:[%s10255_s0 + $0x2c] sm:$0xff]  ;;  %v4510_v40 = vshrl.u32 %v8884_v34, 16 }
 0x1fe   :  { %v1085_v22 = vpop.f32.mrf.mxu1 }
 0x1ff   :  { %v2228_v49 = vpop.f32.mrf.mxu3  ;;  %3090 = vst.msk [vmem:[#allocation2 + $0xf0] sm:$0xff] %vm219_vm0, %v3042_v46  ;;  %v1154_v55 = vadd.f32 %v1085_v22, %v503_v35  ;;  %v8951_v22 = vld [vmem:[%s10255_s0 + $0x38] sm:$0xff]  ;;  %v4512_v48 = vor.u32 %v4510_v40, %v4508_v15 }
 0x200   :  { %v1249_v42 = vld [vmem:[#allocation2 + $0x108] sm:$0xff] }
 0x201   :  { %v1753_v33 = vadd.f32 %v1682_v45, %v1249_v42  ;;  %1202 = vst.msk [vmem:[#allocation2 + $0x110] sm:$0xff] %vm219_vm0, %v1154_v55  ;;  %6838 = vmatmul.msk.bf16.gmra.mxu1 %vm219_vm0, %v3341_v53  ;;  %6982 = vmatmul.msk.bf16.gmra.mxu2 %vm219_vm0, %v7462_v47  ;;  %v8877_v51 = vpop.f32.mrf.mxu0  ;;  %v4514_v45 = vshll.u32 %v8931_v31, 16 }
 0x202   :  { %v1848_v56 = vld [vmem:[#allocation2 + $0x100] sm:$0xff] }
 0x203   :  { %v2298_v59 = vadd.f32 %v2226_v30, %v1848_v56  ;;  %1801 = vst.msk [vmem:[#allocation2 + $0x108] sm:$0xff] %vm219_vm0, %v1753_v33  ;;  %v4516_v55 = vrot.slane %v4514_v45, 1  ;;  %v7464_v56 = vld [vmem:[%s10255_s0 + $0x30] sm:$0xff]  ;;  %v9025_v45 = vld [vmem:[%s10255_s0 + $0x48] sm:$0xff] }
 0x204   :  { %7126 = vmatmul.msk.bf16.gmra.mxu3 %vm219_vm0, %v4501_v5  ;;  %v2393_v60 = vld [vmem:[#allocation2 + $0xf8] sm:$0xff]  ;;  %v1685_v58 = vpop.f32.mrf.mxu2  ;;  %7270 = vmatmul.msk.bf16.gmra.mxu0 %vm219_vm0, %v5232_v29 }
 0x205   :  { %2346 = vst.msk [vmem:[#allocation2 + $0x100] sm:$0xff] %vm219_vm0, %v2298_v59  ;;  %v3043_v0 = vadd.f32 %v8807_v52, %v2393_v60  ;;  %v507_v59 = vld [vmem:[#allocation2 + $0x130] sm:$0xff] }
 0x206   :  { %v1087_v62 = vpop.f32.mrf.mxu1 }
 0x207   :  { %v2231_v50 = vpop.f32.mrf.mxu3  ;;  %3091 = vst.msk [vmem:[#allocation2 + $0xf8] sm:$0xff] %vm219_vm0, %v3043_v0  ;;  %v1155_v1 = vadd.f32 %v1087_v62, %v504_v3 }
 0x208   :  { %v1250_v43 = vld [vmem:[#allocation2 + $0x110] sm:$0xff] }
 0x209   :  { %v1754_v61 = vadd.f32 %v1685_v58, %v1250_v43  ;;  %1203 = vst.msk [vmem:[#allocation2 + $0x118] sm:$0xff] %vm219_vm0, %v1155_v1  ;;  %v8899_v2 = vpop.f32.mrf.mxu0  ;;  %v5235_v58 = vrot.slane %v8951_v22, 1  ;;  %v510_v22 = vld [vmem:[#allocation2 + $0x148] sm:$0xff] }
 0x20a   :  { %v1849_v52 = vld [vmem:[#allocation2 + $0x108] sm:$0xff] }
 0x20b   :  { %v2299_v63 = vadd.f32 %v2228_v49, %v1849_v52  ;;  %1802 = vst.msk [vmem:[#allocation2 + $0x110] sm:$0xff] %vm219_vm0, %v1754_v61  ;;  %v3344_v49 = vrot.slane %v8939_v27, 1  ;;  %v5236_v1 = vsel %vm1445_vm2, %v5233_v26, %v5235_v58 }
 0x20c   :  { %v2394_v9 = vld [vmem:[#allocation2 + $0x100] sm:$0xff]  ;;  %v1687_v54 = vpop.f32.mrf.mxu2 }
 0x20d   :  { %2347 = vst.msk [vmem:[#allocation2 + $0x108] sm:$0xff] %vm219_vm0, %v2299_v63  ;;  %v3044_v19 = vadd.f32 %v8830_v18, %v2394_v9  ;;  %v4509_v18 = vsel %vm698_vm1, %v4504_v57, %v4508_v15  ;;  %v3345_v60 = vsel %vm1445_vm2, %v3342_v12, %v3344_v49  ;;  %v8986_v57 = vld [vmem:[%s10255_s0 + $0x34] sm:$0xff]  ;;  %v4518_v9 = vshrl.u32 %v8931_v31, 16 }
 0x20e   :  { %v1090_v8 = vpop.f32.mrf.mxu1 }
 0x20f   :  { %v2233_v17 = vpop.f32.mrf.mxu3  ;;  %3092 = vst.msk [vmem:[#allocation2 + $0x100] sm:$0xff] %vm219_vm0, %v3044_v19  ;;  %v1156_v28 = vadd.f32 %v1090_v8, %v505_v23  ;;  %v8998_v8 = vld [vmem:[%s10255_s0 + $0x40] sm:$0xff]  ;;  %v4520_v26 = vor.u32 %v4518_v9, %v4516_v55 }
 0x210   :  { %v1251_v30 = vld [vmem:[#allocation2 + $0x118] sm:$0xff] }
 0x211   :  { %v1755_v20 = vadd.f32 %v1687_v54, %v1251_v30  ;;  %1204 = vst.msk [vmem:[#allocation2 + $0x120] sm:$0xff] %vm219_vm0, %v1156_v28  ;;  %6839 = vmatmul.msk.bf16.gmra.mxu1 %vm219_vm0, %v3343_v16  ;;  %6983 = vmatmul.msk.bf16.gmra.mxu2 %vm219_vm0, %v7463_v7  ;;  %v8924_v21 = vpop.f32.mrf.mxu0  ;;  %v4522_v54 = vshll.u32 %v8978_v10, 16 }
 0x212   :  { %v1850_v32 = vld [vmem:[#allocation2 + $0x110] sm:$0xff] }
 0x213   :  { %v2300_v13 = vadd.f32 %v2231_v50, %v1850_v32  ;;  %1803 = vst.msk [vmem:[#allocation2 + $0x118] sm:$0xff] %vm219_vm0, %v1755_v20  ;;  %v4524_v28 = vrot.slane %v4522_v54, 1  ;;  %v7465_v32 = vld [vmem:[%s10255_s0 + $0x38] sm:$0xff]  ;;  %v9072_v54 = vld [vmem:[%s10255_s0 + $0x50] sm:$0xff] }
 0x214   :  { %7127 = vmatmul.msk.bf16.gmra.mxu3 %vm219_vm0, %v4509_v18  ;;  %v2395_v25 = vld [vmem:[#allocation2 + $0x108] sm:$0xff]  ;;  %v1690_v24 = vpop.f32.mrf.mxu2  ;;  %7271 = vmatmul.msk.bf16.gmra.mxu0 %vm219_vm0, %v5234_v36 }
 0x215   :  { %2348 = vst.msk [vmem:[#allocation2 + $0x110] sm:$0xff] %vm219_vm0, %v2300_v13  ;;  %v3045_v11 = vadd.f32 %v8852_v38, %v2395_v25  ;;  %v509_v13 = vld [vmem:[#allocation2 + $0x140] sm:$0xff] }
 0x216   :  { %v1092_v41 = vpop.f32.mrf.mxu1 }
 0x217   :  { %v2236_v37 = vpop.f32.mrf.mxu3  ;;  %3093 = vst.msk [vmem:[#allocation2 + $0x108] sm:$0xff] %vm219_vm0, %v3045_v11  ;;  %v1157_v44 = vadd.f32 %v1092_v41, %v506_v39 }
 0x218   :  { %v1252_v46 = vld [vmem:[#allocation2 + $0x120] sm:$0xff] }
 0x219   :  { %v1756_v47 = vadd.f32 %v1690_v24, %v1252_v46  ;;  %1205 = vst.msk [vmem:[#allocation2 + $0x128] sm:$0xff] %vm219_vm0, %v1157_v44  ;;  %v8946_v35 = vpop.f32.mrf.mxu0  ;;  %v5237_v24 = vrot.slane %v8998_v8, 1  ;;  %v512_v8 = vld [vmem:[#allocation2 + $0x158] sm:$0xff] }
 0x21a   :  { %v1851_v38 = vld [vmem:[#allocation2 + $0x118] sm:$0xff] }
 0x21b   :  { %v2301_v53 = vadd.f32 %v2233_v17, %v1851_v38  ;;  %1804 = vst.msk [vmem:[#allocation2 + $0x120] sm:$0xff] %vm219_vm0, %v1756_v47  ;;  %v3346_v17 = vrot.slane %v8986_v57, 1  ;;  %v5238_v44 = vsel %vm1445_vm2, %v5235_v58, %v5237_v24 }
 0x21c   :  { %v2396_v5 = vld [vmem:[#allocation2 + $0x110] sm:$0xff]  ;;  %v1692_v42 = vpop.f32.mrf.mxu2 }
 0x21d   :  { %2349 = vst.msk [vmem:[#allocation2 + $0x118] sm:$0xff] %vm219_vm0, %v2301_v53  ;;  %v3046_v33 = vadd.f32 %v8877_v51, %v2396_v5  ;;  %v4517_v51 = vsel %vm698_vm1, %v4512_v48, %v4516_v55  ;;  %v3347_v25 = vsel %vm1445_vm2, %v3344_v49, %v3346_v17  ;;  %v9033_v48 = vld [vmem:[%s10255_s0 + $0x3c] sm:$0xff]  ;;  %v4526_v5 = vshrl.u32 %v8978_v10, 16 }
 0x21e   :  { %v1095_v34 = vpop.f32.mrf.mxu1 }
 0x21f   :  { %v2238_v29 = vpop.f32.mrf.mxu3  ;;  %3094 = vst.msk [vmem:[#allocation2 + $0x110] sm:$0xff] %vm219_vm0, %v3046_v33  ;;  %v1158_v0 = vadd.f32 %v1095_v34, %v507_v59  ;;  %v9045_v34 = vld [vmem:[%s10255_s0 + $0x48] sm:$0xff]  ;;  %v4528_v58 = vor.u32 %v4526_v5, %v4524_v28 }
 0x220   :  { %v1253_v50 = vld [vmem:[#allocation2 + $0x128] sm:$0xff] }
 0x221   :  { %v1757_v3 = vadd.f32 %v1692_v42, %v1253_v50  ;;  %1206 = vst.msk [vmem:[#allocation2 + $0x130] sm:$0xff] %vm219_vm0, %v1158_v0  ;;  %6840 = vmatmul.msk.bf16.gmra.mxu1 %vm219_vm0, %v3345_v60  ;;  %6984 = vmatmul.msk.bf16.gmra.mxu2 %vm219_vm0, %v7464_v56  ;;  %v8971_v4 = vpop.f32.mrf.mxu0  ;;  %v4530_v42 = vshll.u32 %v9025_v45, 16 }
 0x222   :  { %v1852_v62 = vld [vmem:[#allocation2 + $0x120] sm:$0xff] }
 0x223   :  { %v2302_v6 = vadd.f32 %v2236_v37, %v1852_v62  ;;  %1805 = vst.msk [vmem:[#allocation2 + $0x128] sm:$0xff] %vm219_vm0, %v1757_v3  ;;  %v4532_v0 = vrot.slane %v4530_v42, 1  ;;  %v7466_v62 = vld [vmem:[%s10255_s0 + $0x40] sm:$0xff]  ;;  %v9119_v42 = vld [vmem:[%s10255_s0 + $0x58] sm:$0xff] }
 0x224   :  { %7128 = vmatmul.msk.bf16.gmra.mxu3 %vm219_vm0, %v4517_v51  ;;  %v2397_v43 = vld [vmem:[#allocation2 + $0x118] sm:$0xff]  ;;  %v1695_v61 = vpop.f32.mrf.mxu2  ;;  %7272 = vmatmul.msk.bf16.gmra.mxu0 %vm219_vm0, %v5236_v1 }
 0x225   :  { %2350 = vst.msk [vmem:[#allocation2 + $0x120] sm:$0xff] %vm219_vm0, %v2302_v6  ;;  %v3047_v52 = vadd.f32 %v8899_v2, %v2397_v43  ;;  %v511_v6 = vld [vmem:[#allocation2 + $0x150] sm:$0xff] }
 0x226   :  { %v1097_v63 = vpop.f32.mrf.mxu1 }
 0x227   :  { %v2241_v12 = vpop.f32.mrf.mxu3  ;;  %3095 = vst.msk [vmem:[#allocation2 + $0x118] sm:$0xff] %vm219_vm0, %v3047_v52  ;;  %v1159_v15 = vadd.f32 %v1097_v63, %v508_v14 }
 0x228   :  { %v1254_v19 = vld [vmem:[#allocation2 + $0x130] sm:$0xff] }
 0x229   :  { %v1758_v7 = vadd.f32 %v1695_v61, %v1254_v19  ;;  %1207 = vst.msk [vmem:[#allocation2 + $0x138] sm:$0xff] %vm219_vm0, %v1159_v15  ;;  %v8993_v23 = vpop.f32.mrf.mxu0  ;;  %v5239_v61 = vrot.slane %v9045_v34, 1  ;;  %v514_v34 = vld [vmem:[#allocation2 + $0x168] sm:$0xff] }
 0x22a   :  { %v1853_v2 = vld [vmem:[#allocation2 + $0x128] sm:$0xff] }
 0x22b   :  { %v2303_v16 = vadd.f32 %v2238_v29, %v1853_v2  ;;  %1806 = vst.msk [vmem:[#allocation2 + $0x130] sm:$0xff] %vm219_vm0, %v1758_v7  ;;  %v3348_v29 = vrot.slane %v9033_v48, 1  ;;  %v5240_v15 = vsel %vm1445_vm2, %v5237_v24, %v5239_v61 }
 0x22c   :  { %v2398_v18 = vld [vmem:[#allocation2 + $0x120] sm:$0xff]  ;;  %v1697_v30 = vpop.f32.mrf.mxu2 }
 0x22d   :  { %2351 = vst.msk [vmem:[#allocation2 + $0x128] sm:$0xff] %vm219_vm0, %v2303_v16  ;;  %v3048_v20 = vadd.f32 %v8924_v21, %v2398_v18  ;;  %v4525_v21 = vsel %vm698_vm1, %v4520_v26, %v4524_v28  ;;  %v3349_v43 = vsel %vm1445_vm2, %v3346_v17, %v3348_v29  ;;  %v9080_v26 = vld [vmem:[%s10255_s0 + $0x44] sm:$0xff]  ;;  %v4534_v18 = vshrl.u32 %v9025_v45, 16 }
 0x22e   :  { %v1100_v31 = vpop.f32.mrf.mxu1 }
 0x22f   :  { %v2243_v36 = vpop.f32.mrf.mxu3  ;;  %3096 = vst.msk [vmem:[#allocation2 + $0x120] sm:$0xff] %vm219_vm0, %v3048_v20  ;;  %v1160_v11 = vadd.f32 %v1100_v31, %v509_v13  ;;  %v9092_v31 = vld [vmem:[%s10255_s0 + $0x50] sm:$0xff]  ;;  %v4536_v24 = vor.u32 %v4534_v18, %v4532_v0 }
 0x230   :  { %v1255_v37 = vld [vmem:[#allocation2 + $0x138] sm:$0xff] }
 0x231   :  { %v1759_v39 = vadd.f32 %v1697_v30, %v1255_v37  ;;  %1208 = vst.msk [vmem:[#allocation2 + $0x140] sm:$0xff] %vm219_vm0, %v1160_v11  ;;  %6841 = vmatmul.msk.bf16.gmra.mxu1 %vm219_vm0, %v3347_v25  ;;  %6985 = vmatmul.msk.bf16.gmra.mxu2 %vm219_vm0, %v7465_v32  ;;  %v9018_v27 = vpop.f32.mrf.mxu0  ;;  %v4538_v30 = vshll.u32 %v9072_v54, 16 }
 0x232   :  { %v1854_v41 = vld [vmem:[#allocation2 + $0x130] sm:$0xff] }
 0x233   :  { %v2304_v40 = vadd.f32 %v2241_v12, %v1854_v41  ;;  %1807 = vst.msk [vmem:[#allocation2 + $0x138] sm:$0xff] %vm219_vm0, %v1759_v39  ;;  %v4540_v11 = vrot.slane %v4538_v30, 1  ;;  %v7467_v41 = vld [vmem:[%s10255_s0 + $0x48] sm:$0xff]  ;;  %v9166_v30 = vld [vmem:[%s10255_s0 + $0x60] sm:$0xff] }
 0x234   :  { %7129 = vmatmul.msk.bf16.gmra.mxu3 %vm219_vm0, %v4525_v21  ;;  %v2399_v46 = vld [vmem:[#allocation2 + $0x128] sm:$0xff]  ;;  %v1700_v47 = vpop.f32.mrf.mxu2  ;;  %7273 = vmatmul.msk.bf16.gmra.mxu0 %vm219_vm0, %v5238_v44 }
 0x235   :  { %2352 = vst.msk [vmem:[#allocation2 + $0x130] sm:$0xff] %vm219_vm0, %v2304_v40  ;;  %v3049_v38 = vadd.f32 %v8946_v35, %v2399_v46  ;;  %v513_v40 = vld [vmem:[#allocation2 + $0x160] sm:$0xff] }
 0x236   :  { %v1102_v53 = vpop.f32.mrf.mxu1 }
 0x237   :  { %v2246_v49 = vpop.f32.mrf.mxu3  ;;  %3097 = vst.msk [vmem:[#allocation2 + $0x128] sm:$0xff] %vm219_vm0, %v3049_v38  ;;  %v1161_v55 = vadd.f32 %v1102_v53, %v510_v22 }
 0x238   :  { %v1256_v33 = vld [vmem:[#allocation2 + $0x140] sm:$0xff] }
 0x239   :  { %v1760_v56 = vadd.f32 %v1700_v47, %v1256_v33  ;;  %1209 = vst.msk [vmem:[#allocation2 + $0x148] sm:$0xff] %vm219_vm0, %v1161_v55  ;;  %v9040_v59 = vpop.f32.mrf.mxu0  ;;  %v5241_v47 = vrot.slane %v9092_v31, 1  ;;  %v516_v31 = vld [vmem:[#allocation2 + $0x178] sm:$0xff] }
 0x23a   :  { %v1855_v35 = vld [vmem:[#allocation2 + $0x138] sm:$0xff] }
 0x23b   :  { %v2305_v60 = vadd.f32 %v2243_v36, %v1855_v35  ;;  %1808 = vst.msk [vmem:[#allocation2 + $0x140] sm:$0xff] %vm219_vm0, %v1760_v56  ;;  %v3350_v36 = vrot.slane %v9080_v26, 1  ;;  %v5242_v55 = vsel %vm1445_vm2, %v5239_v61, %v5241_v47 }
 0x23c   :  { %v2400_v51 = vld [vmem:[#allocation2 + $0x130] sm:$0xff]  ;;  %v1702_v50 = vpop.f32.mrf.mxu2 }
 0x23d   :  { %2353 = vst.msk [vmem:[#allocation2 + $0x138] sm:$0xff] %vm219_vm0, %v2305_v60  ;;  %v3050_v3 = vadd.f32 %v8971_v4, %v2400_v51  ;;  %v4533_v4 = vsel %vm698_vm1, %v4528_v58, %v4532_v0  ;;  %v3351_v46 = vsel %vm1445_vm2, %v3348_v29, %v3350_v36  ;;  %v9127_v58 = vld [vmem:[%s10255_s0 + $0x4c] sm:$0xff]  ;;  %v4542_v51 = vshrl.u32 %v9072_v54, 16 }
 0x23e   :  { %v1105_v10 = vpop.f32.mrf.mxu1 }
 0x23f   :  { %v2248_v1 = vpop.f32.mrf.mxu3  ;;  %3098 = vst.msk [vmem:[#allocation2 + $0x130] sm:$0xff] %vm219_vm0, %v3050_v3  ;;  %v1162_v52 = vadd.f32 %v1105_v10, %v511_v6  ;;  %v9139_v10 = vld [vmem:[%s10255_s0 + $0x58] sm:$0xff]  ;;  %v4544_v61 = vor.u32 %v4542_v51, %v4540_v11 }
 0x240   :  { %v1257_v12 = vld [vmem:[#allocation2 + $0x148] sm:$0xff] }
 0x241   :  { %v1761_v14 = vadd.f32 %v1702_v50, %v1257_v12  ;;  %1210 = vst.msk [vmem:[#allocation2 + $0x150] sm:$0xff] %vm219_vm0, %v1162_v52  ;;  %6842 = vmatmul.msk.bf16.gmra.mxu1 %vm219_vm0, %v3349_v43  ;;  %6986 = vmatmul.msk.bf16.gmra.mxu2 %vm219_vm0, %v7466_v62  ;;  %v9065_v57 = vpop.f32.mrf.mxu0  ;;  %v4546_v50 = vshll.u32 %v9119_v42, 16 }
 0x242   :  { %v1856_v63 = vld [vmem:[#allocation2 + $0x140] sm:$0xff] }
 0x243   :  { %v2306_v9 = vadd.f32 %v2246_v49, %v1856_v63  ;;  %1809 = vst.msk [vmem:[#allocation2 + $0x148] sm:$0xff] %vm219_vm0, %v1761_v14  ;;  %v4548_v52 = vrot.slane %v4546_v50, 1  ;;  %v7468_v63 = vld [vmem:[%s10255_s0 + $0x50] sm:$0xff]  ;;  %v9213_v50 = vld [vmem:[%s10255_s0 + $0x68] sm:$0xff] }
 0x244   :  { %7130 = vmatmul.msk.bf16.gmra.mxu3 %vm219_vm0, %v4533_v4  ;;  %v2401_v19 = vld [vmem:[#allocation2 + $0x138] sm:$0xff]  ;;  %v1705_v7 = vpop.f32.mrf.mxu2  ;;  %7274 = vmatmul.msk.bf16.gmra.mxu0 %vm219_vm0, %v5240_v15 }
 0x245   :  { %2354 = vst.msk [vmem:[#allocation2 + $0x140] sm:$0xff] %vm219_vm0, %v2306_v9  ;;  %v3051_v2 = vadd.f32 %v8993_v23, %v2401_v19  ;;  %v515_v9 = vld [vmem:[#allocation2 + $0x170] sm:$0xff] }
 0x246   :  { %v1107_v16 = vpop.f32.mrf.mxu1 }
 0x247   :  { %v2251_v17 = vpop.f32.mrf.mxu3  ;;  %3099 = vst.msk [vmem:[#allocation2 + $0x138] sm:$0xff] %vm219_vm0, %v3051_v2  ;;  %v1163_v28 = vadd.f32 %v1107_v16, %v512_v8 }
 0x248   :  { %v1258_v20 = vld [vmem:[#allocation2 + $0x150] sm:$0xff] }
 0x249   :  { %v1762_v32 = vadd.f32 %v1705_v7, %v1258_v20  ;;  %1211 = vst.msk [vmem:[#allocation2 + $0x158] sm:$0xff] %vm219_vm0, %v1163_v28  ;;  %v9087_v13 = vpop.f32.mrf.mxu0  ;;  %v5243_v7 = vrot.slane %v9139_v10, 1  ;;  %v3109_v10 = vld [vmem:[#allocation2 + $0x8] sm:$0xff] }
 0x24a   :  { %v1857_v23 = vld [vmem:[#allocation2 + $0x148] sm:$0xff] }
 0x24b   :  { %v2307_v25 = vadd.f32 %v2248_v1, %v1857_v23  ;;  %1810 = vst.msk [vmem:[#allocation2 + $0x150] sm:$0xff] %vm219_vm0, %v1762_v32  ;;  %v3352_v1 = vrot.slane %v9127_v58, 1  ;;  %v5244_v28 = vsel %vm1445_vm2, %v5241_v47, %v5243_v7 }
 0x24c   :  { %v2402_v21 = vld [vmem:[#allocation2 + $0x140] sm:$0xff]  ;;  %v1707_v37 = vpop.f32.mrf.mxu2 }
 0x24d   :  { %2355 = vst.msk [vmem:[#allocation2 + $0x148] sm:$0xff] %vm219_vm0, %v2307_v25  ;;  %v3052_v39 = vadd.f32 %v9018_v27, %v2402_v21  ;;  %v4541_v27 = vsel %vm698_vm1, %v4536_v24, %v4540_v11  ;;  %v3353_v19 = vsel %vm1445_vm2, %v3350_v36, %v3352_v1  ;;  %v9174_v24 = vld [vmem:[%s10255_s0 + $0x54] sm:$0xff]  ;;  %v4550_v21 = vshrl.u32 %v9119_v42, 16 }
 0x24e   :  { %v1110_v45 = vpop.f32.mrf.mxu1 }
 0x24f   :  { %v2253_v44 = vpop.f32.mrf.mxu3  ;;  %3100 = vst.msk [vmem:[#allocation2 + $0x140] sm:$0xff] %vm219_vm0, %v3052_v39  ;;  %v1164_v38 = vadd.f32 %v1110_v45, %v513_v40  ;;  %v9186_v45 = vld [vmem:[%s10255_s0 + $0x60] sm:$0xff]  ;;  %v4552_v47 = vor.u32 %v4550_v21, %v4548_v52 }
 0x250   :  { %v1259_v49 = vld [vmem:[#allocation2 + $0x158] sm:$0xff] }
 0x251   :  { %v1763_v22 = vadd.f32 %v1707_v37, %v1259_v49  ;;  %1212 = vst.msk [vmem:[#allocation2 + $0x160] sm:$0xff] %vm219_vm0, %v1164_v38  ;;  %6843 = vmatmul.msk.bf16.gmra.mxu1 %vm219_vm0, %v3351_v46  ;;  %6987 = vmatmul.msk.bf16.gmra.mxu2 %vm219_vm0, %v7467_v41  ;;  %v9112_v48 = vpop.f32.mrf.mxu0  ;;  %v4554_v37 = vshll.u32 %v9166_v30, 16 }
 0x252   :  { %v1858_v53 = vld [vmem:[#allocation2 + $0x150] sm:$0xff] }
 0x253   :  { %v2308_v5 = vadd.f32 %v2251_v17, %v1858_v53  ;;  %1811 = vst.msk [vmem:[#allocation2 + $0x158] sm:$0xff] %vm219_vm0, %v1763_v22  ;;  %v4556_v38 = vrot.slane %v4554_v37, 1  ;;  %v7469_v53 = vld [vmem:[%s10255_s0 + $0x58] sm:$0xff]  ;;  %v9260_v37 = vld [vmem:[%s10255_s0 + $0x70] sm:$0xff] }
 0x254   :  { %7131 = vmatmul.msk.bf16.gmra.mxu3 %vm219_vm0, %v4541_v27  ;;  %v2403_v33 = vld [vmem:[#allocation2 + $0x148] sm:$0xff]  ;;  %v1710_v56 = vpop.f32.mrf.mxu2  ;;  %7275 = vmatmul.msk.bf16.gmra.mxu0 %vm219_vm0, %v5242_v55 }
 0x255   :  { %2356 = vst.msk [vmem:[#allocation2 + $0x150] sm:$0xff] %vm219_vm0, %v2308_v5  ;;  %v3053_v35 = vadd.f32 %v9040_v59, %v2403_v33  ;;  %v3108_v5 = vld [vmem:[#allocation2] sm:$0xff] }
 0x256   :  { %v1112_v60 = vpop.f32.mrf.mxu1 }
 0x257   :  { %v2256_v29 = vpop.f32.mrf.mxu3  ;;  %3101 = vst.msk [vmem:[#allocation2 + $0x148] sm:$0xff] %vm219_vm0, %v3053_v35  ;;  %v1165_v0 = vadd.f32 %v1112_v60, %v514_v34 }
 0x258   :  { %v1260_v3 = vld [vmem:[#allocation2 + $0x160] sm:$0xff] }
 0x259   :  { %v1764_v62 = vadd.f32 %v1710_v56, %v1260_v3  ;;  %1213 = vst.msk [vmem:[#allocation2 + $0x168] sm:$0xff] %vm219_vm0, %v1165_v0  ;;  %v9134_v6 = vpop.f32.mrf.mxu0  ;;  %v5245_v56 = vrot.slane %v9186_v45, 1  ;;  %v3111_v45 = vld [vmem:[#allocation2 + $0x18] sm:$0xff] }
 0x25a   :  { %v1859_v59 = vld [vmem:[#allocation2 + $0x158] sm:$0xff] }
 0x25b   :  { %v2309_v43 = vadd.f32 %v2253_v44, %v1859_v59  ;;  %1812 = vst.msk [vmem:[#allocation2 + $0x160] sm:$0xff] %vm219_vm0, %v1764_v62  ;;  %v3354_v44 = vrot.slane %v9174_v24, 1  ;;  %v5246_v0 = vsel %vm1445_vm2, %v5243_v7, %v5245_v56 }
 0x25c   :  { %v2404_v4 = vld [vmem:[#allocation2 + $0x150] sm:$0xff]  ;;  %v1712_v12 = vpop.f32.mrf.mxu2 }
 0x25d   :  { %2357 = vst.msk [vmem:[#allocation2 + $0x158] sm:$0xff] %vm219_vm0, %v2309_v43  ;;  %v3054_v14 = vadd.f32 %v9065_v57, %v2404_v4  ;;  %v4549_v57 = vsel %vm698_vm1, %v4544_v61, %v4548_v52  ;;  %v3355_v33 = vsel %vm1445_vm2, %v3352_v1, %v3354_v44  ;;  %v9221_v61 = vld [vmem:[%s10255_s0 + $0x5c] sm:$0xff]  ;;  %v4558_v4 = vshrl.u32 %v9166_v30, 16 }
 0x25e   :  { %v1115_v54 = vpop.f32.mrf.mxu1 }
 0x25f   :  { %v2258_v15 = vpop.f32.mrf.mxu3  ;;  %3102 = vst.msk [vmem:[#allocation2 + $0x150] sm:$0xff] %vm219_vm0, %v3054_v14  ;;  %v1166_v2 = vadd.f32 %v1115_v54, %v515_v9  ;;  %v9233_v54 = vld [vmem:[%s10255_s0 + $0x68] sm:$0xff]  ;;  %v4560_v7 = vor.u32 %v4558_v4, %v4556_v38 }
 0x260   :  { %v1261_v17 = vld [vmem:[#allocation2 + $0x168] sm:$0xff] }
 0x261   :  { %v1765_v8 = vadd.f32 %v1712_v12, %v1261_v17  ;;  %1214 = vst.msk [vmem:[#allocation2 + $0x170] sm:$0xff] %vm219_vm0, %v1166_v2  ;;  %6844 = vmatmul.msk.bf16.gmra.mxu1 %vm219_vm0, %v3353_v19  ;;  %6988 = vmatmul.msk.bf16.gmra.mxu2 %vm219_vm0, %v7468_v63  ;;  %v9159_v26 = vpop.f32.mrf.mxu0  ;;  %v4562_v12 = vshll.u32 %v9213_v50, 16 }
 0x262   :  { %v1860_v16 = vld [vmem:[#allocation2 + $0x160] sm:$0xff] }
 0x263   :  { %v2310_v18 = vadd.f32 %v2256_v29, %v1860_v16  ;;  %1813 = vst.msk [vmem:[#allocation2 + $0x168] sm:$0xff] %vm219_vm0, %v1765_v8  ;;  %v4564_v2 = vrot.slane %v4562_v12, 1  ;;  %v7470_v16 = vld [vmem:[%s10255_s0 + $0x60] sm:$0xff] }
 0x264   :  { %7132 = vmatmul.msk.bf16.gmra.mxu3 %vm219_vm0, %v4549_v57  ;;  %v2405_v20 = vld [vmem:[#allocation2 + $0x158] sm:$0xff]  ;;  %v1715_v32 = vpop.f32.mrf.mxu2  ;;  %7276 = vmatmul.msk.bf16.gmra.mxu0 %vm219_vm0, %v5244_v28  ;;  %v9309_v12 = vld [vmem:[%s10257_s2] ss:$0 sm:$0xff] }
 0x265   :  { %2358 = vst.msk [vmem:[#allocation2 + $0x160] sm:$0xff] %vm219_vm0, %v2310_v18  ;;  %v3055_v23 = vadd.f32 %v9087_v13, %v2405_v20  ;;  %v3110_v18 = vld [vmem:[#allocation2 + $0x10] sm:$0xff] }
 0x266   :  { %v1117_v25 = vpop.f32.mrf.mxu1 }
 0x267   :  { %v2261_v36 = vpop.f32.mrf.mxu3  ;;  %3103 = vst.msk [vmem:[#allocation2 + $0x158] sm:$0xff] %vm219_vm0, %v3055_v23  ;;  %v1167_v11 = vadd.f32 %v1117_v25, %v516_v31 }
 0x268   :  { %v1262_v39 = vld [vmem:[#allocation2 + $0x170] sm:$0xff] }
 0x269   :  { %v1766_v41 = vadd.f32 %v1715_v32, %v1262_v39  ;;  %1215 = vst.msk [vmem:[#allocation2 + $0x178] sm:$0xff] %vm219_vm0, %v1167_v11  ;;  %v9181_v40 = vpop.f32.mrf.mxu0  ;;  %v5247_v32 = vrot.slane %v9233_v54, 1 }
 0x26a   :  { %v1861_v13 = vld [vmem:[#allocation2 + $0x168] sm:$0xff] }
 0x26b   :  { %v2311_v46 = vadd.f32 %v2258_v15, %v1861_v13  ;;  %1814 = vst.msk [vmem:[#allocation2 + $0x170] sm:$0xff] %vm219_vm0, %v1766_v41  ;;  %v3356_v15 = vrot.slane %v9221_v61, 1  ;;  %v5248_v11 = vsel %vm1445_vm2, %v5245_v56, %v5247_v32 }
 0x26c   :  { %v2406_v27 = vld [vmem:[#allocation2 + $0x160] sm:$0xff]  ;;  %v1717_v49 = vpop.f32.mrf.mxu2 }
 0x26d   :  { %2359 = vst.msk [vmem:[#allocation2 + $0x168] sm:$0xff] %vm219_vm0, %v2311_v46  ;;  %v3056_v22 = vadd.f32 %v9112_v48, %v2406_v27  ;;  %v4557_v48 = vsel %vm698_vm1, %v4552_v47, %v4556_v38  ;;  %v3357_v20 = vsel %vm1445_vm2, %v3354_v44, %v3356_v15  ;;  %v9268_v47 = vld [vmem:[%s10255_s0 + $0x64] sm:$0xff]  ;;  %v4566_v27 = vshrl.u32 %v9213_v50, 16 }
 0x26e   :  { %v3491_v42 = vpop.f32.mrf.mxu1 }
 0x26f   :  { %v2263_v55 = vpop.f32.mrf.mxu3  ;;  %3104 = vst.msk [vmem:[#allocation2 + $0x160] sm:$0xff] %vm219_vm0, %v3056_v22  ;;  %v3611_v35 = vadd.f32 %v3491_v42, %v3108_v5  ;;  %v9280_v42 = vld [vmem:[%s10255_s0 + $0x70] sm:$0xff]  ;;  %v4568_v56 = vor.u32 %v4566_v27, %v4564_v2 }
 0x270   :  { %v1263_v29 = vld [vmem:[#allocation2 + $0x178] sm:$0xff] }
 0x271   :  { %v1767_v34 = vadd.f32 %v1717_v49, %v1263_v29  ;;  %3659 = vst.msk [vmem:[#allocation2] sm:$0xff] %vm219_vm0, %v3611_v35  ;;  %6845 = vmatmul.msk.bf16.gmra.mxu1 %vm219_vm0, %v3355_v33  ;;  %6989 = vmatmul.msk.bf16.gmra.mxu2 %vm219_vm0, %v7469_v53  ;;  %v9206_v58 = vpop.f32.mrf.mxu0  ;;  %v4570_v49 = vshll.u32 %v9260_v37, 16 }
 0x272   :  { %v1862_v60 = vld [vmem:[#allocation2 + $0x170] sm:$0xff] }
 0x273   :  { %v2312_v51 = vadd.f32 %v2261_v36, %v1862_v60  ;;  %1815 = vst.msk [vmem:[#allocation2 + $0x178] sm:$0xff] %vm219_vm0, %v1767_v34  ;;  %v4572_v35 = vrot.slane %v4570_v49, 1  ;;  %v7471_v60 = vld [vmem:[%s10255_s0 + $0x68] sm:$0xff] }
 0x274   :  { %7133 = vmatmul.msk.bf16.gmra.mxu3 %vm219_vm0, %v4557_v48  ;;  %v2407_v3 = vld [vmem:[#allocation2 + $0x168] sm:$0xff]  ;;  %v4037_v62 = vpop.f32.mrf.mxu2  ;;  %7277 = vmatmul.msk.bf16.gmra.mxu0 %vm219_vm0, %v5246_v0 }
 0x275   :  { %2360 = vst.msk [vmem:[#allocation2 + $0x170] sm:$0xff] %vm219_vm0, %v2312_v51  ;;  %v3057_v59 = vadd.f32 %v9134_v6, %v2407_v3  ;;  %v3112_v51 = vld [vmem:[#allocation2 + $0x20] sm:$0xff] }
 0x276   :  { %v3493_v43 = vpop.f32.mrf.mxu1 }
 0x277   :  { %v4783_v1 = vpop.f32.mrf.mxu3  ;;  %3105 = vst.msk [vmem:[#allocation2 + $0x168] sm:$0xff] %vm219_vm0, %v3057_v59  ;;  %v3612_v52 = vadd.f32 %v3493_v43, %v3109_v10 }
 0x278   :  { %v3707_v14 = vld [vmem:[#allocation2] sm:$0xff] }
 0x279   :  { %v4157_v63 = vadd.f32 %v4037_v62, %v3707_v14  ;;  %3660 = vst.msk [vmem:[#allocation2 + $0x8] sm:$0xff] %vm219_vm0, %v3612_v52  ;;  %v9228_v9 = vpop.f32.mrf.mxu0  ;;  %v5249_v62 = vrot.slane %v9280_v42, 1  ;;  %v9314_v14 = vld [vmem:[%s10255_s0 + $0x78] sm:$0xff] }
 0x27a   :  { %v1863_v6 = vld [vmem:[#allocation2 + $0x178] sm:$0xff] }
 0x27b   :  { %v2313_v19 = vadd.f32 %v2263_v55, %v1863_v6  ;;  %4205 = vst.msk [vmem:[#allocation2] sm:$0xff] %vm219_vm0, %v4157_v63  ;;  %v3358_v55 = vrot.slane %v9268_v47, 1  ;;  %v5250_v52 = vsel %vm1445_vm2, %v5247_v32, %v5249_v62 }
 0x27c   :  { %v2408_v57 = vld [vmem:[#allocation2 + $0x170] sm:$0xff]  ;;  %v4039_v17 = vpop.f32.mrf.mxu2 }
 0x27d   :  { %2361 = vst.msk [vmem:[#allocation2 + $0x178] sm:$0xff] %vm219_vm0, %v2313_v19  ;;  %v3058_v8 = vadd.f32 %v9159_v26, %v2408_v57  ;;  %v4565_v26 = vsel %vm698_vm1, %v4560_v7, %v4564_v2  ;;  %v3359_v3 = vsel %vm1445_vm2, %v3356_v15, %v3358_v55  ;;  %v3113_v19 = vld [vmem:[#allocation2 + $0x28] sm:$0xff] }
 0x27e   :  { %v3496_v30 = vpop.f32.mrf.mxu1  ;;  %v9322_v57 = vld [vmem:[%s10255_s0 + $0x6c] sm:$0xff] }
 0x27f   :  { %v4785_v28 = vpop.f32.mrf.mxu3  ;;  %3106 = vst.msk [vmem:[#allocation2 + $0x170] sm:$0xff] %vm219_vm0, %v3058_v8  ;;  %v3613_v23 = vadd.f32 %v3496_v30, %v3110_v18  ;;  %v3360_v32 = vrot.slane %v9322_v57, 1 }
 0x280   :  { %v3708_v36 = vld [vmem:[#allocation2 + $0x8] sm:$0xff] }
 0x281   :  { %v4158_v31 = vadd.f32 %v4039_v17, %v3708_v36  ;;  %3661 = vst.msk [vmem:[#allocation2 + $0x10] sm:$0xff] %vm219_vm0, %v3613_v23  ;;  %6846 = vmatmul.msk.bf16.gmra.mxu1 %vm219_vm0, %v3357_v20  ;;  %6990 = vmatmul.msk.bf16.gmra.mxu2 %vm219_vm0, %v7470_v16  ;;  %v9253_v24 = vpop.f32.mrf.mxu0  ;;  %v4574_v17 = vshrl.u32 %v9260_v37, 16  ;;  %v9335_v36 = vld [vmem:[%s10255_s0 + $0x78] sm:$0xff] }
 0x282   :  { %v4253_v25 = vld [vmem:[#allocation2] sm:$0xff]  ;;  %v5251_v49 = vrot.slane %v9335_v36, 1 }
 0x283   :  { %v4903_v21 = vadd.f32 %v4783_v1, %v4253_v25  ;;  %4206 = vst.msk [vmem:[#allocation2 + $0x8] sm:$0xff] %vm219_vm0, %v4158_v31  ;;  %v4576_v23 = vor.u32 %v4574_v17, %v4572_v35  ;;  %v7473_v17 = vld [vmem:[%s10255_s0 + $0x78] sm:$0xff] }
 0x284   :  { %7134 = vmatmul.msk.bf16.gmra.mxu3 %vm219_vm0, %v4565_v26  ;;  %v2409_v39 = vld [vmem:[#allocation2 + $0x178] sm:$0xff]  ;;  %v4042_v41 = vpop.f32.mrf.mxu2  ;;  %7278 = vmatmul.msk.bf16.gmra.mxu0 %vm219_vm0, %v5248_v11 }
 0x285   :  { %4951 = vst.msk [vmem:[#allocation2] sm:$0xff] %vm219_vm0, %v4903_v21  ;;  %v3059_v13 = vadd.f32 %v9181_v40, %v2409_v39 }
 0x286   :  { %v3498_v46 = vpop.f32.mrf.mxu1 }
 0x287   :  { %v4788_v44 = vpop.f32.mrf.mxu3  ;;  %3107 = vst.msk [vmem:[#allocation2 + $0x178] sm:$0xff] %vm219_vm0, %v3059_v13  ;;  %v3614_v38 = vadd.f32 %v3498_v46, %v3111_v45  ;;  %v7472_v13 = vld [vmem:[%s10255_s0 + $0x70] sm:$0xff] }
 0x288   :  { %v3709_v22 = vld [vmem:[#allocation2 + $0x10] sm:$0xff] }
 0x289   :  { %v4159_v53 = vadd.f32 %v4042_v41, %v3709_v22  ;;  %3662 = vst.msk [vmem:[#allocation2 + $0x18] sm:$0xff] %vm219_vm0, %v3614_v38  ;;  %v9275_v5 = vpop.f32.mrf.mxu0  ;;  %v3114_v45 = vld [vmem:[#allocation2 + $0x30] sm:$0xff]  ;;  %v3361_v38 = vsel %vm1445_vm2, %v3358_v55, %v3360_v32 }
 0x28a   :  { %v4254_v40 = vld [vmem:[#allocation2 + $0x8] sm:$0xff] }
 0x28b   :  { %v4904_v33 = vadd.f32 %v4785_v28, %v4254_v40  ;;  %4207 = vst.msk [vmem:[#allocation2 + $0x10] sm:$0xff] %vm219_vm0, %v4159_v53 }
 0x28c   :  { %v4999_v48 = vld [vmem:[#allocation2] sm:$0xff]  ;;  %v4044_v29 = vpop.f32.mrf.mxu2 }
 0x28d   :  { %4952 = vst.msk [vmem:[#allocation2 + $0x8] sm:$0xff] %vm219_vm0, %v4904_v33  ;;  %v5502_v34 = vadd.f32 %v9206_v58, %v4999_v48  ;;  %v4573_v58 = vsel %vm698_vm1, %v4568_v56, %v4572_v35  ;;  %v5252_v35 = vsel %vm1445_vm2, %v5249_v62, %v5251_v49 }
 0x28e   :  { %v3501_v50 = vpop.f32.mrf.mxu1 }
 0x28f   :  { %v4790_v0 = vpop.f32.mrf.mxu3  ;;  %5550 = vst.msk [vmem:[#allocation2] sm:$0xff] %vm219_vm0, %v5502_v34  ;;  %v3615_v59 = vadd.f32 %v3501_v50, %v3112_v51 }
 0x290   :  { %v3710_v1 = vld [vmem:[#allocation2 + $0x18] sm:$0xff] }
 0x291   :  { %v4160_v10 = vadd.f32 %v4044_v29, %v3710_v1  ;;  %3663 = vst.msk [vmem:[#allocation2 + $0x20] sm:$0xff] %vm219_vm0, %v3615_v59  ;;  %6847 = vmatmul.msk.bf16.gmra.mxu1 %vm219_vm0, %v3359_v3  ;;  %6991 = vmatmul.msk.bf16.gmra.mxu2 %vm219_vm0, %v7471_v60  ;;  %v9300_v61 = vpop.f32.mrf.mxu0  ;;  %v9370_v60 = vld [vmem:[%s10255_s0 + $0x80] sm:$0xff]  ;;  %v3115_v3 = vld [vmem:[#allocation2 + $0x38] sm:$0xff]  ;;  %v4582_v1 = vshrl.u32 %v9314_v14, 16 }
 0x292   :  { %v4255_v43 = vld [vmem:[#allocation2 + $0x10] sm:$0xff] }
 0x293   :  { %v4905_v4 = vadd.f32 %v4788_v44, %v4255_v43  ;;  %4208 = vst.msk [vmem:[#allocation2 + $0x18] sm:$0xff] %vm219_vm0, %v4160_v10  ;;  %v9379_v59 = vld [vmem:[%s10255_s0 + $0x74] sm:$0xff]  ;;  %v4586_v10 = vshll.u32 %v9370_v60, 16 }
 0x294   :  { %7135 = vmatmul.msk.bf16.gmra.mxu3 %vm219_vm0, %v4573_v58  ;;  %v5000_v63 = vld [vmem:[#allocation2 + $0x8] sm:$0xff]  ;;  %v4047_v6 = vpop.f32.mrf.mxu2  ;;  %7279 = vmatmul.msk.bf16.gmra.mxu0 %vm219_vm0, %v5250_v52 }
 0x295   :  { %4953 = vst.msk [vmem:[#allocation2 + $0x10] sm:$0xff] %vm219_vm0, %v4905_v4  ;;  %v5503_v15 = vadd.f32 %v9228_v9, %v5000_v63  ;;  %v4578_v9 = vshll.u32 %v9314_v14, 16  ;;  %v3362_v4 = vrot.slane %v9379_v59, 1 }
 0x296   :  { %v3503_v7 = vpop.f32.mrf.mxu1  ;;  %v5598_v2 = vld [vmem:[#allocation2] sm:$0xff] }
 0x297   :  { %v4793_v54 = vpop.f32.mrf.mxu3  ;;  %5551 = vst.msk [vmem:[#allocation2 + $0x8] sm:$0xff] %vm219_vm0, %v5503_v15  ;;  %v3616_v8 = vadd.f32 %v3503_v7, %v3113_v19  ;;  %v5634_v16 = vadd.f32 %v9309_v12, %v5598_v2  ;;  %v4580_v21 = vrot.slane %v4578_v9, 1 }
 0x298   :  { %v3711_v28 = vld [vmem:[#allocation2 + $0x20] sm:$0xff] }
 0x299   :  { %v4161_v18 = vadd.f32 %v4047_v6, %v3711_v28  ;;  %3664 = vst.msk [vmem:[#allocation2 + $0x28] sm:$0xff] %vm219_vm0, %v3616_v8  ;;  %v5666_v30 = vmax.f32 %v5634_v16, 0.0  ;;  %v9330_v26 = vpop.f32.mrf.mxu0  ;;  %v4581_v53 = vsel %vm698_vm1, %v4576_v23, %v4580_v21  ;;  %v9391_v6 = vld [vmem:[%s10255_s0 + $0x80] sm:$0xff]  ;;  %v4584_v14 = vor.u32 %v4582_v1, %v4580_v21 }
 0x29a   :  { %v4256_v20 = vld [vmem:[#allocation2 + $0x18] sm:$0xff]  ;;  %v3116_v16 = vld [vmem:[#allocation2 + $0x40] sm:$0xff]  ;;  %v3363_v28 = vsel %vm1445_vm2, %v3360_v32, %v3362_v4 }
 0x29b   :  { %v4906_v31 = vadd.f32 %v4790_v0, %v4256_v20  ;;  %4209 = vst.msk [vmem:[#allocation2 + $0x20] sm:$0xff] %vm219_vm0, %v4161_v18  ;;  %v5763_v25 = vsel %vm219_vm0, %v5666_v30, 0.0  ;;  %v5698_v11 = vpack.c.bf16 %v5666_v30, %v5666_v30  ;;  %v5253_v30 = vrot.slane %v9391_v6, 1  ;;  %v7474_v1 = vld [vmem:[%s10255_s0 + $0x80] sm:$0xff]  ;;  %v3119_v6 = vld [vmem:[#allocation2 + $0x58] sm:$0xff] }
 0x29c   :  { %v5001_v37 = vld [vmem:[#allocation2 + $0x10] sm:$0xff]  ;;  %v4049_v39 = vpop.f32.mrf.mxu2  ;;  %5764 = vadd.xlane.f32.xlu0 %v5763_v25 }
 0x29d   :  { %4954 = vst.msk [vmem:[#allocation2 + $0x18] sm:$0xff] %vm219_vm0, %v4906_v31  ;;  %v5504_v41 = vadd.f32 %v9253_v24, %v5001_v37  ;;  %v5254_v21 = vsel %vm1445_vm2, %v5251_v49, %v5253_v30 }
 0x29e   :  { %5731 = vst.msk [vmem:[#allocation3] sm:$0xf] %vm5730_vm3, %v5698_v11  ;;  %v3506_v46 = vpop.f32.mrf.mxu1  ;;  %v5599_v27 = vld [vmem:[#allocation2 + $0x8] sm:$0xff] }
 0x29f   :  { %v4795_v44 = vpop.f32.mrf.mxu3  ;;  %5552 = vst.msk [vmem:[#allocation2 + $0x10] sm:$0xff] %vm219_vm0, %v5504_v41  ;;  %v3617_v24 = vadd.f32 %v3506_v46, %v3114_v45  ;;  %v5635_v22 = vadd.f32 %v9309_v12, %v5599_v27 }
 0x2a0   :  { %v3712_v40 = vld [vmem:[#allocation2 + $0x28] sm:$0xff] }
 0x2a1   :  { %v4162_v33 = vadd.f32 %v4049_v39, %v3712_v40  ;;  %3665 = vst.msk [vmem:[#allocation2 + $0x30] sm:$0xff] %vm219_vm0, %v3617_v24  ;;  %6848 = vmatmul.msk.bf16.gmra.mxu1 %vm219_vm0, %v3361_v38  ;;  %6992 = vmatmul.msk.bf16.gmra.mxu2 %vm219_vm0, %v7472_v13  ;;  %v5667_v47 = vmax.f32 %v5635_v22, 0.0  ;;  %v9358_v56 = vpop.f32.mrf.mxu0  ;;  %v9424_v13 = vld [vmem:[%s10255_s0 + $0x88] sm:$0xff]  ;;  %v9433_v24 = vld [vmem:[%s10255_s0 + $0x7c] sm:$0xff]  ;;  %v4590_v22 = vshrl.u32 %v9370_v60, 16 }
 0x2a2   :  { %v4257_v55 = vld [vmem:[#allocation2 + $0x20] sm:$0xff]  ;;  %v3117_v38 = vld [vmem:[#allocation2 + $0x48] sm:$0xff]  ;;  %v4594_v40 = vshll.u32 %v9424_v13, 16 }
 0x2a3   :  { %v4907_v48 = vadd.f32 %v4793_v54, %v4257_v55  ;;  %4210 = vst.msk [vmem:[#allocation2 + $0x28] sm:$0xff] %vm219_vm0, %v4162_v33  ;;  %v5766_v29 = vsel %vm219_vm0, %v5667_v47, 0.0  ;;  %v5699_v34 = vpack.c.bf16 %v5667_v47, %v5667_v47  ;;  %v4588_v54 = vrot.slane %v4586_v10, 1  ;;  %v9446_v60 = vld [vmem:[%s10255_s0 + $0x88] sm:$0xff] }
 0x2a4   :  { %7136 = vmatmul.msk.bf16.gmra.mxu3 %vm219_vm0, %v4581_v53  ;;  %v5002_v0 = vld [vmem:[#allocation2 + $0x18] sm:$0xff]  ;;  %v4052_v51 = vpop.f32.mrf.mxu2  ;;  %5767 = vadd.xlane.f32.xlu0 %v5766_v29 }
 0x2a5   :  { %4955 = vst.msk [vmem:[#allocation2 + $0x20] sm:$0xff] %vm219_vm0, %v4907_v48  ;;  %v5505_v42 = vadd.f32 %v9275_v5, %v5002_v0  ;;  %7280 = vmatmul.msk.bf16.gmra.mxu0 %vm219_vm0, %v5252_v35  ;;  %v4589_v23 = vsel %vm698_vm1, %v4584_v14, %v4588_v54  ;;  %v3364_v48 = vrot.slane %v9433_v24, 1  ;;  %v4592_v29 = vor.u32 %v4590_v22, %v4588_v54  ;;  %v7475_v22 = vld [vmem:[%s10255_s0 + $0x88] sm:$0xff] }
 0x2a6   :  { %5732 = vst.msk [vmem:[#allocation3 + $0x4] sm:$0xf] %vm5730_vm3, %v5699_v34  ;;  %v3508_v62 = vpop.f32.mrf.mxu1 }
 0x2a7   :  { %v4798_v50 = vpop.f32.mrf.mxu3  ;;  %5553 = vst.msk [vmem:[#allocation2 + $0x18] sm:$0xff] %vm219_vm0, %v5505_v42  ;;  %v3618_v58 = vadd.f32 %v3508_v62, %v3115_v3 }
 0x2a8   :  { %v3713_v5 = vld [vmem:[#allocation2 + $0x30] sm:$0xff] }
 0x2a9   :  { %v4163_v43 = vadd.f32 %v4052_v51, %v3713_v5  ;;  %3666 = vst.msk [vmem:[#allocation2 + $0x38] sm:$0xff] %vm219_vm0, %v3618_v58  ;;  %v9386_v63 = vpop.f32.mrf.mxu0  ;;  %v3118_v5 = vld [vmem:[#allocation2 + $0x50] sm:$0xff] }
 0x2aa   :  { %v4258_v52 = vld [vmem:[#allocation2 + $0x28] sm:$0xff] }
 0x2ab   :  { %v4908_v15 = vadd.f32 %v4795_v44, %v4258_v52  ;;  %4211 = vst.msk [vmem:[#allocation2 + $0x30] sm:$0xff] %vm219_vm0, %v4163_v43  ;;  %v3365_v52 = vsel %vm1445_vm2, %v3362_v4, %v3364_v48 }
 0x2ac   :  { %v5003_v19 = vld [vmem:[#allocation2 + $0x20] sm:$0xff]  ;;  %v4054_v7 = vpop.f32.mrf.mxu2 }
 0x2ad   :  { %4956 = vst.msk [vmem:[#allocation2 + $0x28] sm:$0xff] %vm219_vm0, %v4908_v15  ;;  %v5506_v2 = vadd.f32 %v9300_v61, %v5003_v19  ;;  %v5255_v15 = vrot.slane %v9446_v60, 1 }
 0x2ae   :  { %v3511_v9 = vpop.f32.mrf.mxu1  ;;  %v5600_v18 = vld [vmem:[#allocation2 + $0x18] sm:$0xff] }
 0x2af   :  { %v4800_v8 = vpop.f32.mrf.mxu3  ;;  %5554 = vst.msk [vmem:[#allocation2 + $0x20] sm:$0xff] %vm219_vm0, %v5506_v2  ;;  %v3619_v20 = vadd.f32 %v3511_v9, %v3116_v16  ;;  %v5636_v61 = vadd.f32 %v9309_v12, %v5600_v18  ;;  %v5256_v4 = vsel %vm1445_vm2, %v5253_v30, %v5255_v15 }
 0x2b0   :  { %v3714_v31 = vld [vmem:[#allocation2 + $0x38] sm:$0xff] }
 0x2b1   :  { %v4164_v25 = vadd.f32 %v4054_v7, %v3714_v31  ;;  %3667 = vst.msk [vmem:[#allocation2 + $0x40] sm:$0xff] %vm219_vm0, %v3619_v20  ;;  %6849 = vmatmul.msk.bf16.gmra.mxu1 %vm219_vm0, %v3363_v28  ;;  %6993 = vmatmul.msk.bf16.gmra.mxu2 %vm219_vm0, %v7473_v17  ;;  %v5668_v57 = vmax.f32 %v5636_v61, 0.0  ;;  %v9412_v11 = vpop.f32.mrf.mxu0  ;;  %v9479_v17 = vld [vmem:[%s10255_s0 + $0x90] sm:$0xff]  ;;  %v9487_v20 = vld [vmem:[%s10255_s0 + $0x84] sm:$0xff]  ;;  %v4598_v61 = vshrl.u32 %v9424_v13, 16 }
 0x2b2   :  { %v4259_v32 = vld [vmem:[#allocation2 + $0x30] sm:$0xff] }
 0x2b3   :  { %v4909_v37 = vadd.f32 %v4798_v50, %v4259_v32  ;;  %4212 = vst.msk [vmem:[#allocation2 + $0x38] sm:$0xff] %vm219_vm0, %v4164_v25  ;;  %v5769_v39 = vsel %vm219_vm0, %v5668_v57, 0.0  ;;  %v5700_v41 = vpack.c.bf16 %v5668_v57, %v5668_v57  ;;  %v4596_v50 = vrot.slane %v4594_v40, 1  ;;  %v9500_v13 = vld [vmem:[%s10255_s0 + $0x90] sm:$0xff] }
 0x2b4   :  { %7137 = vmatmul.msk.bf16.gmra.mxu3 %vm219_vm0, %v4589_v23  ;;  %v5004_v44 = vld [vmem:[#allocation2 + $0x28] sm:$0xff]  ;;  %v4057_v45 = vpop.f32.mrf.mxu2  ;;  %5770 = vadd.xlane.f32.xlu1 %v5769_v39 }
 0x2b5   :  { %4957 = vst.msk [vmem:[#allocation2 + $0x30] sm:$0xff] %vm219_vm0, %v4909_v37  ;;  %v5507_v36 = vadd.f32 %v9330_v26, %v5004_v44  ;;  %7281 = vmatmul.msk.bf16.gmra.mxu0 %vm219_vm0, %v5254_v21  ;;  %v4597_v14 = vsel %vm698_vm1, %v4592_v29, %v4596_v50  ;;  %v3366_v37 = vrot.slane %v9487_v20, 1  ;;  %v4600_v39 = vor.u32 %v4598_v61, %v4596_v50  ;;  %v7476_v61 = vld [vmem:[%s10255_s0 + $0x90] sm:$0xff] }
 0x2b6   :  { %5733 = vst.msk [vmem:[#allocation3 + $0x8] sm:$0xf] %vm5730_vm3, %v5700_v41  ;;  %v3513_v27 = vpop.f32.mrf.mxu1  ;;  %v5601_v49 = vld [vmem:[#allocation2 + $0x20] sm:$0xff] }
 0x2b7   :  { %v4803_v46 = vpop.f32.mrf.mxu3  ;;  %5555 = vst.msk [vmem:[#allocation2 + $0x28] sm:$0xff] %vm219_vm0, %v5507_v36  ;;  %v3620_v53 = vadd.f32 %v3513_v27, %v3117_v38  ;;  %v5637_v26 = vadd.f32 %v9309_v12, %v5601_v49 }
 0x2b8   :  { %v3715_v33 = vld [vmem:[#allocation2 + $0x40] sm:$0xff] }
 0x2b9   :  { %v4165_v47 = vadd.f32 %v4057_v45, %v3715_v33  ;;  %3668 = vst.msk [vmem:[#allocation2 + $0x48] sm:$0xff] %vm219_vm0, %v3620_v53  ;;  %v5669_v55 = vmax.f32 %v5637_v26, 0.0  ;;  %v9441_v34 = vpop.f32.mrf.mxu0  ;;  %v3120_v26 = vld [vmem:[#allocation2 + $0x60] sm:$0xff]  ;;  %v3367_v33 = vsel %vm1445_vm2, %v3364_v48, %v3366_v37 }
 0x2ba   :  { %v4260_v35 = vld [vmem:[#allocation2 + $0x38] sm:$0xff] }
 0x2bb   :  { %v4910_v0 = vadd.f32 %v4800_v8, %v4260_v35  ;;  %4213 = vst.msk [vmem:[#allocation2 + $0x40] sm:$0xff] %vm219_vm0, %v4165_v47  ;;  %v5772_v51 = vsel %vm219_vm0, %v5669_v55, 0.0  ;;  %v5701_v42 = vpack.c.bf16 %v5669_v55, %v5669_v55  ;;  %v5257_v55 = vrot.slane %v9500_v13, 1 }
 0x2bc   :  { %v5005_v3 = vld [vmem:[#allocation2 + $0x30] sm:$0xff]  ;;  %v4059_v62 = vpop.f32.mrf.mxu2  ;;  %5773 = vadd.xlane.f32.xlu1 %v5772_v51 }
 0x2bd   :  { %4958 = vst.msk [vmem:[#allocation2 + $0x38] sm:$0xff] %vm219_vm0, %v4910_v0  ;;  %v5508_v58 = vadd.f32 %v9358_v56, %v5005_v3  ;;  %v5258_v50 = vsel %vm1445_vm2, %v5255_v15, %v5257_v55 }
 0x2be   :  { %5734 = vst.msk [vmem:[#allocation3 + $0xc] sm:$0xf] %vm5730_vm3, %v5701_v42  ;;  %v3516_v43 = vpop.f32.mrf.mxu1 }
 0x2bf   :  { %v4805_v10 = vpop.f32.mrf.mxu3  ;;  %5556 = vst.msk [vmem:[#allocation2 + $0x30] sm:$0xff] %vm219_vm0, %v5508_v58  ;;  %v3621_v56 = vadd.f32 %v3516_v43, %v3118_v5 }
 0x2c0   :  { %v3716_v54 = vld [vmem:[#allocation2 + $0x48] sm:$0xff] }
 0x2c1   :  { %v4166_v19 = vadd.f32 %v4059_v62, %v3716_v54  ;;  %3669 = vst.msk [vmem:[#allocation2 + $0x50] sm:$0xff] %vm219_vm0, %v3621_v56  ;;  %6850 = vmatmul.msk.bf16.gmra.mxu1 %vm219_vm0, %v3365_v52  ;;  %6994 = vmatmul.msk.bf16.gmra.mxu2 %vm219_vm0, %v7474_v1  ;;  %v9468_v59 = vpop.f32.mrf.mxu0  ;;  %v9535_v1 = vld [vmem:[%s10255_s0 + $0x98] sm:$0xff]  ;;  %v3121_v52 = vld [vmem:[#allocation2 + $0x68] sm:$0xff]  ;;  %v4606_v54 = vshrl.u32 %v9479_v17, 16 }
 0x2c2   :  { %v4261_v7 = vld [vmem:[#allocation2 + $0x40] sm:$0xff]  ;;  %v9544_v56 = vld [vmem:[%s10255_s0 + $0x8c] sm:$0xff] }
 0x2c3   :  { %v4911_v2 = vadd.f32 %v4803_v46, %v4261_v7  ;;  %4214 = vst.msk [vmem:[#allocation2 + $0x48] sm:$0xff] %vm219_vm0, %v4166_v19  ;;  %v4610_v19 = vshll.u32 %v9535_v1, 16 }
 0x2c4   :  { %7138 = vmatmul.msk.bf16.gmra.mxu3 %vm219_vm0, %v4597_v14  ;;  %v5006_v8 = vld [vmem:[#allocation2 + $0x38] sm:$0xff]  ;;  %v4062_v16 = vpop.f32.mrf.mxu2 }
 0x2c5   :  { %4959 = vst.msk [vmem:[#allocation2 + $0x40] sm:$0xff] %vm219_vm0, %v4911_v2  ;;  %v5509_v9 = vadd.f32 %v9386_v63, %v5006_v8  ;;  %7282 = vmatmul.msk.bf16.gmra.mxu0 %vm219_vm0, %v5256_v4  ;;  %v4602_v63 = vshll.u32 %v9479_v17, 16  ;;  %v3368_v2 = vrot.slane %v9544_v56, 1 }
 0x2c6   :  { %v3518_v18 = vpop.f32.mrf.mxu1  ;;  %v5602_v30 = vld [vmem:[#allocation2 + $0x30] sm:$0xff] }
 0x2c7   :  { %v4808_v28 = vpop.f32.mrf.mxu3  ;;  %5557 = vst.msk [vmem:[#allocation2 + $0x38] sm:$0xff] %vm219_vm0, %v5509_v9  ;;  %v3622_v23 = vadd.f32 %v3518_v18, %v3119_v6  ;;  %v5638_v31 = vadd.f32 %v9309_v12, %v5602_v30  ;;  %v4604_v46 = vrot.slane %v4602_v63, 1 }
 0x2c8   :  { %v3717_v25 = vld [vmem:[#allocation2 + $0x50] sm:$0xff] }
 0x2c9   :  { %v4167_v57 = vadd.f32 %v4062_v16, %v3717_v25  ;;  %3670 = vst.msk [vmem:[#allocation2 + $0x58] sm:$0xff] %vm219_vm0, %v3622_v23  ;;  %v5670_v32 = vmax.f32 %v5638_v31, 0.0  ;;  %v9495_v41 = vpop.f32.mrf.mxu0  ;;  %v4605_v29 = vsel %vm698_vm1, %v4600_v39, %v4604_v46  ;;  %v9556_v16 = vld [vmem:[%s10255_s0 + $0x98] sm:$0xff]  ;;  %v4608_v17 = vor.u32 %v4606_v54, %v4604_v46  ;;  %v3122_v31 = vld [vmem:[#allocation2 + $0x70] sm:$0xff] }
 0x2ca   :  { %v4262_v21 = vld [vmem:[#allocation2 + $0x48] sm:$0xff]  ;;  %v3369_v25 = vsel %vm1445_vm2, %v3366_v37, %v3368_v2  ;;  %v7477_v54 = vld [vmem:[%s10255_s0 + $0x98] sm:$0xff] }
 0x2cb   :  { %v4912_v44 = vadd.f32 %v4805_v10, %v4262_v21  ;;  %4215 = vst.msk [vmem:[#allocation2 + $0x50] sm:$0xff] %vm219_vm0, %v4167_v57  ;;  %v5775_v45 = vsel %vm219_vm0, %v5670_v32, 0.0  ;;  %v5702_v36 = vpack.c.bf16 %v5670_v32, %v5670_v32  ;;  %v5259_v32 = vrot.slane %v9556_v16, 1  ;;  %v3125_v16 = vld [vmem:[#allocation2 + $0x88] sm:$0xff] }
 0x2cc   :  { %v5007_v38 = vld [vmem:[#allocation2 + $0x40] sm:$0xff]  ;;  %v4064_v27 = vpop.f32.mrf.mxu2  ;;  %5776 = vadd.xlane.f32.xlu2 %v5775_v45 }
 0x2cd   :  { %4960 = vst.msk [vmem:[#allocation2 + $0x48] sm:$0xff] %vm219_vm0, %v4912_v44  ;;  %v5510_v49 = vadd.f32 %v9412_v11, %v5007_v38  ;;  %v5260_v46 = vsel %vm1445_vm2, %v5257_v55, %v5259_v32 }
 0x2ce   :  { %5735 = vst.msk [vmem:[#allocation3 + $0x10] sm:$0xf] %vm5730_vm3, %v5702_v36  ;;  %v3521_v40 = vpop.f32.mrf.mxu1  ;;  %v5603_v47 = vld [vmem:[#allocation2 + $0x38] sm:$0xff] }
 0x2cf   :  { %v4810_v53 = vpop.f32.mrf.mxu3  ;;  %5558 = vst.msk [vmem:[#allocation2 + $0x40] sm:$0xff] %vm219_vm0, %v5510_v49  ;;  %v3623_v11 = vadd.f32 %v3521_v40, %v3120_v26  ;;  %v5639_v35 = vadd.f32 %v9309_v12, %v5603_v47 }
 0x2d0   :  { %v3718_v0 = vld [vmem:[#allocation2 + $0x58] sm:$0xff] }
 0x2d1   :  { %v4168_v51 = vadd.f32 %v4064_v27, %v3718_v0  ;;  %3671 = vst.msk [vmem:[#allocation2 + $0x60] sm:$0xff] %vm219_vm0, %v3623_v11  ;;  %6851 = vmatmul.msk.bf16.gmra.mxu1 %vm219_vm0, %v3367_v33  ;;  %6995 = vmatmul.msk.bf16.gmra.mxu2 %vm219_vm0, %v7475_v22  ;;  %v5671_v24 = vmax.f32 %v5639_v35, 0.0  ;;  %v9523_v42 = vpop.f32.mrf.mxu0  ;;  %v9589_v22 = vld [vmem:[%s10255_s0 + $0xa0] sm:$0xff]  ;;  %v3123_v33 = vld [vmem:[#allocation2 + $0x78] sm:$0xff]  ;;  %v4614_v35 = vshrl.u32 %v9535_v1, 16 }
 0x2d2   :  { %v4263_v48 = vld [vmem:[#allocation2 + $0x50] sm:$0xff]  ;;  %v4618_v0 = vshll.u32 %v9589_v22, 16  ;;  %v9611_v1 = vld [vmem:[%s10255_s0 + $0xa0] sm:$0xff] }
 0x2d3   :  { %v4913_v3 = vadd.f32 %v4808_v28, %v4263_v48  ;;  %4216 = vst.msk [vmem:[#allocation2 + $0x58] sm:$0xff] %vm219_vm0, %v4168_v51  ;;  %v5778_v62 = vsel %vm219_vm0, %v5671_v24, 0.0  ;;  %v5703_v58 = vpack.c.bf16 %v5671_v24, %v5671_v24  ;;  %v4612_v28 = vrot.slane %v4610_v19, 1  ;;  %v9598_v11 = vld [vmem:[%s10255_s0 + $0x94] sm:$0xff] }
 0x2d4   :  { %7139 = vmatmul.msk.bf16.gmra.mxu3 %vm219_vm0, %v4605_v29  ;;  %v5008_v10 = vld [vmem:[#allocation2 + $0x48] sm:$0xff]  ;;  %v4067_v5 = vpop.f32.mrf.mxu2  ;;  %5779 = vadd.xlane.f32.xlu2 %v5778_v62 }
 0x2d5   :  { %4961 = vst.msk [vmem:[#allocation2 + $0x50] sm:$0xff] %vm219_vm0, %v4913_v3  ;;  %v5511_v60 = vadd.f32 %v9441_v34, %v5008_v10  ;;  %7283 = vmatmul.msk.bf16.gmra.mxu0 %vm219_vm0, %v5258_v50  ;;  %v4613_v39 = vsel %vm698_vm1, %v4608_v17, %v4612_v28  ;;  %v3370_v3 = vrot.slane %v9598_v11, 1  ;;  %v4616_v62 = vor.u32 %v4614_v35, %v4612_v28  ;;  %v7478_v35 = vld [vmem:[%s10255_s0 + $0xa0] sm:$0xff] }
 0x2d6   :  { %5736 = vst.msk [vmem:[#allocation3 + $0x14] sm:$0xf] %vm5730_vm3, %v5703_v58  ;;  %v3523_v15 = vpop.f32.mrf.mxu1 }
 0x2d7   :  { %v4813_v43 = vpop.f32.mrf.mxu3  ;;  %5559 = vst.msk [vmem:[#allocation2 + $0x48] sm:$0xff] %vm219_vm0, %v5511_v60  ;;  %v3624_v14 = vadd.f32 %v3523_v15, %v3121_v52 }
 0x2d8   :  { %v3719_v34 = vld [vmem:[#allocation2 + $0x60] sm:$0xff] }
 0x2d9   :  { %v4169_v7 = vadd.f32 %v4067_v5, %v3719_v34  ;;  %3672 = vst.msk [vmem:[#allocation2 + $0x68] sm:$0xff] %vm219_vm0, %v3624_v14  ;;  %v9551_v8 = vpop.f32.mrf.mxu0  ;;  %v3124_v34 = vld [vmem:[#allocation2 + $0x80] sm:$0xff] }
 0x2da   :  { %v4264_v4 = vld [vmem:[#allocation2 + $0x58] sm:$0xff] }
 0x2db   :  { %v4914_v9 = vadd.f32 %v4810_v53, %v4264_v4  ;;  %4217 = vst.msk [vmem:[#allocation2 + $0x60] sm:$0xff] %vm219_vm0, %v4169_v7  ;;  %v3371_v4 = vsel %vm1445_vm2, %v3368_v2, %v3370_v3 }
 0x2dc   :  { %v5009_v6 = vld [vmem:[#allocation2 + $0x50] sm:$0xff]  ;;  %v4069_v18 = vpop.f32.mrf.mxu2 }
 0x2dd   :  { %4962 = vst.msk [vmem:[#allocation2 + $0x58] sm:$0xff] %vm219_vm0, %v4914_v9  ;;  %v5512_v30 = vadd.f32 %v9468_v59, %v5009_v6  ;;  %v5261_v9 = vrot.slane %v9611_v1, 1 }
 0x2de   :  { %v3526_v63 = vpop.f32.mrf.mxu1  ;;  %v5604_v57 = vld [vmem:[#allocation2 + $0x48] sm:$0xff] }
 0x2df   :  { %v4815_v23 = vpop.f32.mrf.mxu3  ;;  %5560 = vst.msk [vmem:[#allocation2 + $0x50] sm:$0xff] %vm219_vm0, %v5512_v30  ;;  %v3625_v21 = vadd.f32 %v3526_v63, %v3122_v31  ;;  %v5640_v59 = vadd.f32 %v9309_v12, %v5604_v57  ;;  %v5262_v2 = vsel %vm1445_vm2, %v5259_v32, %v5261_v9 }
 0x2e0   :  { %v3720_v44 = vld [vmem:[#allocation2 + $0x68] sm:$0xff] }
 0x2e1   :  { %v4170_v45 = vadd.f32 %v4069_v18, %v3720_v44  ;;  %3673 = vst.msk [vmem:[#allocation2 + $0x70] sm:$0xff] %vm219_vm0, %v3625_v21  ;;  %6852 = vmatmul.msk.bf16.gmra.mxu1 %vm219_vm0, %v3369_v25  ;;  %6996 = vmatmul.msk.bf16.gmra.mxu2 %vm219_vm0, %v7476_v61  ;;  %v5672_v20 = vmax.f32 %v5640_v59, 0.0  ;;  %v9577_v36 = vpop.f32.mrf.mxu0  ;;  %v9644_v61 = vld [vmem:[%s10255_s0 + $0xa8] sm:$0xff]  ;;  %v9652_v21 = vld [vmem:[%s10255_s0 + $0x9c] sm:$0xff]  ;;  %v4622_v59 = vshrl.u32 %v9589_v22, 16 }
 0x2e2   :  { %v4265_v37 = vld [vmem:[#allocation2 + $0x60] sm:$0xff]  ;;  %v9665_v22 = vld [vmem:[%s10255_s0 + $0xa8] sm:$0xff] }
 0x2e3   :  { %v4915_v38 = vadd.f32 %v4813_v43, %v4265_v37  ;;  %4218 = vst.msk [vmem:[#allocation2 + $0x68] sm:$0xff] %vm219_vm0, %v4170_v45  ;;  %v5781_v27 = vsel %vm219_vm0, %v5672_v20, 0.0  ;;  %v5704_v49 = vpack.c.bf16 %v5672_v20, %v5672_v20  ;;  %v4620_v43 = vrot.slane %v4618_v0, 1 }
 0x2e4   :  { %7140 = vmatmul.msk.bf16.gmra.mxu3 %vm219_vm0, %v4613_v39  ;;  %v5010_v53 = vld [vmem:[#allocation2 + $0x58] sm:$0xff]  ;;  %v4072_v26 = vpop.f32.mrf.mxu2  ;;  %5782 = vadd.xlane.f32.xlu0 %v5781_v27 }
 0x2e5   :  { %4963 = vst.msk [vmem:[#allocation2 + $0x60] sm:$0xff] %vm219_vm0, %v4915_v38  ;;  %v5513_v13 = vadd.f32 %v9495_v41, %v5010_v53  ;;  %7284 = vmatmul.msk.bf16.gmra.mxu0 %vm219_vm0, %v5260_v46  ;;  %v4621_v17 = vsel %vm698_vm1, %v4616_v62, %v4620_v43  ;;  %v3372_v38 = vrot.slane %v9652_v21, 1  ;;  %v4624_v27 = vor.u32 %v4622_v59, %v4620_v43  ;;  %v7479_v59 = vld [vmem:[%s10255_s0 + $0xa8] sm:$0xff] }
 0x2e6   :  { %5737 = vst.msk [vmem:[#allocation3 + $0x18] sm:$0xf] %vm5730_vm3, %v5704_v49  ;;  %v3528_v47 = vpop.f32.mrf.mxu1  ;;  %v5605_v55 = vld [vmem:[#allocation2 + $0x50] sm:$0xff] }
 0x2e7   :  { %v4818_v40 = vpop.f32.mrf.mxu3  ;;  %5561 = vst.msk [vmem:[#allocation2 + $0x58] sm:$0xff] %vm219_vm0, %v5513_v13  ;;  %v3626_v29 = vadd.f32 %v3528_v47, %v3123_v33  ;;  %v5641_v41 = vadd.f32 %v9309_v12, %v5605_v55 }
 0x2e8   :  { %v3721_v51 = vld [vmem:[#allocation2 + $0x70] sm:$0xff] }
 0x2e9   :  { %v4171_v24 = vadd.f32 %v4072_v26, %v3721_v51  ;;  %3674 = vst.msk [vmem:[#allocation2 + $0x78] sm:$0xff] %vm219_vm0, %v3626_v29  ;;  %v5673_v48 = vmax.f32 %v5641_v41, 0.0  ;;  %v9606_v58 = vpop.f32.mrf.mxu0  ;;  %v3126_v41 = vld [vmem:[#allocation2 + $0x90] sm:$0xff]  ;;  %v3373_v51 = vsel %vm1445_vm2, %v3370_v3, %v3372_v38 }
 0x2ea   :  { %v4266_v50 = vld [vmem:[#allocation2 + $0x68] sm:$0xff] }
 0x2eb   :  { %v4916_v10 = vadd.f32 %v4815_v23, %v4266_v50  ;;  %4219 = vst.msk [vmem:[#allocation2 + $0x70] sm:$0xff] %vm219_vm0, %v4171_v24  ;;  %v5784_v5 = vsel %vm219_vm0, %v5673_v48, 0.0  ;;  %v5705_v60 = vpack.c.bf16 %v5673_v48, %v5673_v48  ;;  %v5263_v48 = vrot.slane %v9665_v22, 1 }
 0x2ec   :  { %v5011_v52 = vld [vmem:[#allocation2 + $0x60] sm:$0xff]  ;;  %v4074_v15 = vpop.f32.mrf.mxu2  ;;  %5785 = vadd.xlane.f32.xlu1 %v5784_v5 }
 0x2ed   :  { %4964 = vst.msk [vmem:[#allocation2 + $0x68] sm:$0xff] %vm219_vm0, %v4916_v10  ;;  %v5514_v14 = vadd.f32 %v9523_v42, %v5011_v52  ;;  %v5264_v43 = vsel %vm1445_vm2, %v5261_v9, %v5263_v48 }
 0x2ee   :  { %5738 = vst.msk [vmem:[#allocation3 + $0x1c] sm:$0xf] %vm5730_vm3, %v5705_v60  ;;  %v3531_v7 = vpop.f32.mrf.mxu1 }
 0x2ef   :  { %v4820_v19 = vpop.f32.mrf.mxu3  ;;  %5562 = vst.msk [vmem:[#allocation2 + $0x60] sm:$0xff] %vm219_vm0, %v5514_v14  ;;  %v3627_v42 = vadd.f32 %v3531_v7, %v3124_v34 }
 0x2f0   :  { %v3722_v28 = vld [vmem:[#allocation2 + $0x78] sm:$0xff] }
 0x2f1   :  { %v4172_v6 = vadd.f32 %v4074_v15, %v3722_v28  ;;  %3675 = vst.msk [vmem:[#allocation2 + $0x80] sm:$0xff] %vm219_vm0, %v3627_v42  ;;  %6853 = vmatmul.msk.bf16.gmra.mxu1 %vm219_vm0, %v3371_v4  ;;  %6997 = vmatmul.msk.bf16.gmra.mxu2 %vm219_vm0, %v7477_v54  ;;  %v9633_v56 = vpop.f32.mrf.mxu0  ;;  %v9700_v54 = vld [vmem:[%s10255_s0 + $0xb0] sm:$0xff]  ;;  %v3127_v4 = vld [vmem:[#allocation2 + $0x98] sm:$0xff]  ;;  %v9709_v42 = vld [vmem:[%s10255_s0 + $0xa4] sm:$0xff]  ;;  %v4630_v28 = vshrl.u32 %v9644_v61, 16 }
 0x2f2   :  { %v4267_v18 = vld [vmem:[#allocation2 + $0x70] sm:$0xff] }
 0x2f3   :  { %v4917_v30 = vadd.f32 %v4818_v40, %v4267_v18  ;;  %4220 = vst.msk [vmem:[#allocation2 + $0x78] sm:$0xff] %vm219_vm0, %v4172_v6  ;;  %v4634_v6 = vshll.u32 %v9700_v54, 16 }
 0x2f4   :  { %7141 = vmatmul.msk.bf16.gmra.mxu3 %vm219_vm0, %v4621_v17  ;;  %v5012_v23 = vld [vmem:[#allocation2 + $0x68] sm:$0xff]  ;;  %v4077_v31 = vpop.f32.mrf.mxu2 }
 0x2f5   :  { %4965 = vst.msk [vmem:[#allocation2 + $0x70] sm:$0xff] %vm219_vm0, %v4917_v30  ;;  %v5515_v63 = vadd.f32 %v9551_v8, %v5012_v23  ;;  %7285 = vmatmul.msk.bf16.gmra.mxu0 %vm219_vm0, %v5262_v2  ;;  %v4626_v8 = vshll.u32 %v9644_v61, 16  ;;  %v3374_v30 = vrot.slane %v9709_v42, 1 }
 0x2f6   :  { %v3533_v57 = vpop.f32.mrf.mxu1  ;;  %v5606_v32 = vld [vmem:[#allocation2 + $0x60] sm:$0xff] }
 0x2f7   :  { %v4823_v25 = vpop.f32.mrf.mxu3  ;;  %5563 = vst.msk [vmem:[#allocation2 + $0x68] sm:$0xff] %vm219_vm0, %v5515_v63  ;;  %v3628_v39 = vadd.f32 %v3533_v57, %v3125_v16  ;;  %v5642_v44 = vadd.f32 %v9309_v12, %v5606_v32  ;;  %v4628_v40 = vrot.slane %v4626_v8, 1 }
 0x2f8   :  { %v3723_v45 = vld [vmem:[#allocation2 + $0x80] sm:$0xff] }
 0x2f9   :  { %v4173_v20 = vadd.f32 %v4077_v31, %v3723_v45  ;;  %3676 = vst.msk [vmem:[#allocation2 + $0x88] sm:$0xff] %vm219_vm0, %v3628_v39  ;;  %v5674_v37 = vmax.f32 %v5642_v44, 0.0  ;;  %v9660_v49 = vpop.f32.mrf.mxu0  ;;  %v4629_v62 = vsel %vm698_vm1, %v4624_v27, %v4628_v40  ;;  %v9721_v31 = vld [vmem:[%s10255_s0 + $0xb0] sm:$0xff]  ;;  %v4632_v61 = vor.u32 %v4630_v28, %v4628_v40  ;;  %v3128_v44 = vld [vmem:[#allocation2 + $0xa0] sm:$0xff] }
 0x2fa   :  { %v4268_v46 = vld [vmem:[#allocation2 + $0x78] sm:$0xff]  ;;  %v3375_v45 = vsel %vm1445_vm2, %v3372_v38, %v3374_v30 }
 0x2fb   :  { %v4918_v53 = vadd.f32 %v4820_v19, %v4268_v46  ;;  %4221 = vst.msk [vmem:[#allocation2 + $0x80] sm:$0xff] %vm219_vm0, %v4173_v20  ;;  %v5787_v26 = vsel %vm219_vm0, %v5674_v37, 0.0  ;;  %v5706_v13 = vpack.c.bf16 %v5674_v37, %v5674_v37  ;;  %v5265_v37 = vrot.slane %v9721_v31, 1  ;;  %v3131_v31 = vld [vmem:[#allocation2 + $0xb8] sm:$0xff] }
 0x2fc   :  { %v5013_v33 = vld [vmem:[#allocation2 + $0x70] sm:$0xff]  ;;  %v4079_v47 = vpop.f32.mrf.mxu2  ;;  %5788 = vadd.xlane.f32.xlu2 %v5787_v26 }
 0x2fd   :  { %4966 = vst.msk [vmem:[#allocation2 + $0x78] sm:$0xff] %vm219_vm0, %v4918_v53  ;;  %v5516_v55 = vadd.f32 %v9577_v36, %v5013_v33  ;;  %v5266_v40 = vsel %vm1445_vm2, %v5263_v48, %v5265_v37 }
 0x2fe   :  { %5739 = vst.msk [vmem:[#allocation3 + $0x20] sm:$0xf] %vm5730_vm3, %v5706_v13  ;;  %v3536_v0 = vpop.f32.mrf.mxu1  ;;  %v5607_v24 = vld [vmem:[#allocation2 + $0x68] sm:$0xff] }
 0x2ff   :  { %v4825_v29 = vpop.f32.mrf.mxu3  ;;  %5564 = vst.msk [vmem:[#allocation2 + $0x70] sm:$0xff] %vm219_vm0, %v5516_v55  ;;  %v3629_v36 = vadd.f32 %v3536_v0, %v3126_v41  ;;  %v5643_v50 = vadd.f32 %v9309_v12, %v5607_v24 }
 0x300   :  { %v3724_v10 = vld [vmem:[#allocation2 + $0x88] sm:$0xff] }
 0x301   :  { %v4174_v5 = vadd.f32 %v4079_v47, %v3724_v10  ;;  %3677 = vst.msk [vmem:[#allocation2 + $0x90] sm:$0xff] %vm219_vm0, %v3629_v36  ;;  %6854 = vmatmul.msk.bf16.gmra.mxu1 %vm219_vm0, %v3373_v51  ;;  %6998 = vmatmul.msk.bf16.gmra.mxu2 %vm219_vm0, %v7478_v35  ;;  %v5675_v11 = vmax.f32 %v5643_v50, 0.0  ;;  %v9688_v60 = vpop.f32.mrf.mxu0  ;;  %v9754_v35 = vld [vmem:[%s10255_s0 + $0xb8] sm:$0xff]  ;;  %v3129_v51 = vld [vmem:[#allocation2 + $0xa8] sm:$0xff]  ;;  %v4638_v50 = vshrl.u32 %v9700_v54, 16 }
 0x302   :  { %v4269_v3 = vld [vmem:[#allocation2 + $0x80] sm:$0xff]  ;;  %v9763_v36 = vld [vmem:[%s10255_s0 + $0xac] sm:$0xff]  ;;  %v4642_v10 = vshll.u32 %v9754_v35, 16  ;;  %v9776_v54 = vld [vmem:[%s10255_s0 + $0xb8] sm:$0xff] }
 0x303   :  { %v4919_v52 = vadd.f32 %v4823_v25, %v4269_v3  ;;  %4222 = vst.msk [vmem:[#allocation2 + $0x88] sm:$0xff] %vm219_vm0, %v4174_v5  ;;  %v5790_v15 = vsel %vm219_vm0, %v5675_v11, 0.0  ;;  %v5707_v14 = vpack.c.bf16 %v5675_v11, %v5675_v11  ;;  %v4636_v25 = vrot.slane %v4634_v6, 1  ;;  %v3130_v6 = vld [vmem:[#allocation2 + $0xb0] sm:$0xff] }
 0x304   :  { %7142 = vmatmul.msk.bf16.gmra.mxu3 %vm219_vm0, %v4629_v62  ;;  %v5014_v19 = vld [vmem:[#allocation2 + $0x78] sm:$0xff]  ;;  %v4082_v34 = vpop.f32.mrf.mxu2  ;;  %5791 = vadd.xlane.f32.xlu0 %v5790_v15 }
 0x305   :  { %4967 = vst.msk [vmem:[#allocation2 + $0x80] sm:$0xff] %vm219_vm0, %v4919_v52  ;;  %v5517_v1 = vadd.f32 %v9606_v58, %v5014_v19  ;;  %7286 = vmatmul.msk.bf16.gmra.mxu0 %vm219_vm0, %v5264_v43  ;;  %v4637_v27 = vsel %vm698_vm1, %v4632_v61, %v4636_v25  ;;  %v3376_v52 = vrot.slane %v9763_v36, 1  ;;  %v4640_v15 = vor.u32 %v4638_v50, %v4636_v25  ;;  %v7481_v50 = vld [vmem:[%s10255_s0 + $0xb8] sm:$0xff] }
 0x306   :  { %5740 = vst.msk [vmem:[#allocation3 + $0x24] sm:$0xf] %vm5730_vm3, %v5707_v14  ;;  %v3538_v9 = vpop.f32.mrf.mxu1 }
 0x307   :  { %v4828_v7 = vpop.f32.mrf.mxu3  ;;  %5565 = vst.msk [vmem:[#allocation2 + $0x78] sm:$0xff] %vm219_vm0, %v5517_v1  ;;  %v3630_v17 = vadd.f32 %v3538_v9, %v3127_v4  ;;  %v4644_v1 = vrot.slane %v4642_v10, 1 }
 0x308   :  { %v3725_v58 = vld [vmem:[#allocation2 + $0x90] sm:$0xff] }
 0x309   :  { %v4175_v18 = vadd.f32 %v4082_v34, %v3725_v58  ;;  %3678 = vst.msk [vmem:[#allocation2 + $0x98] sm:$0xff] %vm219_vm0, %v3630_v17  ;;  %v9716_v23 = vpop.f32.mrf.mxu0  ;;  %v7480_v17 = vld [vmem:[%s10255_s0 + $0xb0] sm:$0xff] }
 0x30a   :  { %v4270_v2 = vld [vmem:[#allocation2 + $0x88] sm:$0xff] }
 0x30b   :  { %v4920_v63 = vadd.f32 %v4825_v29, %v4270_v2  ;;  %4223 = vst.msk [vmem:[#allocation2 + $0x90] sm:$0xff] %vm219_vm0, %v4175_v18  ;;  %v3377_v18 = vsel %vm1445_vm2, %v3374_v30, %v3376_v52  ;;  %v5267_v2 = vrot.slane %v9776_v54, 1 }
 0x30c   :  { %v5015_v16 = vld [vmem:[#allocation2 + $0x80] sm:$0xff]  ;;  %v4084_v57 = vpop.f32.mrf.mxu2 }
 0x30d   :  { %4968 = vst.msk [vmem:[#allocation2 + $0x88] sm:$0xff] %vm219_vm0, %v4920_v63  ;;  %v5518_v32 = vadd.f32 %v9633_v56, %v5015_v16  ;;  %v4645_v63 = vsel %vm698_vm1, %v4640_v15, %v4644_v1  ;;  %v5268_v30 = vsel %vm1445_vm2, %v5265_v37, %v5267_v2  ;;  %v9817_v37 = vld [vmem:[%s10255_s0 + $0xb4] sm:$0xff] }
 0x30e   :  { %v3541_v8 = vpop.f32.mrf.mxu1  ;;  %v5608_v20 = vld [vmem:[#allocation2 + $0x78] sm:$0xff] }
 0x30f   :  { %v4830_v39 = vpop.f32.mrf.mxu3  ;;  %5566 = vst.msk [vmem:[#allocation2 + $0x80] sm:$0xff] %vm219_vm0, %v5518_v32  ;;  %v3631_v46 = vadd.f32 %v3541_v8, %v3128_v44  ;;  %v5644_v56 = vadd.f32 %v9309_v12, %v5608_v20  ;;  %v9809_v32 = vld [vmem:[%s10255_s0 + $0xc0] sm:$0xff] }
 0x310   :  { %v3726_v53 = vld [vmem:[#allocation2 + $0x98] sm:$0xff] }
 0x311   :  { %v4176_v26 = vadd.f32 %v4084_v57, %v3726_v53  ;;  %3679 = vst.msk [vmem:[#allocation2 + $0xa0] sm:$0xff] %vm219_vm0, %v3631_v46  ;;  %6855 = vmatmul.msk.bf16.gmra.mxu1 %vm219_vm0, %v3375_v45  ;;  %6999 = vmatmul.msk.bf16.gmra.mxu2 %vm219_vm0, %v7479_v59  ;;  %v5676_v21 = vmax.f32 %v5644_v56, 0.0  ;;  %v9742_v13 = vpop.f32.mrf.mxu0  ;;  %v4646_v46 = vshrl.u32 %v9754_v35, 16  ;;  %v4650_v53 = vshll.u32 %v9809_v32, 16  ;;  %v9835_v35 = vld [vmem:[%s10255_s0 + $0xc0] sm:$0xff] }
 0x312   :  { %v4271_v38 = vld [vmem:[#allocation2 + $0x90] sm:$0xff] }
 0x313   :  { %v4921_v33 = vadd.f32 %v4828_v7, %v4271_v38  ;;  %4224 = vst.msk [vmem:[#allocation2 + $0x98] sm:$0xff] %vm219_vm0, %v4176_v26  ;;  %v5793_v47 = vsel %vm219_vm0, %v5676_v21, 0.0  ;;  %v5708_v55 = vpack.c.bf16 %v5676_v21, %v5676_v21 }
 0x314   :  { %7143 = vmatmul.msk.bf16.gmra.mxu3 %vm219_vm0, %v4637_v27  ;;  %v5016_v29 = vld [vmem:[#allocation2 + $0x88] sm:$0xff]  ;;  %v4087_v41 = vpop.f32.mrf.mxu2  ;;  %5794 = vadd.xlane.f32.xlu1 %v5793_v47  ;;  %v4648_v47 = vor.u32 %v4646_v46, %v4644_v1  ;;  %v7482_v46 = vld [vmem:[%s10255_s0 + $0xc0] sm:$0xff] }
 0x315   :  { %4969 = vst.msk [vmem:[#allocation2 + $0x90] sm:$0xff] %vm219_vm0, %v4921_v33  ;;  %v5519_v22 = vadd.f32 %v9660_v49, %v5016_v29  ;;  %7287 = vmatmul.msk.bf16.gmra.mxu0 %vm219_vm0, %v5266_v40  ;;  %v3378_v33 = vrot.slane %v9817_v37, 1 }
 0x316   :  { %5741 = vst.msk [vmem:[#allocation3 + $0x28] sm:$0xf] %vm5730_vm3, %v5708_v55  ;;  %v3543_v24 = vpop.f32.mrf.mxu1  ;;  %v5609_v48 = vld [vmem:[#allocation2 + $0x80] sm:$0xff] }
 0x317   :  { %v4833_v0 = vpop.f32.mrf.mxu3  ;;  %5567 = vst.msk [vmem:[#allocation2 + $0x88] sm:$0xff] %vm219_vm0, %v5519_v22  ;;  %v3632_v62 = vadd.f32 %v3543_v24, %v3129_v51  ;;  %v5645_v49 = vadd.f32 %v9309_v12, %v5609_v48 }
 0x318   :  { %v3727_v5 = vld [vmem:[#allocation2 + $0xa0] sm:$0xff] }
 0x319   :  { %v4177_v11 = vadd.f32 %v4087_v41, %v3727_v5  ;;  %3680 = vst.msk [vmem:[#allocation2 + $0xa8] sm:$0xff] %vm219_vm0, %v3632_v62  ;;  %v5677_v3 = vmax.f32 %v5645_v49, 0.0  ;;  %v9771_v14 = vpop.f32.mrf.mxu0  ;;  %v3132_v49 = vld [vmem:[#allocation2 + $0xc0] sm:$0xff]  ;;  %v3379_v5 = vsel %vm1445_vm2, %v3376_v52, %v3378_v33 }
 0x31a   :  { %v4272_v43 = vld [vmem:[#allocation2 + $0x98] sm:$0xff] }
 0x31b   :  { %v4922_v19 = vadd.f32 %v4830_v39, %v4272_v43  ;;  %4225 = vst.msk [vmem:[#allocation2 + $0xa0] sm:$0xff] %vm219_vm0, %v4177_v11  ;;  %v5796_v12 = vsel %vm219_vm0, %v5677_v3, 0.0  ;;  %v5709_v34 = vpack.c.bf16 %v5677_v3, %v5677_v3  ;;  %v5269_v3 = vrot.slane %v9835_v35, 1 }
 0x31c   :  { %v5017_v7 = vld [vmem:[#allocation2 + $0x90] sm:$0xff]  ;;  %v4089_v4 = vpop.f32.mrf.mxu2  ;;  %5797 = vadd.xlane.f32.xlu2 %v5796_v12 }
 0x31d   :  { %4970 = vst.msk [vmem:[#allocation2 + $0x98] sm:$0xff] %vm219_vm0, %v4922_v19  ;;  %v5520_v9 = vadd.f32 %v9688_v60, %v5017_v7  ;;  %v5270_v1 = vsel %vm1445_vm2, %v5267_v2, %v5269_v3 }
 0x31e   :  { %5742 = vst.msk [vmem:[#allocation3 + $0x2c] sm:$0xf] %vm5730_vm3, %v5709_v34  ;;  %v3546_v58 = vpop.f32.mrf.mxu1 }
 0x31f   :  { %v4835_v28 = vpop.f32.mrf.mxu3  ;;  %5568 = vst.msk [vmem:[#allocation2 + $0x90] sm:$0xff] %vm219_vm0, %v5520_v9  ;;  %v3633_v60 = vadd.f32 %v3546_v58, %v3130_v6 }
 0x320   :  { %v3728_v61 = vld [vmem:[#allocation2 + $0xa8] sm:$0xff] }
 0x321   :  { %v4178_v25 = vadd.f32 %v4089_v4, %v3728_v61  ;;  %3681 = vst.msk [vmem:[#allocation2 + $0xb0] sm:$0xff] %vm219_vm0, %v3633_v60  ;;  %6856 = vmatmul.msk.bf16.gmra.mxu1 %vm219_vm0, %v3377_v18  ;;  %7000 = vmatmul.msk.bf16.gmra.mxu2 %vm219_vm0, %v7480_v17  ;;  %v9870_v17 = vld [vmem:[%s10255_s0 + $0xc8] sm:$0xff]  ;;  %v9879_v60 = vld [vmem:[%s10255_s0 + $0xbc] sm:$0xff]  ;;  %v4654_v61 = vshrl.u32 %v9809_v32, 16 }
 0x322   :  { %v4273_v16 = vld [vmem:[#allocation2 + $0xa0] sm:$0xff]  ;;  %v9798_v42 = vpop.f32.mrf.mxu0  ;;  %v3133_v18 = vld [vmem:[#allocation2 + $0xc8] sm:$0xff] }
 0x323   :  { %v4923_v57 = vadd.f32 %v4833_v0, %v4273_v16  ;;  %4226 = vst.msk [vmem:[#allocation2 + $0xa8] sm:$0xff] %vm219_vm0, %v4178_v25  ;;  %v4652_v0 = vrot.slane %v4650_v53, 1  ;;  %v4658_v25 = vshll.u32 %v9870_v17, 16 }
 0x324   :  { %7144 = vmatmul.msk.bf16.gmra.mxu3 %vm219_vm0, %v4645_v63  ;;  %v5018_v59 = vld [vmem:[#allocation2 + $0x98] sm:$0xff]  ;;  %v4092_v39 = vpop.f32.mrf.mxu2 }
 0x325   :  { %4971 = vst.msk [vmem:[#allocation2 + $0xa0] sm:$0xff] %vm219_vm0, %v4923_v57  ;;  %v5521_v44 = vadd.f32 %v9716_v23, %v5018_v59  ;;  %7288 = vmatmul.msk.bf16.gmra.mxu0 %vm219_vm0, %v5268_v30  ;;  %v9824_v23 = vld [vmem:[%s10257_s2] ss:$0 sm:$0xff]  ;;  %v4653_v15 = vsel %vm698_vm1, %v4648_v47, %v4652_v0  ;;  %v3380_v57 = vrot.slane %v9879_v60, 1  ;;  %v4656_v32 = vor.u32 %v4654_v61, %v4652_v0  ;;  %v7483_v61 = vld [vmem:[%s10255_s0 + $0xc8] sm:$0xff] }
 0x326   :  { %v3548_v45 = vpop.f32.mrf.mxu1  ;;  %v5610_v20 = vld [vmem:[#allocation2 + $0x90] sm:$0xff] }
 0x327   :  { %v4838_v8 = vpop.f32.mrf.mxu3  ;;  %5569 = vst.msk [vmem:[#allocation2 + $0x98] sm:$0xff] %vm219_vm0, %v5521_v44  ;;  %v3634_v56 = vadd.f32 %v3548_v45, %v3131_v31  ;;  %v5646_v27 = vadd.f32 %v9824_v23, %v5610_v20 }
 0x328   :  { %v3729_v26 = vld [vmem:[#allocation2 + $0xb0] sm:$0xff] }
 0x329   :  { %v4179_v21 = vadd.f32 %v4092_v39, %v3729_v26  ;;  %3682 = vst.msk [vmem:[#allocation2 + $0xb8] sm:$0xff] %vm219_vm0, %v3634_v56  ;;  %v5678_v38 = vmax.f32 %v5646_v27, 0.0  ;;  %v9891_v39 = vld [vmem:[%s10255_s0 + $0xc8] sm:$0xff]  ;;  %v3134_v27 = vld [vmem:[#allocation2 + $0xd0] sm:$0xff]  ;;  %v3381_v26 = vsel %vm1445_vm2, %v3378_v33, %v3380_v57 }
 0x32a   :  { %v4274_v40 = vld [vmem:[#allocation2 + $0xa8] sm:$0xff]  ;;  %v9830_v55 = vpop.f32.mrf.mxu0 }
 0x32b   :  { %v4924_v29 = vadd.f32 %v4835_v28, %v4274_v40  ;;  %4227 = vst.msk [vmem:[#allocation2 + $0xb0] sm:$0xff] %vm219_vm0, %v4179_v21  ;;  %v5799_v41 = vsel %vm219_vm0, %v5678_v38, 0.0  ;;  %v5710_v22 = vpack.c.bf16 %v5678_v38, %v5678_v38  ;;  %v5271_v38 = vrot.slane %v9891_v39, 1  ;;  %v3137_v39 = vld [vmem:[#allocation2 + $0xe8] sm:$0xff] }
 0x32c   :  { %v5019_v51 = vld [vmem:[#allocation2 + $0xa0] sm:$0xff]  ;;  %v4094_v24 = vpop.f32.mrf.mxu2  ;;  %5800 = vadd.xlane.f32.xlu0 %v5799_v41 }
 0x32d   :  { %4972 = vst.msk [vmem:[#allocation2 + $0xa8] sm:$0xff] %vm219_vm0, %v4924_v29  ;;  %v5522_v48 = vadd.f32 %v9742_v13, %v5019_v51  ;;  %v5272_v0 = vsel %vm1445_vm2, %v5269_v3, %v5271_v38  ;;  %v9933_v3 = vld [vmem:[%s10255_s0 + $0xc4] sm:$0xff] }
 0x32e   :  { %5743 = vst.msk [vmem:[#allocation3 + $0x30] sm:$0xf] %vm5730_vm3, %v5710_v22  ;;  %v3551_v10 = vpop.f32.mrf.mxu1  ;;  %v5611_v11 = vld [vmem:[#allocation2 + $0x98] sm:$0xff] }
 0x32f   :  { %v4840_v62 = vpop.f32.mrf.mxu3  ;;  %5570 = vst.msk [vmem:[#allocation2 + $0xa0] sm:$0xff] %vm219_vm0, %v5522_v48  ;;  %v3635_v13 = vadd.f32 %v3551_v10, %v3132_v49  ;;  %v5647_v43 = vadd.f32 %v9824_v23, %v5611_v11 }
 0x330   :  { %v3730_v19 = vld [vmem:[#allocation2 + $0xb8] sm:$0xff] }
 0x331   :  { %v4180_v12 = vadd.f32 %v4094_v24, %v3730_v19  ;;  %3683 = vst.msk [vmem:[#allocation2 + $0xc0] sm:$0xff] %vm219_vm0, %v3635_v13  ;;  %6857 = vmatmul.msk.bf16.gmra.mxu1 %vm219_vm0, %v3379_v5  ;;  %7001 = vmatmul.msk.bf16.gmra.mxu2 %vm219_vm0, %v7481_v50  ;;  %v5679_v36 = vmax.f32 %v5647_v43, 0.0  ;;  %v9924_v50 = vld [vmem:[%s10255_s0 + $0xd0] sm:$0xff]  ;;  %v3135_v5 = vld [vmem:[#allocation2 + $0xd8] sm:$0xff] }
 0x332   :  { %v4275_v52 = vld [vmem:[#allocation2 + $0xb0] sm:$0xff]  ;;  %v9858_v34 = vpop.f32.mrf.mxu0 }
 0x333   :  { %v4925_v7 = vadd.f32 %v4838_v8, %v4275_v52  ;;  %4228 = vst.msk [vmem:[#allocation2 + $0xb8] sm:$0xff] %vm219_vm0, %v4180_v12  ;;  %v5802_v4 = vsel %vm219_vm0, %v5679_v36, 0.0  ;;  %v5711_v9 = vpack.c.bf16 %v5679_v36, %v5679_v36  ;;  %v4660_v8 = vrot.slane %v4658_v25, 1 }
 0x334   :  { %7145 = vmatmul.msk.bf16.gmra.mxu3 %vm219_vm0, %v4653_v15  ;;  %v5020_v28 = vld [vmem:[#allocation2 + $0xa8] sm:$0xff]  ;;  %v4097_v6 = vpop.f32.mrf.mxu2  ;;  %5803 = vadd.xlane.f32.xlu1 %v5802_v4  ;;  %v4662_v15 = vshrl.u32 %v9870_v17, 16 }
 0x335   :  { %4973 = vst.msk [vmem:[#allocation2 + $0xb0] sm:$0xff] %vm219_vm0, %v4925_v7  ;;  %v5523_v54 = vadd.f32 %v9771_v14, %v5020_v28  ;;  %7289 = vmatmul.msk.bf16.gmra.mxu0 %vm219_vm0, %v5270_v1  ;;  %v4661_v47 = vsel %vm698_vm1, %v4656_v32, %v4660_v8  ;;  %v3382_v7 = vrot.slane %v9933_v3, 1 }
 0x336   :  { %5744 = vst.msk [vmem:[#allocation3 + $0x34] sm:$0xf] %vm5730_vm3, %v5711_v9  ;;  %v3553_v2 = vpop.f32.mrf.mxu1  ;;  %v9948_v9 = vld [vmem:[%s10255_s0 + $0xd0] sm:$0xff]  ;;  %v4664_v28 = vor.u32 %v4662_v15, %v4660_v8  ;;  %v3204_v8 = vld [vmem:[%s10255_s0 + $0xcc] sm:$0x1] }
 0x337   :  { %v4843_v58 = vpop.f32.mrf.mxu3  ;;  %5571 = vst.msk [vmem:[#allocation2 + $0xa8] sm:$0xff] %vm219_vm0, %v5523_v54  ;;  %v3636_v63 = vadd.f32 %v3553_v2, %v3133_v18  ;;  %v4349_v2 = vld [vmem:[%s10255_s0 + $0xd8] sm:$0x1] }
 0x338   :  { %v3731_v14 = vld [vmem:[#allocation2 + $0xc0] sm:$0xff] }
 0x339   :  { %v4181_v16 = vadd.f32 %v4097_v6, %v3731_v14  ;;  %3684 = vst.msk [vmem:[#allocation2 + $0xc8] sm:$0xff] %vm219_vm0, %v3636_v63  ;;  %v3136_v14 = vld [vmem:[#allocation2 + $0xe0] sm:$0xff] }
 0x33a   :  { %v4276_v30 = vld [vmem:[#allocation2 + $0xb8] sm:$0xff]  ;;  %v9886_v59 = vpop.f32.mrf.mxu0 }
 0x33b   :  { %v4926_v44 = vadd.f32 %v4840_v62, %v4276_v30  ;;  %4229 = vst.msk [vmem:[#allocation2 + $0xc0] sm:$0xff] %vm219_vm0, %v4181_v16  ;;  %v3383_v30 = vsel %vm1445_vm2, %v3380_v57, %v3382_v7  ;;  %v3311_v57 = vunpack.c.l.b16 %v3204_v8 }
 0x33c   :  { %v5021_v31 = vld [vmem:[#allocation2 + $0xb0] sm:$0xff]  ;;  %v4099_v45 = vpop.f32.mrf.mxu2 }
 0x33d   :  { %4974 = vst.msk [vmem:[#allocation2 + $0xb8] sm:$0xff] %vm219_vm0, %v4926_v44  ;;  %v5524_v20 = vadd.f32 %v9798_v42, %v5021_v31  ;;  %v5273_v44 = vrot.slane %v9948_v9, 1  ;;  %v4456_v31 = vunpack.c.l.b16 %v4349_v2  ;;  %v3139_v9 = vld [vmem:[#allocation2 + $0xf8] sm:$0xff] }
 0x33e   :  { %v3556_v53 = vpop.f32.mrf.mxu1  ;;  %v5612_v21 = vld [vmem:[#allocation2 + $0xa8] sm:$0xff] }
 0x33f   :  { %v4845_v56 = vpop.f32.mrf.mxu3  ;;  %5572 = vst.msk [vmem:[#allocation2 + $0xb0] sm:$0xff] %vm219_vm0, %v5524_v20  ;;  %v3637_v40 = vadd.f32 %v3556_v53, %v3134_v27  ;;  %v5648_v42 = vadd.f32 %v9824_v23, %v5612_v21  ;;  %v4481_v53 = vpack.c.b16 %v4456_v31, %v4456_v31 }
 0x340   :  { %v3732_v29 = vld [vmem:[#allocation2 + $0xc8] sm:$0xff] }
 0x341   :  { %v4182_v41 = vadd.f32 %v4099_v45, %v3732_v29  ;;  %3685 = vst.msk [vmem:[#allocation2 + $0xd0] sm:$0xff] %vm219_vm0, %v3637_v40  ;;  %6858 = vmatmul.msk.bf16.gmra.mxu1 %vm219_vm0, %v3381_v26  ;;  %7002 = vmatmul.msk.bf16.gmra.mxu2 %vm219_vm0, %v7482_v46  ;;  %v5680_v37 = vmax.f32 %v5648_v42, 0.0  ;;  %v5095_v26 = vld [vmem:[%s10255_s0 + $0xd8] sm:$0x1] }
 0x342   :  { %v4277_v33 = vld [vmem:[#allocation2 + $0xc0] sm:$0xff]  ;;  %v9912_v22 = vpop.f32.mrf.mxu0 }
 0x343   :  { %v4927_v51 = vadd.f32 %v4843_v58, %v4277_v33  ;;  %4230 = vst.msk [vmem:[#allocation2 + $0xc8] sm:$0xff] %vm219_vm0, %v4182_v41  ;;  %v5805_v24 = vsel %vm219_vm0, %v5680_v37, 0.0  ;;  %v5712_v48 = vpack.c.bf16 %v5680_v37, %v5680_v37  ;;  %v3336_v41 = vpack.c.b16 %v3311_v57, %v3311_v57 }
 0x344   :  { %7146 = vmatmul.msk.bf16.gmra.mxu3 %vm219_vm0, %v4661_v47  ;;  %v5022_v62 = vld [vmem:[#allocation2 + $0xb8] sm:$0xff]  ;;  %v4102_v49 = vpop.f32.mrf.mxu2  ;;  %5806 = vadd.xlane.f32.xlu2 %v5805_v24  ;;  %v4670_v37 = vshrl.u32 %v9924_v50, 16  ;;  %v5202_v33 = vunpack.c.l.b16 %v5095_v26  ;;  %v4674_v24 = vshll.u32 %v4481_v53, 16 }
 0x345   :  { %4975 = vst.msk [vmem:[#allocation2 + $0xc0] sm:$0xff] %vm219_vm0, %v4927_v51  ;;  %v5525_v35 = vadd.f32 %v9830_v55, %v5022_v62  ;;  %7290 = vmatmul.msk.bf16.gmra.mxu0 %vm219_vm0, %v5272_v0  ;;  %v4666_v55 = vshll.u32 %v9924_v50, 16 }
 0x346   :  { %5745 = vst.msk [vmem:[#allocation3 + $0x38] sm:$0xf] %vm5730_vm3, %v5712_v48  ;;  %v3558_v11 = vpop.f32.mrf.mxu1  ;;  %v5613_v13 = vld [vmem:[#allocation2 + $0xb0] sm:$0xff]  ;;  %v4676_v15 = vrot.slane %v4674_v24, 1 }
 0x347   :  { %v4848_v10 = vpop.f32.mrf.mxu3  ;;  %5573 = vst.msk [vmem:[#allocation2 + $0xb8] sm:$0xff] %vm219_vm0, %v5525_v35  ;;  %v3638_v43 = vadd.f32 %v3558_v11, %v3135_v5  ;;  %v5649_v19 = vadd.f32 %v9824_v23, %v5613_v13  ;;  %v4668_v6 = vrot.slane %v4666_v55, 1  ;;  %v3384_v35 = vrot.slane %v3336_v41, 1 }
 0x348   :  { %v3733_v12 = vld [vmem:[#allocation2 + $0xd0] sm:$0xff]  ;;  %v5227_v11 = vpack.c.b16 %v5202_v33, %v5202_v33 }
 0x349   :  { %v4183_v36 = vadd.f32 %v4102_v49, %v3733_v12  ;;  %3686 = vst.msk [vmem:[#allocation2 + $0xd8] sm:$0xff] %vm219_vm0, %v3638_v43  ;;  %v9940_v52 = vmax.f32 %v5649_v19, 0.0  ;;  %v4669_v32 = vsel %vm698_vm1, %v4664_v28, %v4668_v6 }
 0x34a   :  { %v4278_v1 = vld [vmem:[#allocation2 + $0xc8] sm:$0xff]  ;;  %v9943_v4 = vpop.f32.mrf.mxu0 }
 0x34b   :  { %v4928_v17 = vadd.f32 %v4845_v56, %v4278_v1  ;;  %4231 = vst.msk [vmem:[#allocation2 + $0xd0] sm:$0xff] %vm219_vm0, %v4183_v36  ;;  %v5713_v54 = vpack.c.bf16 %v9940_v52, %v9940_v52  ;;  %v5274_v56 = vsel %vm1445_vm2, %v5271_v38, %v5273_v44  ;;  %v7484_v36 = vld [vmem:[%s10255_s0 + $0xd0] sm:$0xff] }
 0x34c   :  { %v5023_v58 = vld [vmem:[#allocation2 + $0xc0] sm:$0xff]  ;;  %v4104_v18 = vpop.f32.mrf.mxu2 }
 0x34d   :  { %4976 = vst.msk [vmem:[#allocation2 + $0xc8] sm:$0xff] %vm219_vm0, %v4928_v17  ;;  %v5526_v63 = vadd.f32 %v9858_v34, %v5023_v58  ;;  %v3138_v17 = vld [vmem:[#allocation2 + $0xf0] sm:$0xff]  ;;  %v5275_v58 = vrot.slane %v5227_v11, 1 }
 0x34e   :  { %v3561_v16 = vpop.f32.mrf.mxu1  ;;  %5746 = vst.msk [vmem:[#allocation3 + $0x3c] sm:$0xf] %vm5730_vm3, %v5713_v54 }
 0x34f   :  { %v4850_v25 = vpop.f32.mrf.mxu3  ;;  %5574 = vst.msk [vmem:[#allocation2 + $0xc0] sm:$0xff] %vm219_vm0, %v5526_v63  ;;  %v3639_v34 = vadd.f32 %v3561_v16, %v3136_v14  ;;  %v5276_v14 = vsel %vm1445_vm2, %v5273_v44, %v5275_v58 }
 0x350   :  { %v3734_v45 = vld [vmem:[#allocation2 + $0xd8] sm:$0xff] }
 0x351   :  { %v4184_v20 = vadd.f32 %v4104_v18, %v3734_v45  ;;  %3687 = vst.msk [vmem:[#allocation2 + $0xe0] sm:$0xff] %vm219_vm0, %v3639_v34  ;;  %6859 = vmatmul.msk.bf16.gmra.mxu1 %vm219_vm0, %v3383_v30  ;;  %7003 = vmatmul.msk.bf16.gmra.mxu2 %vm219_vm0, %v7483_v61 }
 0x352   :  { %v4279_v60 = vld [vmem:[#allocation2 + $0xd0] sm:$0xff]  ;;  %v9977_v46 = vpop.f32.mrf.mxu0 }
 0x353   :  { %v4929_v27 = vadd.f32 %v4848_v10, %v4279_v60  ;;  %4232 = vst.msk [vmem:[#allocation2 + $0xd8] sm:$0xff] %vm219_vm0, %v4184_v20  ;;  %v4672_v10 = vor.u32 %v4670_v37, %v4668_v6  ;;  %v3385_v6 = vsel %vm1445_vm2, %v3382_v7, %v3384_v35 }
 0x354   :  { %7147 = vmatmul.msk.bf16.gmra.mxu3 %vm219_vm0, %v4669_v32  ;;  %v5024_v21 = vld [vmem:[#allocation2 + $0xc8] sm:$0xff]  ;;  %v4107_v40 = vpop.f32.mrf.mxu2 }
 0x355   :  { %4977 = vst.msk [vmem:[#allocation2 + $0xd0] sm:$0xff] %vm219_vm0, %v4929_v27  ;;  %v5527_v42 = vadd.f32 %v9886_v59, %v5024_v21  ;;  %7291 = vmatmul.msk.bf16.gmra.mxu0 %vm219_vm0, %v5274_v56  ;;  %v4677_v2 = vsel %vm698_vm1, %v4672_v10, %v4676_v15  ;;  %v3141_v10 = vld [vmem:[#allocation2 + $0x108] sm:$0xff] }
 0x356   :  { %v3563_v29 = vpop.f32.mrf.mxu1  ;;  %v5614_v38 = vld [vmem:[#allocation2 + $0xc0] sm:$0xff] }
 0x357   :  { %v4853_v47 = vpop.f32.mrf.mxu3  ;;  %5575 = vst.msk [vmem:[#allocation2 + $0xc8] sm:$0xff] %vm219_vm0, %v5527_v42  ;;  %v3640_v0 = vadd.f32 %v3563_v29, %v3137_v39  ;;  %v5650_v51 = vadd.f32 %v9824_v23, %v5614_v38  ;;  %v3140_v42 = vld [vmem:[#allocation2 + $0x100] sm:$0xff] }
 0x358   :  { %v3735_v48 = vld [vmem:[#allocation2 + $0xe0] sm:$0xff] }
 0x359   :  { %v4185_v62 = vadd.f32 %v4107_v40, %v3735_v48  ;;  %3688 = vst.msk [vmem:[#allocation2 + $0xe8] sm:$0xff] %vm219_vm0, %v3640_v0  ;;  %v5682_v59 = vmax.f32 %v5650_v51, 0.0 }
 0x35a   :  { %v4280_v49 = vld [vmem:[#allocation2 + $0xd8] sm:$0xff]  ;;  %v9995_v5 = vpop.f32.mrf.mxu0 }
 0x35b   :  { %v4930_v13 = vadd.f32 %v4850_v25, %v4280_v49  ;;  %4233 = vst.msk [vmem:[#allocation2 + $0xe0] sm:$0xff] %vm219_vm0, %v4185_v62  ;;  %v5811_v50 = vsel %vm219_vm0, %v5682_v59, 0.0  ;;  %v5714_v43 = vpack.c.bf16 %v5682_v59, %v5682_v59 }
 0x35c   :  { %v5025_v55 = vld [vmem:[#allocation2 + $0xd0] sm:$0xff]  ;;  %v4109_v19 = vpop.f32.mrf.mxu2  ;;  %5812 = vadd.xlane.f32.xlu0 %v5811_v50 }
 0x35d   :  { %4978 = vst.msk [vmem:[#allocation2 + $0xd8] sm:$0xff] %vm219_vm0, %v4930_v13  ;;  %v5528_v12 = vadd.f32 %v9912_v22, %v5025_v55 }
 0x35e   :  { %5747 = vst.msk [vmem:[#allocation3 + $0x40] sm:$0xf] %vm5730_vm3, %v5714_v43  ;;  %v3566_v28 = vpop.f32.mrf.mxu1  ;;  %v5615_v54 = vld [vmem:[#allocation2 + $0xc8] sm:$0xff] }
 0x35f   :  { %v4855_v1 = vpop.f32.mrf.mxu3  ;;  %5576 = vst.msk [vmem:[#allocation2 + $0xd0] sm:$0xff] %vm219_vm0, %v5528_v12  ;;  %v3641_v18 = vadd.f32 %v3566_v28, %v3138_v17  ;;  %v5651_v22 = vadd.f32 %v9824_v23, %v5615_v54 }
 0x360   :  { %v3736_v63 = vld [vmem:[#allocation2 + $0xe8] sm:$0xff] }
 0x361   :  { %v4186_v61 = vadd.f32 %v4109_v19, %v3736_v63  ;;  %3689 = vst.msk [vmem:[#allocation2 + $0xf0] sm:$0xff] %vm219_vm0, %v3641_v18  ;;  %6860 = vmatmul.msk.bf16.gmra.mxu1 %vm219_vm0, %v3385_v6  ;;  %7004 = vmatmul.msk.bf16.gmra.mxu2 %vm219_vm0, %v7484_v36  ;;  %v5683_v3 = vmax.f32 %v5651_v22, 0.0  ;;  %v3142_v18 = vld [vmem:[#allocation2 + $0x110] sm:$0xff] }
 0x362   :  { %v4281_v25 = vld [vmem:[#allocation2 + $0xe0] sm:$0xff]  ;;  %v10015_v7 = vpop.f32.mrf.mxu0 }
 0x363   :  { %v4931_v16 = vadd.f32 %v4853_v47, %v4281_v25  ;;  %4234 = vst.msk [vmem:[#allocation2 + $0xe8] sm:$0xff] %vm219_vm0, %v4186_v61  ;;  %v5814_v30 = vsel %vm219_vm0, %v5683_v3, 0.0  ;;  %v5715_v34 = vpack.c.bf16 %v5683_v3, %v5683_v3 }
 0x364   :  { %7148 = vmatmul.msk.bf16.gmra.mxu3 %vm219_vm0, %v4677_v2  ;;  %v5026_v32 = vld [vmem:[#allocation2 + $0xd8] sm:$0xff]  ;;  %v4112_v8 = vpop.f32.mrf.mxu2  ;;  %5815 = vadd.xlane.f32.xlu1 %v5814_v30 }
 0x365   :  { %4979 = vst.msk [vmem:[#allocation2 + $0xe0] sm:$0xff] %vm219_vm0, %v4931_v16  ;;  %v5529_v31 = vadd.f32 %v9943_v4, %v5026_v32  ;;  %7292 = vmatmul.msk.bf16.gmra.mxu0 %vm219_vm0, %v5276_v14  ;;  %v3143_v32 = vld [vmem:[#allocation2 + $0x118] sm:$0xff] }
 0x366   :  { %5748 = vst.msk [vmem:[#allocation3 + $0x44] sm:$0xf] %vm5730_vm3, %v5715_v34  ;;  %v3568_v44 = vpop.f32.mrf.mxu1 }
 0x367   :  { %v4858_v45 = vpop.f32.mrf.mxu3  ;;  %5577 = vst.msk [vmem:[#allocation2 + $0xd8] sm:$0xff] %vm219_vm0, %v5529_v31  ;;  %v3642_v20 = vadd.f32 %v3568_v44, %v3139_v9 }
 0x368   :  { %v3737_v60 = vld [vmem:[#allocation2 + $0xf0] sm:$0xff] }
 0x369   :  { %v4187_v57 = vadd.f32 %v4112_v8, %v3737_v60  ;;  %3690 = vst.msk [vmem:[#allocation2 + $0xf8] sm:$0xff] %vm219_vm0, %v3642_v20 }
 0x36a   :  { %v4282_v56 = vld [vmem:[#allocation2 + $0xe8] sm:$0xff]  ;;  %v10028_v27 = vpop.f32.mrf.mxu0 }
 0x36b   :  { %v4932_v53 = vadd.f32 %v4855_v1, %v4282_v56  ;;  %4235 = vst.msk [vmem:[#allocation2 + $0xf0] sm:$0xff] %vm219_vm0, %v4187_v57 }
 0x36c   :  { %v5027_v4 = vld [vmem:[#allocation2 + $0xe0] sm:$0xff]  ;;  %v4114_v26 = vpop.f32.mrf.mxu2 }
 0x36d   :  { %4980 = vst.msk [vmem:[#allocation2 + $0xe8] sm:$0xff] %vm219_vm0, %v4932_v53  ;;  %v5530_v21 = vadd.f32 %v9977_v46, %v5027_v4 }
 0x36e   :  { %v3571_v47 = vpop.f32.mrf.mxu1  ;;  %v5616_v39 = vld [vmem:[#allocation2 + $0xd8] sm:$0xff] }
 0x36f   :  { %v4860_v40 = vpop.f32.mrf.mxu3  ;;  %5578 = vst.msk [vmem:[#allocation2 + $0xe0] sm:$0xff] %vm219_vm0, %v5530_v21  ;;  %v3643_v29 = vadd.f32 %v3571_v47, %v3140_v42  ;;  %v5652_v38 = vadd.f32 %v9824_v23, %v5616_v39  ;;  %v3144_v47 = vld [vmem:[#allocation2 + $0x120] sm:$0xff] }
 0x370   :  { %v3738_v41 = vld [vmem:[#allocation2 + $0xf8] sm:$0xff] }
 0x371   :  { %v4188_v37 = vadd.f32 %v4114_v26, %v3738_v41  ;;  %3691 = vst.msk [vmem:[#allocation2 + $0x100] sm:$0xff] %vm219_vm0, %v3643_v29  ;;  %v5684_v33 = vmax.f32 %v5652_v38, 0.0 }
 0x372   :  { %v4283_v0 = vld [vmem:[#allocation2 + $0xf0] sm:$0xff]  ;;  %v10036_v51 = vpop.f32.mrf.mxu0 }
 0x373   :  { %v4933_v24 = vadd.f32 %v4858_v45, %v4283_v0  ;;  %4236 = vst.msk [vmem:[#allocation2 + $0xf8] sm:$0xff] %vm219_vm0, %v4188_v37  ;;  %v5817_v46 = vsel %vm219_vm0, %v5684_v33, 0.0  ;;  %v5716_v48 = vpack.c.bf16 %v5684_v33, %v5684_v33 }
 0x374   :  { %v5028_v62 = vld [vmem:[#allocation2 + $0xe8] sm:$0xff]  ;;  %v4117_v59 = vpop.f32.mrf.mxu2  ;;  %5818 = vadd.xlane.f32.xlu2 %v5817_v46 }
 0x375   :  { %4981 = vst.msk [vmem:[#allocation2 + $0xf0] sm:$0xff] %vm219_vm0, %v4933_v24  ;;  %v5531_v49 = vadd.f32 %v9995_v5, %v5028_v62 }
 0x376   :  { %5749 = vst.msk [vmem:[#allocation3 + $0x48] sm:$0xf] %vm5730_vm3, %v5716_v48  ;;  %v3573_v11 = vpop.f32.mrf.mxu1  ;;  %v5617_v13 = vld [vmem:[#allocation2 + $0xe0] sm:$0xff] }
 0x377   :  { %v4863_v35 = vpop.f32.mrf.mxu3  ;;  %5579 = vst.msk [vmem:[#allocation2 + $0xe8] sm:$0xff] %vm219_vm0, %v5531_v49  ;;  %v3644_v50 = vadd.f32 %v3573_v11, %v3141_v10  ;;  %v5653_v43 = vadd.f32 %v9824_v23, %v5617_v13  ;;  %v3145_v11 = vld [vmem:[#allocation2 + $0x128] sm:$0xff] }
 0x378   :  { %v3739_v15 = vld [vmem:[#allocation2 + $0x100] sm:$0xff] }
 0x379   :  { %v4189_v55 = vadd.f32 %v4117_v59, %v3739_v15  ;;  %3692 = vst.msk [vmem:[#allocation2 + $0x108] sm:$0xff] %vm219_vm0, %v3644_v50  ;;  %v5685_v19 = vmax.f32 %v5653_v43, 0.0 }
 0x37a   :  { %v4284_v12 = vld [vmem:[#allocation2 + $0xf8] sm:$0xff]  ;;  %v10046_v36 = vpop.f32.mrf.mxu0 }
 0x37b   :  { %v4934_v5 = vadd.f32 %v4860_v40, %v4284_v12  ;;  %4237 = vst.msk [vmem:[#allocation2 + $0x100] sm:$0xff] %vm219_vm0, %v4189_v55  ;;  %v5820_v1 = vsel %vm219_vm0, %v5685_v19, 0.0  ;;  %v5717_v17 = vpack.c.bf16 %v5685_v19, %v5685_v19 }
 0x37c   :  { %v5029_v28 = vld [vmem:[#allocation2 + $0xf0] sm:$0xff]  ;;  %v4119_v6 = vpop.f32.mrf.mxu2  ;;  %5821 = vadd.xlane.f32.xlu0 %v5820_v1 }
 0x37d   :  { %4982 = vst.msk [vmem:[#allocation2 + $0xf8] sm:$0xff] %vm219_vm0, %v4934_v5  ;;  %v5532_v54 = vadd.f32 %v10015_v7, %v5029_v28 }
 0x37e   :  { %5750 = vst.msk [vmem:[#allocation3 + $0x4c] sm:$0xf] %vm5730_vm3, %v5717_v17  ;;  %v3576_v22 = vpop.f32.mrf.mxu1  ;;  %v3146_v17 = vld [vmem:[#allocation2 + $0x130] sm:$0xff] }
 0x37f   :  { %v4865_v58 = vpop.f32.mrf.mxu3  ;;  %5580 = vst.msk [vmem:[#allocation2 + $0xf0] sm:$0xff] %vm219_vm0, %v5532_v54  ;;  %v3645_v2 = vadd.f32 %v3576_v22, %v3142_v18 }
 0x380   :  { %v3740_v63 = vld [vmem:[#allocation2 + $0x108] sm:$0xff] }
 0x381   :  { %v4190_v61 = vadd.f32 %v4119_v6, %v3740_v63  ;;  %3693 = vst.msk [vmem:[#allocation2 + $0x110] sm:$0xff] %vm219_vm0, %v3645_v2 }
 0x382   :  { %v4285_v3 = vld [vmem:[#allocation2 + $0x100] sm:$0xff]  ;;  %v10055_v25 = vpop.f32.mrf.mxu0 }
 0x383   :  { %v4935_v14 = vadd.f32 %v4863_v35, %v4285_v3  ;;  %4238 = vst.msk [vmem:[#allocation2 + $0x108] sm:$0xff] %vm219_vm0, %v4190_v61 }
 0x384   :  { %v5030_v16 = vld [vmem:[#allocation2 + $0xf8] sm:$0xff]  ;;  %v4122_v7 = vpop.f32.mrf.mxu2 }
 0x385   :  { %4983 = vst.msk [vmem:[#allocation2 + $0x100] sm:$0xff] %vm219_vm0, %v4935_v14  ;;  %v5533_v30 = vadd.f32 %v10028_v27, %v5030_v16 }
 0x386   :  { %v3578_v8 = vpop.f32.mrf.mxu1  ;;  %v5618_v31 = vld [vmem:[#allocation2 + $0xf0] sm:$0xff] }
 0x387   :  { %v4868_v34 = vpop.f32.mrf.mxu3  ;;  %5581 = vst.msk [vmem:[#allocation2 + $0xf8] sm:$0xff] %vm219_vm0, %v5533_v30  ;;  %v3646_v45 = vadd.f32 %v3578_v8, %v3143_v32  ;;  %v5654_v9 = vadd.f32 %v9824_v23, %v5618_v31  ;;  %v3147_v32 = vld [vmem:[#allocation2 + $0x138] sm:$0xff] }
 0x388   :  { %v3741_v44 = vld [vmem:[#allocation2 + $0x110] sm:$0xff] }
 0x389   :  { %v4191_v20 = vadd.f32 %v4122_v7, %v3741_v44  ;;  %3694 = vst.msk [vmem:[#allocation2 + $0x118] sm:$0xff] %vm219_vm0, %v3646_v45  ;;  %v5686_v60 = vmax.f32 %v5654_v9, 0.0 }
 0x38a   :  { %v4286_v57 = vld [vmem:[#allocation2 + $0x108] sm:$0xff]  ;;  %v10065_v4 = vpop.f32.mrf.mxu0 }
 0x38b   :  { %v4936_v56 = vadd.f32 %v4865_v58, %v4286_v57  ;;  %4239 = vst.msk [vmem:[#allocation2 + $0x110] sm:$0xff] %vm219_vm0, %v4191_v20  ;;  %v5823_v27 = vsel %vm219_vm0, %v5686_v60, 0.0  ;;  %v5718_v53 = vpack.c.bf16 %v5686_v60, %v5686_v60 }
 0x38c   :  { %v5031_v26 = vld [vmem:[#allocation2 + $0x100] sm:$0xff]  ;;  %v4124_v21 = vpop.f32.mrf.mxu2  ;;  %5824 = vadd.xlane.f32.xlu1 %v5823_v27 }
 0x38d   :  { %4984 = vst.msk [vmem:[#allocation2 + $0x108] sm:$0xff] %vm219_vm0, %v4936_v56  ;;  %v5534_v40 = vadd.f32 %v10036_v51, %v5031_v26 }
 0x38e   :  { %5751 = vst.msk [vmem:[#allocation3 + $0x50] sm:$0xf] %vm5730_vm3, %v5718_v53  ;;  %v3581_v39 = vpop.f32.mrf.mxu1  ;;  %v5619_v29 = vld [vmem:[#allocation2 + $0xf8] sm:$0xff] }
 0x38f   :  { %v4870_v42 = vpop.f32.mrf.mxu3  ;;  %5582 = vst.msk [vmem:[#allocation2 + $0x100] sm:$0xff] %vm219_vm0, %v5534_v40  ;;  %v3647_v38 = vadd.f32 %v3581_v39, %v3144_v47  ;;  %v5655_v41 = vadd.f32 %v9824_v23, %v5619_v29  ;;  %v3148_v47 = vld [vmem:[#allocation2 + $0x140] sm:$0xff] }
 0x390   :  { %v3742_v37 = vld [vmem:[#allocation2 + $0x118] sm:$0xff] }
 0x391   :  { %v4192_v33 = vadd.f32 %v4124_v21, %v3742_v37  ;;  %3695 = vst.msk [vmem:[#allocation2 + $0x120] sm:$0xff] %vm219_vm0, %v3647_v38  ;;  %v5687_v0 = vmax.f32 %v5655_v41, 0.0 }
 0x392   :  { %v4287_v24 = vld [vmem:[#allocation2 + $0x110] sm:$0xff]  ;;  %v5472_v10 = vpop.f32.mrf.mxu0 }
 0x393   :  { %v4937_v46 = vadd.f32 %v4868_v34, %v4287_v24  ;;  %4240 = vst.msk [vmem:[#allocation2 + $0x118] sm:$0xff] %vm219_vm0, %v4192_v33  ;;  %v5826_v51 = vsel %vm219_vm0, %v5687_v0, 0.0  ;;  %v5719_v48 = vpack.c.bf16 %v5687_v0, %v5687_v0 }
 0x394   :  { %v5032_v62 = vld [vmem:[#allocation2 + $0x108] sm:$0xff]  ;;  %v4127_v59 = vpop.f32.mrf.mxu2  ;;  %5827 = vadd.xlane.f32.xlu2 %v5826_v51 }
 0x395   :  { %4985 = vst.msk [vmem:[#allocation2 + $0x110] sm:$0xff] %vm219_vm0, %v4937_v46  ;;  %v5535_v49 = vadd.f32 %v10046_v36, %v5032_v62  ;;  %v3149_v62 = vld [vmem:[#allocation2 + $0x148] sm:$0xff] }
 0x396   :  { %5752 = vst.msk [vmem:[#allocation3 + $0x54] sm:$0xf] %vm5730_vm3, %v5719_v48  ;;  %v3583_v13 = vpop.f32.mrf.mxu1 }
 0x397   :  { %v4873_v35 = vpop.f32.mrf.mxu3  ;;  %5583 = vst.msk [vmem:[#allocation2 + $0x108] sm:$0xff] %vm219_vm0, %v5535_v49  ;;  %v3648_v50 = vadd.f32 %v3583_v13, %v3145_v11 }
 0x398   :  { %v3743_v43 = vld [vmem:[#allocation2 + $0x120] sm:$0xff] }
 0x399   :  { %v4193_v15 = vadd.f32 %v4127_v59, %v3743_v43  ;;  %3696 = vst.msk [vmem:[#allocation2 + $0x128] sm:$0xff] %vm219_vm0, %v3648_v50 }
 0x39a   :  { %v4288_v55 = vld [vmem:[#allocation2 + $0x118] sm:$0xff]  ;;  %v5474_v18 = vpop.f32.mrf.mxu0 }
 0x39b   :  { %v4938_v19 = vadd.f32 %v4870_v42, %v4288_v55  ;;  %4241 = vst.msk [vmem:[#allocation2 + $0x120] sm:$0xff] %vm219_vm0, %v4193_v15 }
 0x39c   :  { %v5033_v12 = vld [vmem:[#allocation2 + $0x110] sm:$0xff]  ;;  %v4129_v5 = vpop.f32.mrf.mxu2 }
 0x39d   :  { %4986 = vst.msk [vmem:[#allocation2 + $0x118] sm:$0xff] %vm219_vm0, %v4938_v19  ;;  %v5536_v36 = vadd.f32 %v10055_v25, %v5033_v12 }
 0x39e   :  { %v3586_v28 = vpop.f32.mrf.mxu1  ;;  %v5620_v6 = vld [vmem:[#allocation2 + $0x108] sm:$0xff] }
 0x39f   :  { %v4875_v1 = vpop.f32.mrf.mxu3  ;;  %5584 = vst.msk [vmem:[#allocation2 + $0x110] sm:$0xff] %vm219_vm0, %v5536_v36  ;;  %v3649_v54 = vadd.f32 %v3586_v28, %v3146_v17  ;;  %v5656_v58 = vadd.f32 %v9824_v23, %v5620_v6  ;;  %v3150_v28 = vld [vmem:[#allocation2 + $0x150] sm:$0xff] }
 0x3a0   :  { %v3744_v22 = vld [vmem:[#allocation2 + $0x128] sm:$0xff] }
 0x3a1   :  { %v4194_v2 = vadd.f32 %v4129_v5, %v3744_v22  ;;  %3697 = vst.msk [vmem:[#allocation2 + $0x130] sm:$0xff] %vm219_vm0, %v3649_v54  ;;  %v5688_v63 = vmax.f32 %v5656_v58, 0.0 }
 0x3a2   :  { %v4289_v61 = vld [vmem:[#allocation2 + $0x120] sm:$0xff]  ;;  %v5477_v57 = vpop.f32.mrf.mxu0 }
 0x3a3   :  { %v4939_v3 = vadd.f32 %v4873_v35, %v4289_v61  ;;  %4242 = vst.msk [vmem:[#allocation2 + $0x128] sm:$0xff] %vm219_vm0, %v4194_v2  ;;  %v5829_v25 = vsel %vm219_vm0, %v5688_v63, 0.0  ;;  %v5720_v14 = vpack.c.bf16 %v5688_v63, %v5688_v63 }
 0x3a4   :  { %v5034_v16 = vld [vmem:[#allocation2 + $0x118] sm:$0xff]  ;;  %v4132_v7 = vpop.f32.mrf.mxu2  ;;  %5830 = vadd.xlane.f32.xlu0 %v5829_v25 }
 0x3a5   :  { %4987 = vst.msk [vmem:[#allocation2 + $0x120] sm:$0xff] %vm219_vm0, %v4939_v3  ;;  %v5537_v30 = vadd.f32 %v10065_v4, %v5034_v16 }
 0x3a6   :  { %5753 = vst.msk [vmem:[#allocation3 + $0x58] sm:$0xf] %vm5730_vm3, %v5720_v14  ;;  %v3588_v8 = vpop.f32.mrf.mxu1  ;;  %v5621_v31 = vld [vmem:[#allocation2 + $0x110] sm:$0xff] }
 0x3a7   :  { %v4878_v34 = vpop.f32.mrf.mxu3  ;;  %5585 = vst.msk [vmem:[#allocation2 + $0x118] sm:$0xff] %vm219_vm0, %v5537_v30  ;;  %v3650_v45 = vadd.f32 %v3588_v8, %v3147_v32  ;;  %v5657_v9 = vadd.f32 %v9824_v23, %v5621_v31 }
 0x3a8   :  { %v3745_v44 = vld [vmem:[#allocation2 + $0x130] sm:$0xff] }
 0x3a9   :  { %v4195_v20 = vadd.f32 %v4132_v7, %v3745_v44  ;;  %3698 = vst.msk [vmem:[#allocation2 + $0x138] sm:$0xff] %vm219_vm0, %v3650_v45  ;;  %v5689_v60 = vmax.f32 %v5657_v9, 0.0 }
 0x3aa   :  { %v4290_v56 = vld [vmem:[#allocation2 + $0x128] sm:$0xff]  ;;  %v5479_v0 = vpop.f32.mrf.mxu0 }
 0x3ab   :  { %v4940_v27 = vadd.f32 %v4875_v1, %v4290_v56  ;;  %4243 = vst.msk [vmem:[#allocation2 + $0x130] sm:$0xff] %vm219_vm0, %v4195_v20  ;;  %v5832_v53 = vsel %vm219_vm0, %v5689_v60, 0.0  ;;  %v5721_v4 = vpack.c.bf16 %v5689_v60, %v5689_v60 }
 0x3ac   :  { %v5035_v26 = vld [vmem:[#allocation2 + $0x120] sm:$0xff]  ;;  %v4134_v21 = vpop.f32.mrf.mxu2  ;;  %5833 = vadd.xlane.f32.xlu1 %v5832_v53 }
 0x3ad   :  { %4988 = vst.msk [vmem:[#allocation2 + $0x128] sm:$0xff] %vm219_vm0, %v4940_v27  ;;  %v5538_v40 = vadd.f32 %v5472_v10, %v5035_v26  ;;  %v3152_v53 = vld [vmem:[#allocation2 + $0x160] sm:$0xff] }
 0x3ae   :  { %5754 = vst.msk [vmem:[#allocation3 + $0x5c] sm:$0xf] %vm5730_vm3, %v5721_v4  ;;  %v3591_v39 = vpop.f32.mrf.mxu1 }
 0x3af   :  { %v4880_v42 = vpop.f32.mrf.mxu3  ;;  %5586 = vst.msk [vmem:[#allocation2 + $0x120] sm:$0xff] %vm219_vm0, %v5538_v40  ;;  %v3651_v29 = vadd.f32 %v3591_v39, %v3148_v47 }
 0x3b0   :  { %v3746_v38 = vld [vmem:[#allocation2 + $0x138] sm:$0xff] }
 0x3b1   :  { %v4196_v41 = vadd.f32 %v4134_v21, %v3746_v38  ;;  %3699 = vst.msk [vmem:[#allocation2 + $0x140] sm:$0xff] %vm219_vm0, %v3651_v29 }
 0x3b2   :  { %v4291_v37 = vld [vmem:[#allocation2 + $0x130] sm:$0xff]  ;;  %v5482_v17 = vpop.f32.mrf.mxu0 }
 0x3b3   :  { %v4941_v33 = vadd.f32 %v4878_v34, %v4291_v37  ;;  %4244 = vst.msk [vmem:[#allocation2 + $0x138] sm:$0xff] %vm219_vm0, %v4196_v41  ;;  %v3151_v34 = vld [vmem:[#allocation2 + $0x158] sm:$0xff] }
 0x3b4   :  { %v5036_v24 = vld [vmem:[#allocation2 + $0x128] sm:$0xff]  ;;  %v4137_v46 = vpop.f32.mrf.mxu2 }
 0x3b5   :  { %4989 = vst.msk [vmem:[#allocation2 + $0x130] sm:$0xff] %vm219_vm0, %v4941_v33  ;;  %v5539_v51 = vadd.f32 %v5474_v18, %v5036_v24 }
 0x3b6   :  { %v3593_v59 = vpop.f32.mrf.mxu1  ;;  %v5622_v49 = vld [vmem:[#allocation2 + $0x120] sm:$0xff] }
 0x3b7   :  { %v4883_v48 = vpop.f32.mrf.mxu3  ;;  %5587 = vst.msk [vmem:[#allocation2 + $0x128] sm:$0xff] %vm219_vm0, %v5539_v51  ;;  %v3652_v35 = vadd.f32 %v3593_v59, %v3149_v62  ;;  %v5658_v10 = vadd.f32 %v9824_v23, %v5622_v49  ;;  %v3153_v51 = vld [vmem:[#allocation2 + $0x168] sm:$0xff]  ;;  %v10131_v49 = vld [vmem:[%s10257_s2] ss:$0 sm:$0xff]  ;;  %s7618_s2 = smov [#allocation3]  }
 0x3b8   :  { %v3747_v11 = vld [vmem:[#allocation2 + $0x140] sm:$0xff]  ;;  %s5973_s13 = sshll.u32 %s7618_s2, 4  ;;  %s5974_s13 = int_to_ptr.vmem [resolvable:$true] %s5973_s13 }
 0x3b9   :  { %v4197_v13 = vadd.f32 %v4137_v46, %v3747_v11  ;;  %3700 = vst.msk [vmem:[#allocation2 + $0x148] sm:$0xff] %vm219_vm0, %v3652_v35  ;;  %v5690_v50 = vmax.f32 %v5658_v10, 0.0 }
 0x3ba   :  { %v4292_v43 = vld [vmem:[#allocation2 + $0x138] sm:$0xff]  ;;  %v5484_v45 = vpop.f32.mrf.mxu0 }
 0x3bb   :  { %v4942_v15 = vadd.f32 %v4880_v42, %v4292_v43  ;;  %4245 = vst.msk [vmem:[#allocation2 + $0x140] sm:$0xff] %vm219_vm0, %v4197_v13  ;;  %v5835_v55 = vsel %vm219_vm0, %v5690_v50, 0.0  ;;  %v5722_v19 = vpack.c.bf16 %v5690_v50, %v5690_v50 }
 0x3bc   :  { %v5037_v12 = vld [vmem:[#allocation2 + $0x130] sm:$0xff]  ;;  %v4139_v5 = vpop.f32.mrf.mxu2  ;;  %5836 = vadd.xlane.f32.xlu2 %v5835_v55 }
 0x3bd   :  { %4990 = vst.msk [vmem:[#allocation2 + $0x138] sm:$0xff] %vm219_vm0, %v4942_v15  ;;  %v5540_v36 = vadd.f32 %v5477_v57, %v5037_v12 }
 0x3be   :  { %5755 = vst.msk [vmem:[#allocation3 + $0x60] sm:$0xf] %vm5730_vm3, %v5722_v19  ;;  %v3596_v6 = vpop.f32.mrf.mxu1  ;;  %v5623_v54 = vld [vmem:[#allocation2 + $0x128] sm:$0xff] }
 0x3bf   :  { %v4885_v1 = vpop.f32.mrf.mxu3  ;;  %5588 = vst.msk [vmem:[#allocation2 + $0x130] sm:$0xff] %vm219_vm0, %v5540_v36  ;;  %v3653_v58 = vadd.f32 %v3596_v6, %v3150_v28  ;;  %v5659_v18 = vadd.f32 %v9824_v23, %v5623_v54 }
 0x3c0   :  { %v3748_v22 = vld [vmem:[#allocation2 + $0x148] sm:$0xff] }
 0x3c1   :  { %v4198_v2 = vadd.f32 %v4139_v5, %v3748_v22  ;;  %3701 = vst.msk [vmem:[#allocation2 + $0x150] sm:$0xff] %vm219_vm0, %v3653_v58  ;;  %v5691_v63 = vmax.f32 %v5659_v18, 0.0 }
 0x3c2   :  { %v4293_v61 = vld [vmem:[#allocation2 + $0x140] sm:$0xff]  ;;  %v5487_v38 = vpop.f32.mrf.mxu0 }
 0x3c3   :  { %v4943_v3 = vadd.f32 %v4883_v48, %v4293_v61  ;;  %4246 = vst.msk [vmem:[#allocation2 + $0x148] sm:$0xff] %vm219_vm0, %v4198_v2  ;;  %v5838_v25 = vsel %vm219_vm0, %v5691_v63, 0.0  ;;  %v5723_v14 = vpack.c.bf16 %v5691_v63, %v5691_v63  ;;  %v5808_v2 = vsel %vm219_vm0, %v9940_v52, 0.0 }
 0x3c4   :  { %v5038_v16 = vld [vmem:[#allocation2 + $0x138] sm:$0xff]  ;;  %v4142_v7 = vpop.f32.mrf.mxu2  ;;  %5839 = vadd.xlane.f32.xlu0 %v5838_v25 }
 0x3c5   :  { %4991 = vst.msk [vmem:[#allocation2 + $0x140] sm:$0xff] %vm219_vm0, %v4943_v3  ;;  %v5541_v30 = vadd.f32 %v5479_v0, %v5038_v16  ;;  %v3155_v16 = vld [vmem:[#allocation2 + $0x178] sm:$0xff] }
 0x3c6   :  { %5756 = vst.msk [vmem:[#allocation3 + $0x64] sm:$0xf] %vm5730_vm3, %v5723_v14  ;;  %v3598_v32 = vpop.f32.mrf.mxu1 }
 0x3c7   :  { %5589 = vst.msk [vmem:[#allocation2 + $0x138] sm:$0xff] %vm219_vm0, %v5541_v30  ;;  %v3654_v8 = vadd.f32 %v3598_v32, %v3151_v34  ;;  %v4888_v31 = vpop.f32.mrf.mxu3 }
 0x3c8   :  { %v3749_v9 = vld [vmem:[#allocation2 + $0x150] sm:$0xff] }
 0x3c9   :  { %v4199_v44 = vadd.f32 %v4142_v7, %v3749_v9  ;;  %3702 = vst.msk [vmem:[#allocation2 + $0x158] sm:$0xff] %vm219_vm0, %v3654_v8 }
 0x3ca   :  { %v4294_v20 = vld [vmem:[#allocation2 + $0x148] sm:$0xff]  ;;  %v5489_v12 = vpop.f32.mrf.mxu0 }
 0x3cb   :  { %v4944_v60 = vadd.f32 %v4885_v1, %v4294_v20  ;;  %4247 = vst.msk [vmem:[#allocation2 + $0x150] sm:$0xff] %vm219_vm0, %v4199_v44 }
 0x3cc   :  { %v5039_v57 = vld [vmem:[#allocation2 + $0x140] sm:$0xff]  ;;  %v4144_v56 = vpop.f32.mrf.mxu2 }
 0x3cd   :  { %4992 = vst.msk [vmem:[#allocation2 + $0x148] sm:$0xff] %vm219_vm0, %v4944_v60  ;;  %v5542_v27 = vadd.f32 %v5482_v17, %v5039_v57  ;;  %v3154_v17 = vld [vmem:[#allocation2 + $0x170] sm:$0xff] }
 0x3ce   :  { %v3601_v4 = vpop.f32.mrf.mxu1  ;;  %v5624_v26 = vld [vmem:[#allocation2 + $0x138] sm:$0xff] }
 0x3cf   :  { %5590 = vst.msk [vmem:[#allocation2 + $0x140] sm:$0xff] %vm219_vm0, %v5542_v27  ;;  %v3655_v21 = vadd.f32 %v3601_v4, %v3152_v53  ;;  %v5660_v40 = vadd.f32 %v9824_v23, %v5624_v26  ;;  %v4890_v39 = vpop.f32.mrf.mxu3 }
 0x3d0   :  { %v3750_v42 = vld [vmem:[#allocation2 + $0x158] sm:$0xff] }
 0x3d1   :  { %v4200_v47 = vadd.f32 %v4144_v56, %v3750_v42  ;;  %3703 = vst.msk [vmem:[#allocation2 + $0x160] sm:$0xff] %vm219_vm0, %v3655_v21  ;;  %v5692_v29 = vmax.f32 %v5660_v40, 0.0 }
 0x3d2   :  { %v4295_v41 = vld [vmem:[#allocation2 + $0x150] sm:$0xff]  ;;  %v5492_v25 = vpop.f32.mrf.mxu0 }
 0x3d3   :  { %v4945_v37 = vadd.f32 %v4888_v31, %v4295_v41  ;;  %4248 = vst.msk [vmem:[#allocation2 + $0x158] sm:$0xff] %vm219_vm0, %v4200_v47  ;;  %v5841_v33 = vsel %vm219_vm0, %v5692_v29, 0.0  ;;  %v5724_v0 = vpack.c.bf16 %v5692_v29, %v5692_v29 }
 0x3d4   :  { %v5040_v24 = vld [vmem:[#allocation2 + $0x148] sm:$0xff]  ;;  %v4147_v46 = vpop.f32.mrf.mxu2  ;;  %5842 = vadd.xlane.f32.xlu1 %v5841_v33 }
 0x3d5   :  { %4993 = vst.msk [vmem:[#allocation2 + $0x150] sm:$0xff] %vm219_vm0, %v4945_v37  ;;  %v5543_v23 = vadd.f32 %v5484_v45, %v5040_v24 }
 0x3d6   :  { %5757 = vst.msk [vmem:[#allocation3 + $0x68] sm:$0xf] %vm5730_vm3, %v5724_v0  ;;  %v3603_v48 = vpop.f32.mrf.mxu1  ;;  %v5625_v62 = vld [vmem:[#allocation2 + $0x140] sm:$0xff] }
 0x3d7   :  { %5591 = vst.msk [vmem:[#allocation2 + $0x148] sm:$0xff] %vm219_vm0, %v5543_v23  ;;  %v3656_v59 = vadd.f32 %v3603_v48, %v3153_v51  ;;  %v5661_v35 = vadd.f32 %v10131_v49, %v5625_v62  ;;  %v4893_v15 = vpop.f32.mrf.mxu3 }
 0x3d8   :  { %v3751_v10 = vld [vmem:[#allocation2 + $0x160] sm:$0xff] }
 0x3d9   :  { %v4201_v11 = vadd.f32 %v4147_v46, %v3751_v10  ;;  %3704 = vst.msk [vmem:[#allocation2 + $0x168] sm:$0xff] %vm219_vm0, %v3656_v59  ;;  %v5693_v13 = vmax.f32 %v5661_v35, 0.0 }
 0x3da   :  { %v4296_v50 = vld [vmem:[#allocation2 + $0x158] sm:$0xff]  ;;  %v5494_v27 = vpop.f32.mrf.mxu0 }
 0x3db   :  { %v4946_v43 = vadd.f32 %v4890_v39, %v4296_v50  ;;  %4249 = vst.msk [vmem:[#allocation2 + $0x160] sm:$0xff] %vm219_vm0, %v4201_v11  ;;  %v5844_v55 = vsel %vm219_vm0, %v5693_v13, 0.0  ;;  %v5725_v19 = vpack.c.bf16 %v5693_v13, %v5693_v13 }
 0x3dc   :  { %v5041_v5 = vld [vmem:[#allocation2 + $0x150] sm:$0xff]  ;;  %v4149_v36 = vpop.f32.mrf.mxu2  ;;  %5845 = vadd.xlane.f32.xlu2 %v5844_v55 }
 0x3dd   :  { %4994 = vst.msk [vmem:[#allocation2 + $0x158] sm:$0xff] %vm219_vm0, %v4946_v43  ;;  %v5544_v1 = vadd.f32 %v5487_v38, %v5041_v5  ;;  %v5777_v5 = vpop.xlane.xlu2 %5776 }
 0x3de   :  { %5758 = vst.msk [vmem:[#allocation3 + $0x6c] sm:$0xf] %vm5730_vm3, %v5725_v19  ;;  %v3606_v28 = vpop.f32.mrf.mxu1 }
 0x3df   :  { %5592 = vst.msk [vmem:[#allocation2 + $0x150] sm:$0xff] %vm219_vm0, %v5544_v1  ;;  %v3657_v6 = vadd.f32 %v3606_v28, %v3154_v17  ;;  %v4895_v3 = vpop.f32.mrf.mxu3  ;;  %v5765_v17 = vpop.xlane.xlu0 %5764 }
 0x3e0   :  { %v3752_v54 = vld [vmem:[#allocation2 + $0x168] sm:$0xff]  ;;  %v5771_v28 = vpop.xlane.xlu1 %5770 }
 0x3e1   :  { %v4202_v58 = vadd.f32 %v4149_v36, %v3752_v54  ;;  %3705 = vst.msk [vmem:[#allocation2 + $0x170] sm:$0xff] %vm219_vm0, %v3657_v6 }
 0x3e2   :  { %v4297_v18 = vld [vmem:[#allocation2 + $0x160] sm:$0xff]  ;;  %v5497_v24 = vpop.f32.mrf.mxu0 }
 0x3e3   :  { %v4947_v22 = vadd.f32 %v4893_v15, %v4297_v18  ;;  %4250 = vst.msk [vmem:[#allocation2 + $0x168] sm:$0xff] %vm219_vm0, %v4202_v58 }
 0x3e4   :  { %v5042_v63 = vld [vmem:[#allocation2 + $0x158] sm:$0xff]  ;;  %5809 = vadd.xlane.f32.xlu2 %v5808_v2  ;;  %v4152_v14 = vpop.f32.mrf.mxu2 }
 0x3e5   :  { %4995 = vst.msk [vmem:[#allocation2 + $0x160] sm:$0xff] %vm219_vm0, %v4947_v22  ;;  %v5545_v61 = vadd.f32 %v5489_v12, %v5042_v63 }
 0x3e6   :  { %v3608_v7 = vpop.f32.mrf.mxu1  ;;  %v5626_v30 = vld [vmem:[#allocation2 + $0x150] sm:$0xff] }
 0x3e7   :  { %5593 = vst.msk [vmem:[#allocation2 + $0x158] sm:$0xff] %vm219_vm0, %v5545_v61  ;;  %v3658_v34 = vadd.f32 %v3608_v7, %v3155_v16  ;;  %v5662_v32 = vadd.f32 %v10131_v49, %v5626_v30  ;;  %v4898_v4 = vpop.f32.mrf.mxu3  ;;  %v5768_v54 = vpop.xlane.xlu0 %5767 }
 0x3e8   :  { %v3753_v8 = vld [vmem:[#allocation2 + $0x170] sm:$0xff]  ;;  %v5774_v58 = vpop.xlane.xlu1 %5773 }
 0x3e9   :  { %v4203_v31 = vadd.f32 %v4152_v14, %v3753_v8  ;;  %3706 = vst.msk [vmem:[#allocation2 + $0x178] sm:$0xff] %vm219_vm0, %v3658_v34  ;;  %v5694_v52 = vmax.f32 %v5662_v32, 0.0 }
 0x3ea   :  { %v4298_v45 = vld [vmem:[#allocation2 + $0x168] sm:$0xff]  ;;  %v5499_v13 = vpop.f32.mrf.mxu0 }
 0x3eb   :  { %v4948_v9 = vadd.f32 %v4895_v3, %v4298_v45  ;;  %4251 = vst.msk [vmem:[#allocation2 + $0x170] sm:$0xff] %vm219_vm0, %v4203_v31  ;;  %v5847_v44 = vsel %vm219_vm0, %v5694_v52, 0.0  ;;  %v5726_v20 = vpack.c.bf16 %v5694_v52, %v5694_v52  ;;  %v5891_v3 = vlaneseq }
 0x3ec   :  { %v5043_v60 = vld [vmem:[#allocation2 + $0x160] sm:$0xff]  ;;  %5848 = vadd.xlane.f32.xlu0 %v5847_v44  ;;  %v4154_v21 = vpop.f32.mrf.mxu2 }
 0x3ed   :  { %4996 = vst.msk [vmem:[#allocation2 + $0x168] sm:$0xff] %vm219_vm0, %v4948_v9  ;;  %v5546_v57 = vadd.f32 %v5492_v25, %v5043_v60  ;;  %v10177_v16 = vand.u32 127, %v5891_v3 }
 0x3ee   :  { %5759 = vst.msk [vmem:[#allocation3 + $0x70] sm:$0xf] %vm5730_vm3, %v5726_v20  ;;  %v5627_v56 = vld [vmem:[#allocation2 + $0x158] sm:$0xff] }
 0x3ef   :  { %5594 = vst.msk [vmem:[#allocation2 + $0x160] sm:$0xff] %vm219_vm0, %v5546_v57  ;;  %v5663_v53 = vadd.f32 %v10131_v49, %v5627_v56  ;;  %v4900_v0 = vpop.f32.mrf.mxu3  ;;  %v5783_v22 = vpop.xlane.xlu0 %5782  ;;  %v10180_v7 = vadd.s32 4294967288, %v10177_v16  ;;  %v5898_v45 = vperm.slane %v5771_v28, %v10177_v16  ;;  %v5893_v44 = vperm.slane %v5765_v17, %v10177_v16 }
 0x3f0   :  { %v3754_v26 = vld [vmem:[#allocation2 + $0x178] sm:$0xff]  ;;  %v5786_v2 = vpop.xlane.xlu1 %5785  ;;  %v5901_v20 = vperm.slane %v5777_v5, %v10177_v16  ;;  %v5904_v56 = vperm.slane %v5783_v22, %v10177_v16 }
 0x3f1   :  { %v4204_v40 = vadd.f32 %v4154_v21, %v3754_v26  ;;  %v5695_v42 = vmax.f32 %v5663_v53, 0.0  ;;  %v5899_v34 = vperm.slane %v5774_v58, %v10180_v7  ;;  %v5895_v52 = vperm.slane %v5768_v54, %v10180_v7 }
 0x3f2   :  { %v4299_v47 = vld [vmem:[#allocation2 + $0x170] sm:$0xff]  ;;  %v5905_v9 = vperm.slane %v5786_v2, %v10180_v7 }
 0x3f3   :  { %v4949_v39 = vadd.f32 %v4898_v4, %v4299_v47  ;;  %4252 = vst.msk [vmem:[#allocation2 + $0x178] sm:$0xff] %vm219_vm0, %v4204_v40  ;;  %v5850_v29 = vsel %vm219_vm0, %v5695_v42, 0.0  ;;  %v5727_v38 = vpack.c.bf16 %v5695_v42, %v5695_v42  ;;  %v5900_v57 = vsel %vm5896_vm4, %v5899_v34, %v5898_v45 }
 0x3f4   :  { %v5044_v41 = vld [vmem:[#allocation2 + $0x168] sm:$0xff]  ;;  %5851 = vadd.xlane.f32.xlu1 %v5850_v29  ;;  %v5897_v21 = vsel %vm5896_vm4, %v5895_v52, %v5893_v44  ;;  %v5906_v40 = vsel %vm5896_vm4, %v5905_v9, %v5904_v56 }
 0x3f5   :  { %4997 = vst.msk [vmem:[#allocation2 + $0x170] sm:$0xff] %vm219_vm0, %v4949_v39  ;;  %v5547_v37 = vadd.f32 %v5494_v27, %v5044_v41  ;;  %v5944_v47 = vsel %vm5943_vm5, %v5900_v57, %v5897_v21 }
 0x3f6   :  { %5760 = vst.msk [vmem:[#allocation3 + $0x74] sm:$0xf] %vm5730_vm3, %v5727_v38 }
 0x3f7   :  { %5595 = vst.msk [vmem:[#allocation2 + $0x168] sm:$0xff] %vm219_vm0, %v5547_v37  ;;  %v5792_v61 = vpop.xlane.xlu0 %5791 }
 0x3f8   :  { %v5795_v25 = vpop.xlane.xlu1 %5794  ;;  %v5908_v60 = vperm.slane %v5792_v61, %v10180_v7 }
 0x3f9   :  { %v5910_v42 = vperm.slane %v5795_v25, %v10177_v16 }
 0x3fa   :  { %v4300_v33 = vld [vmem:[#allocation2 + $0x178] sm:$0xff] }
 0x3fb   :  { %v4950_v46 = vadd.f32 %v4900_v0, %v4300_v33 }
 0x3fc   :  { %v5045_v23 = vld [vmem:[#allocation2 + $0x170] sm:$0xff] }
 0x3fd   :  { %4998 = vst.msk [vmem:[#allocation2 + $0x178] sm:$0xff] %vm219_vm0, %v4950_v46  ;;  %v5548_v51 = vadd.f32 %v5497_v24, %v5045_v23 }
 0x3fe   :  { %v5628_v48 = vld [vmem:[#allocation2 + $0x168] sm:$0xff] }
 0x3ff   :  { %5596 = vst.msk [vmem:[#allocation2 + $0x170] sm:$0xff] %vm219_vm0, %v5548_v51  ;;  %v5664_v62 = vadd.f32 %v10131_v49, %v5628_v48  ;;  %v5801_v30 = vpop.xlane.xlu0 %5800 }
 0x400   :  { %v5804_v8 = vpop.xlane.xlu1 %5803  ;;  %v5913_v29 = vperm.slane %v5801_v30, %v10177_v16 }
 0x401   :  { %v5696_v59 = vmax.f32 %v5664_v62, 0.0  ;;  %v5914_v26 = vperm.slane %v5804_v8, %v10180_v7 }
 0x403   :  { %v5853_v35 = vsel %vm219_vm0, %v5696_v59, 0.0  ;;  %v5728_v10 = vpack.c.bf16 %v5696_v59, %v5696_v59  ;;  %v5915_v0 = vsel %vm5896_vm4, %v5914_v26, %v5913_v29 }
 0x404   :  { %v5046_v11 = vld [vmem:[#allocation2 + $0x178] sm:$0xff]  ;;  %5854 = vadd.xlane.f32.xlu0 %v5853_v35 }
 0x405   :  { %v5549_v50 = vadd.f32 %v5499_v13, %v5046_v11  ;;  %5761 = vst.msk [vmem:[#allocation3 + $0x78] sm:$0xf] %vm5730_vm3, %v5728_v10 }
 0x406   :  { %v5629_v43 = vld [vmem:[#allocation2 + $0x170] sm:$0xff] }
 0x407   :  { %5597 = vst.msk [vmem:[#allocation2 + $0x178] sm:$0xff] %vm219_vm0, %v5549_v50  ;;  %v5665_v15 = vadd.f32 %v10131_v49, %v5629_v43  ;;  %v5780_v49 = vpop.xlane.xlu2 %5779  ;;  %v5813_v38 = vpop.xlane.xlu0 %5812 }
 0x408   :  { %v5902_v32 = vperm.slane %v5780_v49, %v10180_v7  ;;  %v5816_v24 = vpop.xlane.xlu1 %5815  ;;  %v5919_v54 = vperm.slane %v5813_v38, %v10177_v16 }
 0x409   :  { %v5697_v55 = vmax.f32 %v5665_v15, 0.0 }
 0x40a   :  { %v5903_v53 = vsel %vm5896_vm4, %v5902_v32, %v5901_v20 }
 0x40b   :  { %v5856_v19 = vsel %vm219_vm0, %v5697_v55, 0.0  ;;  %v5729_v12 = vpack.c.bf16 %v5697_v55, %v5697_v55  ;;  %v5946_v41 = vsel %vm5945_vm6, %v5903_v53, %v5944_v47 }
 0x40c   :  { %5857 = vadd.xlane.f32.xlu1 %v5856_v19  ;;  %v5948_v33 = vsel %vm5947_vm7, %v5906_v40, %v5946_v41 }
 0x40d   :  { %5762 = vst.msk [vmem:[#allocation3 + $0x7c] sm:$0xf] %vm5730_vm3, %v5729_v12 }
 0x40e   :  { %5981 = dma.vmem_to_hbm [thread:$0]  %s5974_s13, 2048, %s5976_s15, [#allocation4], %s7619_s16, %s7619_s16, %s7620_s17  }
 0x40f   :  { %v5789_v36 = vpop.xlane.xlu2 %5788  ;;  %v5822_v11 = vpop.xlane.xlu0 %5821 }
 0x410   :  { %v5907_v4 = vperm.slane %v5789_v36, %v10177_v16  ;;  %v5825_v13 = vpop.xlane.xlu1 %5824  ;;  %v5923_v12 = vperm.slane %v5822_v11, %v10180_v7  ;;  %v5920_v36 = vperm.slane %v5816_v24, %v10180_v7 }
 0x411   :  { %v5925_v28 = vperm.slane %v5825_v13, %v10177_v16 }
 0x412   :  { %v5909_v39 = vsel %vm5896_vm4, %v5908_v60, %v5907_v4  ;;  %v5921_v3 = vsel %vm5896_vm4, %v5920_v36, %v5919_v54 }
 0x413   :  { %v5950_v23 = vsel %vm5949_vm8, %v5909_v39, %v5948_v33 }
 0x417   :  { %v5798_v1 = vpop.xlane.xlu2 %5797  ;;  %v5831_v50 = vpop.xlane.xlu0 %5830 }
 0x418   :  { %v5911_v27 = vperm.slane %v5798_v1, %v10180_v7  ;;  %v5928_v22 = vperm.slane %v5831_v50, %v10177_v16 }
 0x41a   :  { %v5912_v37 = vsel %vm5896_vm4, %v5911_v27, %v5910_v42 }
 0x41b   :  { %v5952_v62 = vsel %vm5951_vm9, %v5912_v37, %v5950_v23 }
 0x41c   :  { %v5954_v59 = vsel %vm5953_vm10, %v5915_v0, %v5952_v62 }
 0x41f   :  { %v5807_v6 = vpop.xlane.xlu2 %5806  ;;  %v5834_v43 = vpop.xlane.xlu1 %5833 }
 0x420   :  { %v5916_v51 = vperm.slane %v5807_v6, %v10177_v16  ;;  %v5929_v17 = vperm.slane %v5834_v43, %v10180_v7 }
 0x422   :  { %v5930_v25 = vsel %vm5896_vm4, %v5929_v17, %v5928_v22 }
 0x427   :  { %v10171_v18 = vpop.xlane.xlu2 %5818 }
 0x428   :  { %v5922_v1 = vperm.slane %v10171_v18, %v10177_v16 }
 0x42a   :  { %v5924_v58 = vsel %vm5896_vm4, %v5923_v12, %v5922_v1 }
 0x42b   :  { %v5957_v34 = vsel %vm5943_vm5, %v5924_v58, %v5921_v3 }
 0x42f   :  { %v10173_v63 = vpop.xlane.xlu2 %5827 }
 0x430   :  { %v5926_v5 = vperm.slane %v10173_v63, %v10180_v7 }
 0x432   :  { %v5927_v63 = vsel %vm5896_vm4, %v5926_v5, %v5925_v28 }
 0x433   :  { %v5958_v52 = vsel %vm5945_vm6, %v5927_v63, %v5957_v34 }
 0x437   :  { %v10175_v14 = vpop.xlane.xlu2 %5836  ;;  %v5840_v15 = vpop.xlane.xlu0 %5839 }
 0x438   :  { %v5932_v6 = vperm.slane %v5840_v15, %v10180_v7  ;;  %v5931_v18 = vperm.slane %v10175_v14, %v10177_v16  ;;  %v5959_v14 = vsel %vm5947_vm7, %v5930_v25, %v5958_v52 }
 0x43a   :  { %v5933_v32 = vsel %vm5896_vm4, %v5932_v6, %v5931_v18 }
 0x43b   :  { %v5960_v20 = vsel %vm5949_vm8, %v5933_v32, %v5959_v14 }
 0x447   :  { %v5843_v55 = vpop.xlane.xlu1 %5842 }
 0x448   :  { %v5934_v30 = vperm.slane %v5843_v55, %v10177_v16 }
 0x44f   :  { %v10184_v31 = vpop.xlane.xlu2 %5845 }
 0x450   :  { %v5935_v2 = vperm.slane %v10184_v31, %v10180_v7 }
 0x452   :  { %v5936_v45 = vsel %vm5896_vm4, %v5935_v2, %v5934_v30 }
 0x453   :  { %v5961_v56 = vsel %vm5951_vm9, %v5936_v45, %v5960_v20 }
 0x457   :  { %v5810_v46 = vpop.xlane.xlu2 %5809 }
 0x458   :  { %v5917_v48 = vperm.slane %v5810_v46, %v10180_v7 }
 0x45a   :  { %v5918_v35 = vsel %vm5896_vm4, %v5917_v48, %v5916_v51 }
 0x45b   :  { %v5956_v10 = vsel %vm5955_vm11, %v5918_v35, %v5954_v59 }
 0x45c   :  { %5967 = vst.msk [vmem:[#allocation5] sm:$0xff] %vm5966_vm12, %v5956_v10 }
 0x45f   :  { %v5849_v19 = vpop.xlane.xlu0 %5848 }
 0x460   :  { %v5937_v8 = vperm.slane %v5849_v19, %v10177_v16 }
 0x467   :  { %v5852_v49 = vpop.xlane.xlu1 %5851 }
 0x468   :  { %v5938_v61 = vperm.slane %v5852_v49, %v10180_v7 }
 0x46a   :  { %v5939_v9 = vsel %vm5896_vm4, %v5938_v61, %v5937_v8 }
 0x46b   :  { %v5962_v27 = vsel %vm5953_vm10, %v5939_v9, %v5961_v56 }
 0x477   :  { %v5855_v31 = vpop.xlane.xlu0 %5854 }
 0x478   :  { %v5940_v60 = vperm.slane %v5855_v31, %v10177_v16 }
 0x47f   :  { %v5858_v44 = vpop.xlane.xlu1 %5857 }
 0x480   :  { %v5941_v57 = vperm.slane %v5858_v44, %v10180_v7 }
 0x482   :  { %v5942_v53 = vsel %vm5896_vm4, %v5941_v57, %v5940_v60 }
 0x483   :  { %v5963_v4 = vsel %vm5955_vm11, %v5942_v53, %v5962_v27 }
 0x484   :  { %5968 = vst.msk [vmem:[#allocation5 + $0x8] sm:$0xff] %vm5966_vm12, %v5963_v4 }
 0x485   :  { %5994 = dma.vmem_to_hbm [thread:$0]  %s5987_s18, 256, %s5989_s21, [#allocation6], %s7622_s4, %s7622_s4, %s7623_s22  }
 0x486   :  { %7614 = dma.done.wait [#allocation4], 2048  }
 0x487   :  { %7615 = vsyncadd [#allocation4], 4294965248 }
 0x488   :  { %7616 = dma.done.wait [#allocation6], 256  }
 0x489   :  { %7617 = vsyncadd [#allocation6], 4294967040 }
 0x48a   :  { %6003 = vsyncpa [#allocation4], 1 }
 0x48b   :  { %6004 = vsyncpa [#allocation6], 1 }

</bundles_post_ra>
